<compile_context>
chip_gen: v7x
topology: tpu7x:2x2x1
jax: 0.10.0
libtpu: 0.0.40
codegen_flags: <defaults>
</compile_context>

<pallas_src>
import jax
import jax.numpy as jnp
from jax.experimental import pallas as pl
from jax.experimental.pallas import tpu as pltpu

EPS = 1e-5


def _fused_kernel(x_ref, gb1_ref, gb2_ref, w_hbm_ref, o_ref, w_vmem, w_sem):
    # x_ref:     (P, C_in)   f32   pixel-major activations (pixels on sublanes, channels on lanes)
    # gb1_ref:   (2, C_in)   f32   row 0 = gamma1, row 1 = beta1 (lane-major packed)
    # gb2_ref:   (2, C_out)  f32   row 0 = gamma2, row 1 = beta2
    # w_hbm_ref: (C_in, C_out) bf16 raw HBM ref (manual DMA)
    # o_ref:     (P, C_out)  f32
    # w_vmem:    (C_in, C_out) bf16 scratch landing buffer;  w_sem: DMA semaphore

    # Kick off the dominant weight DMA immediately so it overlaps BN1 compute.
    w_cp = pltpu.make_async_copy(w_hbm_ref, w_vmem, w_sem)
    w_cp.start()

    x = x_ref[...]                                   # (P, C_in) f32
    inv_p = 1.0 / x.shape[0]                         # static: 1 / (N*H*W)

    # ---- BatchNorm #1 (training-mode batch stats) folded to scale/shift, fused with ReLU ----
    g1 = gb1_ref[0:1, :]                             # (1, C_in)
    b1 = gb1_ref[1:2, :]
    m1 = jnp.sum(x, axis=0, keepdims=True) * inv_p           # (1, C_in) mean
    q1 = jnp.sum(x * x, axis=0, keepdims=True) * inv_p       # E[x^2]
    var1 = q1 - m1 * m1                                      # biased variance
    scale1 = g1 * jax.lax.rsqrt(var1 + EPS)
    shift1 = b1 - m1 * scale1
    xr = jnp.maximum(x * scale1 + shift1, 0.0).astype(jnp.bfloat16)   # BN1 + ReLU1, bf16 MXU operand

    # ---- 1x1 conv (no bias): (P, C_in) @ (C_in, C_out), bf16 operands, f32 accumulate ----
    w_cp.wait()                                      # weight DMA hidden behind BN1 above
    y = jnp.dot(xr, w_vmem[...], preferred_element_type=jnp.float32)  # (P, C_out) f32

    # ---- BatchNorm #2 + ReLU #2 (centered two-pass variance for precision) ----
    g2 = gb2_ref[0:1, :]                             # (1, C_out)
    b2 = gb2_ref[1:2, :]
    m2 = jnp.sum(y, axis=0, keepdims=True) * inv_p
    yc = y - m2
    var2 = jnp.sum(yc * yc, axis=0, keepdims=True) * inv_p
    scale2 = g2 * jax.lax.rsqrt(var2 + EPS)
    o_ref[...] = jnp.maximum(yc * scale2 + b2, 0.0)


def prepare_params(w_conv, gamma1, beta1, gamma2, beta2):
    """One-time parameter prep (do NOT re-run per forward call):
       - squeeze + transpose the Conv2d 1x1 weight to (C_in, C_out) and cast to bf16,
       - pack each BatchNorm's (gamma, beta) lane-major as a (2, C) f32 array."""
    c_out, c_in = w_conv.shape[0], w_conv.shape[1]
    w_t_bf16 = jnp.asarray(w_conv.reshape(c_out, c_in).T, dtype=jnp.bfloat16)  # (C_in, C_out)
    gb1 = jnp.stack([gamma1, beta1]).astype(jnp.float32)                       # (2, C_in)
    gb2 = jnp.stack([gamma2, beta2]).astype(jnp.float32)                       # (2, C_out)
    return w_t_bf16, gb1, gb2


@jax.jit
def bn_relu_conv_bn_relu(x_nchw, w_t_bf16, gb1, gb2):
    """x_nchw: (N, C_in, H, W) f32.  w_t_bf16: (C_in, C_out) bf16.  gb*: (2, C) f32."""
    N, C_in, H, W = x_nchw.shape
    C_out = w_t_bf16.shape[1]
    P = N * H * W

    # Pixel-major layout: NCHW -> NHWC -> (P, C_in).
    x_pc = jnp.transpose(x_nchw, (0, 2, 3, 1)).reshape(P, C_in)

    vmem = pl.BlockSpec(memory_space=pltpu.MemorySpace.VMEM)
    out_pc = pl.pallas_call(
        _fused_kernel,
        out_shape=jax.ShapeDtypeStruct((P, C_out), jnp.float32),
        in_specs=[vmem, vmem, vmem, pl.BlockSpec(memory_space=pl.ANY)],
        out_specs=vmem,
        scratch_shapes=[
            pltpu.VMEM((C_in, C_out), jnp.bfloat16),   # weight landing buffer
            pltpu.SemaphoreType.DMA(()),               # weight DMA completion semaphore
        ],
        cost_estimate=pl.CostEstimate(
            flops=2 * P * C_in * C_out + 10 * P * (C_in + C_out),
            transcendentals=C_in + C_out,
            bytes_accessed=(4 * x_pc.size + 2 * w_t_bf16.size
                            + 4 * (gb1.size + gb2.size) + 4 * P * C_out),
        ),
    )(x_pc, gb1, gb2, w_t_bf16)

    # (P, C_out) -> NCHW.
    return out_pc.reshape(N, H, W, C_out).transpose(0, 3, 1, 2)


def _reference(x_nchw, w_conv, gamma1, beta1, gamma2, beta2):
    """Pure-JAX f32 reference matching the PyTorch training-mode forward."""
    C_in = x_nchw.shape[1]
    C_out = w_conv.shape[0]
    w2d = w_conv.reshape(C_out, C_in)
    mean1 = jnp.mean(x_nchw, axis=(0, 2, 3), keepdims=True)
    var1 = jnp.mean((x_nchw - mean1) ** 2, axis=(0, 2, 3), keepdims=True)
    xb = ((x_nchw - mean1) * jax.lax.rsqrt(var1 + EPS)
          * gamma1.reshape(1, C_in, 1, 1) + beta1.reshape(1, C_in, 1, 1))
    xr = jnp.maximum(xb, 0.0)
    y = jnp.einsum("nchw,oc->nohw", xr, w2d)
    mean2 = jnp.mean(y, axis=(0, 2, 3), keepdims=True)
    var2 = jnp.mean((y - mean2) ** 2, axis=(0, 2, 3), keepdims=True)
    yb = ((y - mean2) * jax.lax.rsqrt(var2 + EPS)
          * gamma2.reshape(1, C_out, 1, 1) + beta2.reshape(1, C_out, 1, 1))
    return jnp.maximum(yb, 0.0)


if __name__ == "__main__":
    key = jax.random.PRNGKey(0)
    kx, kw, kg1, kb1, kg2, kb2 = jax.random.split(key, 6)

    N, C_in, H, W = 1, 1872, 7, 7
    C_out = 192

    x = jax.random.normal(kx, (N, C_in, H, W), dtype=jnp.float32)
    # Conv2d(1872, 192, kernel_size=(1,1), bias=False) weight in PyTorch layout.
    w = jax.random.normal(kw, (C_out, C_in, 1, 1), dtype=jnp.float32) * 0.02
    gamma1 = 1.0 + 0.1 * jax.random.normal(kg1, (C_in,), dtype=jnp.float32)
    beta1 = 0.1 * jax.random.normal(kb1, (C_in,), dtype=jnp.float32)
    gamma2 = 1.0 + 0.1 * jax.random.normal(kg2, (C_out,), dtype=jnp.float32)
    beta2 = 0.1 * jax.random.normal(kb2, (C_out,), dtype=jnp.float32)

    # One-time parameter prep (bf16 transposed weight, lane-major packed BN params).
    w_t_bf16, gb1, gb2 = prepare_params(w, gamma1, beta1, gamma2, beta2)

    out = bn_relu_conv_bn_relu(x, w_t_bf16, gb1, gb2)
    out = jax.block_until_ready(out)

    assert out.shape == (N, C_out, H, W), out.shape
    assert out.dtype == jnp.float32
    assert bool(jnp.all(jnp.isfinite(out)))

    # Tolerance check vs f32 reference (kernel uses bf16 MXU operands with f32
    # accumulation -> ~1e-2 max abs deviation expected).
    ref = jax.block_until_ready(_reference(x, w, gamma1, beta1, gamma2, beta2))
    max_err = float(jnp.max(jnp.abs(out - ref)))
    assert max_err < 1e-1, f"max abs error {max_err}"

    # TODO(synk): training-mode BatchNorm also updates running_mean/running_var buffers
    # (momentum=0.1); that side effect is not emitted since it does not affect the output.
    print("KERNEL_OK")
</pallas_src>

<mosaic_0001>
module attributes {stable_mosaic.version = 11 : i64} {
  func.func @_fused_kernel(%arg0: memref<49x1872xf32, #tpu.memory_space<vmem>>, %arg1: memref<2x1872xf32, #tpu.memory_space<vmem>>, %arg2: memref<2x192xf32, #tpu.memory_space<vmem>>, %arg3: memref<1872x192xbf16, #tpu.memory_space<any>>, %arg4: memref<49x192xf32, #tpu.memory_space<vmem>>, %arg5: memref<1872x192xbf16, #tpu.memory_space<vmem>>, %arg6: memref<!tpu.dma_semaphore, #tpu.memory_space<semaphore_mem>>) attributes {dimension_semantics = [], scalar_prefetch = 0 : i64, scratch_operands = 2 : i64, tpu.core_type = #tpu.core_type<tc>} {
    tpu.enqueue_dma source(%arg3 : memref<1872x192xbf16, #tpu.memory_space<any>>) target(%arg5 : memref<1872x192xbf16, #tpu.memory_space<vmem>>) target_semaphore(%arg6 : memref<!tpu.dma_semaphore, #tpu.memory_space<semaphore_mem>>)
    %c0 = arith.constant 0 : index
    %c0_0 = arith.constant 0 : index
    %0 = vector.load %arg0[%c0, %c0_0] : memref<49x1872xf32, #tpu.memory_space<vmem>>, vector<49x1872xf32>
    %c0_1 = arith.constant 0 : index
    %c0_2 = arith.constant 0 : index
    %1 = vector.load %arg1[%c0_1, %c0_2] : memref<2x1872xf32, #tpu.memory_space<vmem>>, vector<1x1872xf32>
    %c1 = arith.constant 1 : index
    %c0_3 = arith.constant 0 : index
    %2 = vector.load %arg1[%c1, %c0_3] : memref<2x1872xf32, #tpu.memory_space<vmem>>, vector<1x1872xf32>
    %cst = arith.constant dense<0.000000e+00> : vector<1872xf32>
    %3 = vector.multi_reduction <add>, %0, %cst [0] : vector<49x1872xf32> to vector<1872xf32>
    %4 = vector.shape_cast %3 : vector<1872xf32> to vector<1x1872xf32>
    %cst_4 = arith.constant 0.0204081628 : f32
    %5 = vector.broadcast %cst_4 : f32 to vector<1x1872xf32>
    %6 = arith.mulf %4, %5 : vector<1x1872xf32>
    %7 = arith.mulf %0, %0 : vector<49x1872xf32>
    %cst_5 = arith.constant dense<0.000000e+00> : vector<1872xf32>
    %8 = vector.multi_reduction <add>, %7, %cst_5 [0] : vector<49x1872xf32> to vector<1872xf32>
    %9 = vector.shape_cast %8 : vector<1872xf32> to vector<1x1872xf32>
    %cst_6 = arith.constant 0.0204081628 : f32
    %10 = vector.broadcast %cst_6 : f32 to vector<1x1872xf32>
    %11 = arith.mulf %9, %10 : vector<1x1872xf32>
    %12 = arith.mulf %6, %6 : vector<1x1872xf32>
    %13 = arith.subf %11, %12 : vector<1x1872xf32>
    %cst_7 = arith.constant 9.99999974E-6 : f32
    %14 = vector.broadcast %cst_7 : f32 to vector<1x1872xf32>
    %15 = arith.addf %13, %14 : vector<1x1872xf32>
    %16 = math.rsqrt %15 : vector<1x1872xf32>
    %17 = arith.mulf %1, %16 : vector<1x1872xf32>
    %18 = arith.mulf %6, %17 : vector<1x1872xf32>
    %19 = arith.subf %2, %18 : vector<1x1872xf32>
    %20 = vector.broadcast %17 : vector<1x1872xf32> to vector<49x1872xf32>
    %21 = arith.mulf %0, %20 : vector<49x1872xf32>
    %22 = vector.broadcast %19 : vector<1x1872xf32> to vector<49x1872xf32>
    %23 = arith.addf %21, %22 : vector<49x1872xf32>
    %cst_8 = arith.constant 0.000000e+00 : f32
    %24 = vector.broadcast %cst_8 : f32 to vector<49x1872xf32>
    %25 = arith.maximumf %23, %24 : vector<49x1872xf32>
    %26 = arith.truncf %25 : vector<49x1872xf32> to vector<49x1872xbf16>
    tpu.wait_dma2 semaphore(%arg6 : memref<!tpu.dma_semaphore, #tpu.memory_space<semaphore_mem>>) src(%arg3 : memref<1872x192xbf16, #tpu.memory_space<any>>) dst(%arg5 : memref<1872x192xbf16, #tpu.memory_space<vmem>>)
    %c0_9 = arith.constant 0 : index
    %c0_10 = arith.constant 0 : index
    %27 = vector.load %arg5[%c0_9, %c0_10] : memref<1872x192xbf16, #tpu.memory_space<vmem>>, vector<1872x192xbf16>
    %cst_11 = arith.constant dense<0.000000e+00> : vector<49x192xf32>
    %28 = tpu.matmul %26, %27, %cst_11 {dimension_numbers = #tpu.dot_dimension_numbers<[1], [0], [0], [1], [0, 0, 1, 1], [], []>} : vector<49x1872xbf16>, vector<1872x192xbf16>, vector<49x192xf32> -> vector<49x192xf32>
    %c0_12 = arith.constant 0 : index
    %c0_13 = arith.constant 0 : index
    %29 = vector.load %arg2[%c0_12, %c0_13] : memref<2x192xf32, #tpu.memory_space<vmem>>, vector<1x192xf32>
    %c1_14 = arith.constant 1 : index
    %c0_15 = arith.constant 0 : index
    %30 = vector.load %arg2[%c1_14, %c0_15] : memref<2x192xf32, #tpu.memory_space<vmem>>, vector<1x192xf32>
    %cst_16 = arith.constant dense<0.000000e+00> : vector<192xf32>
    %31 = vector.multi_reduction <add>, %28, %cst_16 [0] : vector<49x192xf32> to vector<192xf32>
    %32 = vector.shape_cast %31 : vector<192xf32> to vector<1x192xf32>
    %cst_17 = arith.constant 0.0204081628 : f32
    %33 = vector.broadcast %cst_17 : f32 to vector<1x192xf32>
    %34 = arith.mulf %32, %33 : vector<1x192xf32>
    %35 = vector.broadcast %34 : vector<1x192xf32> to vector<49x192xf32>
    %36 = arith.subf %28, %35 : vector<49x192xf32>
    %37 = arith.mulf %36, %36 : vector<49x192xf32>
    %cst_18 = arith.constant dense<0.000000e+00> : vector<192xf32>
    %38 = vector.multi_reduction <add>, %37, %cst_18 [0] : vector<49x192xf32> to vector<192xf32>
    %39 = vector.shape_cast %38 : vector<192xf32> to vector<1x192xf32>
    %cst_19 = arith.constant 0.0204081628 : f32
    %40 = vector.broadcast %cst_19 : f32 to vector<1x192xf32>
    %41 = arith.mulf %39, %40 : vector<1x192xf32>
    %cst_20 = arith.constant 9.99999974E-6 : f32
    %42 = vector.broadcast %cst_20 : f32 to vector<1x192xf32>
    %43 = arith.addf %41, %42 : vector<1x192xf32>
    %44 = math.rsqrt %43 : vector<1x192xf32>
    %45 = arith.mulf %29, %44 : vector<1x192xf32>
    %46 = vector.broadcast %45 : vector<1x192xf32> to vector<49x192xf32>
    %47 = arith.mulf %36, %46 : vector<49x192xf32>
    %48 = vector.broadcast %30 : vector<1x192xf32> to vector<49x192xf32>
    %49 = arith.addf %47, %48 : vector<49x192xf32>
    %cst_21 = arith.constant 0.000000e+00 : f32
    %50 = vector.broadcast %cst_21 : f32 to vector<49x192xf32>
    %51 = arith.maximumf %49, %50 : vector<49x192xf32>
    %c0_22 = arith.constant 0 : index
    %c0_23 = arith.constant 0 : index
    %52 = vector.load %arg4[%c0_22, %c0_23] : memref<49x192xf32, #tpu.memory_space<vmem>>, vector<49x192xf32>
    tpu.vector_store %arg4[%c0_22, %c0_23], %51 {strides = array<i32>} : memref<49x192xf32, #tpu.memory_space<vmem>>, vector<49x192xf32>,
    return
  }
}

</mosaic_0001>

<bundles_post_ra>
// kernel: bn_relu_conv_bn_relu.1
= control target key start
LH: loop header
LB: loop body
LE: loop exit
PB: predicated region body
PF: predicated region fallthrough
CT: control target
= control target key end

     0   :  { %s8819_s0 = inlined_call_operand.vmem [shape: f32[49,1872], index: 0, kind: input, shape index: {}]   ;;  %s8820_s1 = inlined_call_operand.vmem [shape: f32[2,1872], index: 1, kind: input, shape index: {}]   ;;  %s8821_s2 = inlined_call_operand.vmem [shape: f32[2,192], index: 2, kind: input, shape index: {}]   ;;  %s8822_s3 = inlined_call_operand.vmem [shape: bf16[1872,192], index: 3, kind: input, shape index: {}]   ;;  %s8823_s4 = inlined_call_operand.vmem [shape: f32[49,192], index: 4, kind: output, shape index: {}]  }
   0x1   :  { %v33_v0 = vld [vmem:[%s8822_s3] sm:$0xf]  ;;  %v35_v1 = vld [vmem:[%s8822_s3 + $0x8] sm:$0xf]  ;;  %v37_v2 = vld [vmem:[%s8822_s3 + $0x4] sm:$0xf] }
   0x2   :  { %34 = vst [vmem:[#allocation2] sm:$0xf] %v33_v0  ;;  %36 = vst [vmem:[#allocation2 + $0x4] sm:$0xf] %v35_v1  ;;  %v39_v3 = vld [vmem:[%s8822_s3 + $0xc] sm:$0xff]   ;;  %v47_v6 = vld [vmem:[%s8822_s3 + $0x1c] sm:$0xff]  }
   0x3   :  { %38 = vst [vmem:[#allocation2 + $0x8] sm:$0xf] %v37_v2  ;;  %v43_v4 = vld [vmem:[%s8822_s3 + $0x18] sm:$0xf]  ;;  %v45_v5 = vld [vmem:[%s8822_s3 + $0x14] sm:$0xf] }
   0x4   :  { %40 = vst [vmem:[#allocation2 + $0xc] sm:$0xff] %v39_v3   ;;  %44 = vst [vmem:[#allocation2 + $0x14] sm:$0xf] %v43_v4  ;;  %v51_v7 = vld [vmem:[%s8822_s3 + $0x28] sm:$0xf]  ;;  %v55_v9 = vld [vmem:[%s8822_s3 + $0x2c] sm:$0xff]  }
   0x5   :  { %46 = vst [vmem:[#allocation2 + $0x18] sm:$0xf] %v45_v5  ;;  %v53_v8 = vld [vmem:[%s8822_s3 + $0x24] sm:$0xf]  ;;  %48 = vst [vmem:[#allocation2 + $0x1c] sm:$0xff] %v47_v6   ;;  %v63_v12 = vld [vmem:[%s8822_s3 + $0x3c] sm:$0xff]  }
   0x6   :  { %52 = vst [vmem:[#allocation2 + $0x24] sm:$0xf] %v51_v7  ;;  %54 = vst [vmem:[#allocation2 + $0x28] sm:$0xf] %v53_v8  ;;  %v59_v10 = vld [vmem:[%s8822_s3 + $0x38] sm:$0xf] }
   0x7   :  { %v61_v11 = vld [vmem:[%s8822_s3 + $0x34] sm:$0xf]  ;;  %56 = vst [vmem:[#allocation2 + $0x2c] sm:$0xff] %v55_v9   ;;  %60 = vst [vmem:[#allocation2 + $0x34] sm:$0xf] %v59_v10  ;;  %v71_v15 = vld [vmem:[%s8822_s3 + $0x4c] sm:$0xff]  }
   0x8   :  { %62 = vst [vmem:[#allocation2 + $0x38] sm:$0xf] %v61_v11  ;;  %v67_v13 = vld [vmem:[%s8822_s3 + $0x48] sm:$0xf]  ;;  %v69_v14 = vld [vmem:[%s8822_s3 + $0x44] sm:$0xf] }
   0x9   :  { %64 = vst [vmem:[#allocation2 + $0x3c] sm:$0xff] %v63_v12   ;;  %68 = vst [vmem:[#allocation2 + $0x44] sm:$0xf] %v67_v13  ;;  %v75_v16 = vld [vmem:[%s8822_s3 + $0x58] sm:$0xf]  ;;  %v79_v18 = vld [vmem:[%s8822_s3 + $0x5c] sm:$0xff]  }
   0xa   :  { %70 = vst [vmem:[#allocation2 + $0x48] sm:$0xf] %v69_v14  ;;  %v77_v17 = vld [vmem:[%s8822_s3 + $0x54] sm:$0xf]  ;;  %72 = vst [vmem:[#allocation2 + $0x4c] sm:$0xff] %v71_v15   ;;  %v87_v21 = vld [vmem:[%s8822_s3 + $0x6c] sm:$0xff]  }
   0xb   :  { %76 = vst [vmem:[#allocation2 + $0x54] sm:$0xf] %v75_v16  ;;  %78 = vst [vmem:[#allocation2 + $0x58] sm:$0xf] %v77_v17  ;;  %v83_v19 = vld [vmem:[%s8822_s3 + $0x68] sm:$0xf] }
   0xc   :  { %v85_v20 = vld [vmem:[%s8822_s3 + $0x64] sm:$0xf]  ;;  %80 = vst [vmem:[#allocation2 + $0x5c] sm:$0xff] %v79_v18   ;;  %84 = vst [vmem:[#allocation2 + $0x64] sm:$0xf] %v83_v19  ;;  %v95_v24 = vld [vmem:[%s8822_s3 + $0x7c] sm:$0xff]  }
   0xd   :  { %86 = vst [vmem:[#allocation2 + $0x68] sm:$0xf] %v85_v20  ;;  %v91_v22 = vld [vmem:[%s8822_s3 + $0x78] sm:$0xf]  ;;  %v93_v23 = vld [vmem:[%s8822_s3 + $0x74] sm:$0xf] }
   0xe   :  { %88 = vst [vmem:[#allocation2 + $0x6c] sm:$0xff] %v87_v21   ;;  %92 = vst [vmem:[#allocation2 + $0x74] sm:$0xf] %v91_v22  ;;  %v99_v25 = vld [vmem:[%s8822_s3 + $0x88] sm:$0xf]  ;;  %v103_v27 = vld [vmem:[%s8822_s3 + $0x8c] sm:$0xff]  }
   0xf   :  { %94 = vst [vmem:[#allocation2 + $0x78] sm:$0xf] %v93_v23  ;;  %v101_v26 = vld [vmem:[%s8822_s3 + $0x84] sm:$0xf]  ;;  %96 = vst [vmem:[#allocation2 + $0x7c] sm:$0xff] %v95_v24   ;;  %v111_v30 = vld [vmem:[%s8822_s3 + $0x9c] sm:$0xff]  }
  0x10   :  { %100 = vst [vmem:[#allocation2 + $0x84] sm:$0xf] %v99_v25  ;;  %102 = vst [vmem:[#allocation2 + $0x88] sm:$0xf] %v101_v26  ;;  %v107_v28 = vld [vmem:[%s8822_s3 + $0x98] sm:$0xf] }
  0x11   :  { %v109_v29 = vld [vmem:[%s8822_s3 + $0x94] sm:$0xf]  ;;  %104 = vst [vmem:[#allocation2 + $0x8c] sm:$0xff] %v103_v27   ;;  %108 = vst [vmem:[#allocation2 + $0x94] sm:$0xf] %v107_v28  ;;  %v119_v33 = vld [vmem:[%s8822_s3 + $0xac] sm:$0xff]  }
  0x12   :  { %110 = vst [vmem:[#allocation2 + $0x98] sm:$0xf] %v109_v29  ;;  %v115_v31 = vld [vmem:[%s8822_s3 + $0xa8] sm:$0xf]  ;;  %v117_v32 = vld [vmem:[%s8822_s3 + $0xa4] sm:$0xf] }
  0x13   :  { %112 = vst [vmem:[#allocation2 + $0x9c] sm:$0xff] %v111_v30   ;;  %116 = vst [vmem:[#allocation2 + $0xa4] sm:$0xf] %v115_v31  ;;  %v123_v34 = vld [vmem:[%s8822_s3 + $0xb8] sm:$0xf]  ;;  %v127_v36 = vld [vmem:[%s8822_s3 + $0xbc] sm:$0xff]  }
  0x14   :  { %118 = vst [vmem:[#allocation2 + $0xa8] sm:$0xf] %v117_v32  ;;  %v125_v35 = vld [vmem:[%s8822_s3 + $0xb4] sm:$0xf]  ;;  %120 = vst [vmem:[#allocation2 + $0xac] sm:$0xff] %v119_v33   ;;  %v135_v39 = vld [vmem:[%s8822_s3 + $0xcc] sm:$0xff]  }
  0x15   :  { %124 = vst [vmem:[#allocation2 + $0xb4] sm:$0xf] %v123_v34  ;;  %126 = vst [vmem:[#allocation2 + $0xb8] sm:$0xf] %v125_v35  ;;  %v131_v37 = vld [vmem:[%s8822_s3 + $0xc8] sm:$0xf] }
  0x16   :  { %v133_v38 = vld [vmem:[%s8822_s3 + $0xc4] sm:$0xf]  ;;  %128 = vst [vmem:[#allocation2 + $0xbc] sm:$0xff] %v127_v36   ;;  %132 = vst [vmem:[#allocation2 + $0xc4] sm:$0xf] %v131_v37  ;;  %v143_v42 = vld [vmem:[%s8822_s3 + $0xdc] sm:$0xff]  }
  0x17   :  { %134 = vst [vmem:[#allocation2 + $0xc8] sm:$0xf] %v133_v38  ;;  %v139_v40 = vld [vmem:[%s8822_s3 + $0xd8] sm:$0xf]  ;;  %v141_v41 = vld [vmem:[%s8822_s3 + $0xd4] sm:$0xf] }
  0x18   :  { %136 = vst [vmem:[#allocation2 + $0xcc] sm:$0xff] %v135_v39   ;;  %140 = vst [vmem:[#allocation2 + $0xd4] sm:$0xf] %v139_v40  ;;  %v147_v43 = vld [vmem:[%s8822_s3 + $0xe8] sm:$0xf]  ;;  %v151_v45 = vld [vmem:[%s8822_s3 + $0xec] sm:$0xff]  }
  0x19   :  { %142 = vst [vmem:[#allocation2 + $0xd8] sm:$0xf] %v141_v41  ;;  %v149_v44 = vld [vmem:[%s8822_s3 + $0xe4] sm:$0xf]  ;;  %144 = vst [vmem:[#allocation2 + $0xdc] sm:$0xff] %v143_v42   ;;  %v159_v48 = vld [vmem:[%s8822_s3 + $0xfc] sm:$0xff]  }
  0x1a   :  { %148 = vst [vmem:[#allocation2 + $0xe4] sm:$0xf] %v147_v43  ;;  %150 = vst [vmem:[#allocation2 + $0xe8] sm:$0xf] %v149_v44  ;;  %v155_v46 = vld [vmem:[%s8822_s3 + $0xf8] sm:$0xf] }
  0x1b   :  { %v157_v47 = vld [vmem:[%s8822_s3 + $0xf4] sm:$0xf]  ;;  %152 = vst [vmem:[#allocation2 + $0xec] sm:$0xff] %v151_v45   ;;  %156 = vst [vmem:[#allocation2 + $0xf4] sm:$0xf] %v155_v46  ;;  %v167_v51 = vld [vmem:[%s8822_s3 + $0x10c] sm:$0xff]  }
  0x1c   :  { %158 = vst [vmem:[#allocation2 + $0xf8] sm:$0xf] %v157_v47  ;;  %v163_v49 = vld [vmem:[%s8822_s3 + $0x108] sm:$0xf]  ;;  %v165_v50 = vld [vmem:[%s8822_s3 + $0x104] sm:$0xf] }
  0x1d   :  { %160 = vst [vmem:[#allocation2 + $0xfc] sm:$0xff] %v159_v48   ;;  %164 = vst [vmem:[#allocation2 + $0x104] sm:$0xf] %v163_v49  ;;  %v171_v52 = vld [vmem:[%s8822_s3 + $0x118] sm:$0xf]  ;;  %v175_v54 = vld [vmem:[%s8822_s3 + $0x11c] sm:$0xff]  }
  0x1e   :  { %166 = vst [vmem:[#allocation2 + $0x108] sm:$0xf] %v165_v50  ;;  %v173_v53 = vld [vmem:[%s8822_s3 + $0x114] sm:$0xf]  ;;  %168 = vst [vmem:[#allocation2 + $0x10c] sm:$0xff] %v167_v51   ;;  %v183_v57 = vld [vmem:[%s8822_s3 + $0x12c] sm:$0xff]  }
  0x1f   :  { %172 = vst [vmem:[#allocation2 + $0x114] sm:$0xf] %v171_v52  ;;  %174 = vst [vmem:[#allocation2 + $0x118] sm:$0xf] %v173_v53  ;;  %v179_v55 = vld [vmem:[%s8822_s3 + $0x128] sm:$0xf] }
  0x20   :  { %v181_v56 = vld [vmem:[%s8822_s3 + $0x124] sm:$0xf]  ;;  %176 = vst [vmem:[#allocation2 + $0x11c] sm:$0xff] %v175_v54   ;;  %180 = vst [vmem:[#allocation2 + $0x124] sm:$0xf] %v179_v55  ;;  %v191_v60 = vld [vmem:[%s8822_s3 + $0x13c] sm:$0xff]  }
  0x21   :  { %182 = vst [vmem:[#allocation2 + $0x128] sm:$0xf] %v181_v56  ;;  %v187_v58 = vld [vmem:[%s8822_s3 + $0x138] sm:$0xf]  ;;  %v189_v59 = vld [vmem:[%s8822_s3 + $0x134] sm:$0xf] }
  0x22   :  { %184 = vst [vmem:[#allocation2 + $0x12c] sm:$0xff] %v183_v57   ;;  %188 = vst [vmem:[#allocation2 + $0x134] sm:$0xf] %v187_v58  ;;  %v195_v61 = vld [vmem:[%s8822_s3 + $0x148] sm:$0xf]  ;;  %v199_v63 = vld [vmem:[%s8822_s3 + $0x14c] sm:$0xff]  }
  0x23   :  { %190 = vst [vmem:[#allocation2 + $0x138] sm:$0xf] %v189_v59  ;;  %v197_v62 = vld [vmem:[%s8822_s3 + $0x144] sm:$0xf]  ;;  %192 = vst [vmem:[#allocation2 + $0x13c] sm:$0xff] %v191_v60   ;;  %v207_v2 = vld [vmem:[%s8822_s3 + $0x15c] sm:$0xff]  }
  0x24   :  { %196 = vst [vmem:[#allocation2 + $0x144] sm:$0xf] %v195_v61  ;;  %198 = vst [vmem:[#allocation2 + $0x148] sm:$0xf] %v197_v62  ;;  %v203_v0 = vld [vmem:[%s8822_s3 + $0x158] sm:$0xf] }
  0x25   :  { %v205_v1 = vld [vmem:[%s8822_s3 + $0x154] sm:$0xf]  ;;  %200 = vst [vmem:[#allocation2 + $0x14c] sm:$0xff] %v199_v63   ;;  %204 = vst [vmem:[#allocation2 + $0x154] sm:$0xf] %v203_v0  ;;  %v215_v5 = vld [vmem:[%s8822_s3 + $0x16c] sm:$0xff]  }
  0x26   :  { %206 = vst [vmem:[#allocation2 + $0x158] sm:$0xf] %v205_v1  ;;  %v211_v3 = vld [vmem:[%s8822_s3 + $0x168] sm:$0xf]  ;;  %v213_v4 = vld [vmem:[%s8822_s3 + $0x164] sm:$0xf] }
  0x27   :  { %208 = vst [vmem:[#allocation2 + $0x15c] sm:$0xff] %v207_v2   ;;  %212 = vst [vmem:[#allocation2 + $0x164] sm:$0xf] %v211_v3  ;;  %v219_v6 = vld [vmem:[%s8822_s3 + $0x178] sm:$0xf]  ;;  %v223_v8 = vld [vmem:[%s8822_s3 + $0x17c] sm:$0xff]  }
  0x28   :  { %214 = vst [vmem:[#allocation2 + $0x168] sm:$0xf] %v213_v4  ;;  %v221_v7 = vld [vmem:[%s8822_s3 + $0x174] sm:$0xf]  ;;  %216 = vst [vmem:[#allocation2 + $0x16c] sm:$0xff] %v215_v5   ;;  %v231_v11 = vld [vmem:[%s8822_s3 + $0x18c] sm:$0xff]  }
  0x29   :  { %220 = vst [vmem:[#allocation2 + $0x174] sm:$0xf] %v219_v6  ;;  %222 = vst [vmem:[#allocation2 + $0x178] sm:$0xf] %v221_v7  ;;  %v227_v9 = vld [vmem:[%s8822_s3 + $0x188] sm:$0xf] }
  0x2a   :  { %v229_v10 = vld [vmem:[%s8822_s3 + $0x184] sm:$0xf]  ;;  %224 = vst [vmem:[#allocation2 + $0x17c] sm:$0xff] %v223_v8   ;;  %228 = vst [vmem:[#allocation2 + $0x184] sm:$0xf] %v227_v9  ;;  %v239_v14 = vld [vmem:[%s8822_s3 + $0x19c] sm:$0xff]  }
  0x2b   :  { %230 = vst [vmem:[#allocation2 + $0x188] sm:$0xf] %v229_v10  ;;  %v235_v12 = vld [vmem:[%s8822_s3 + $0x198] sm:$0xf]  ;;  %v237_v13 = vld [vmem:[%s8822_s3 + $0x194] sm:$0xf] }
  0x2c   :  { %232 = vst [vmem:[#allocation2 + $0x18c] sm:$0xff] %v231_v11   ;;  %236 = vst [vmem:[#allocation2 + $0x194] sm:$0xf] %v235_v12  ;;  %v243_v15 = vld [vmem:[%s8822_s3 + $0x1a8] sm:$0xf]  ;;  %v247_v17 = vld [vmem:[%s8822_s3 + $0x1ac] sm:$0xff]  }
  0x2d   :  { %238 = vst [vmem:[#allocation2 + $0x198] sm:$0xf] %v237_v13  ;;  %v245_v16 = vld [vmem:[%s8822_s3 + $0x1a4] sm:$0xf]  ;;  %240 = vst [vmem:[#allocation2 + $0x19c] sm:$0xff] %v239_v14   ;;  %v255_v20 = vld [vmem:[%s8822_s3 + $0x1bc] sm:$0xff]  }
  0x2e   :  { %244 = vst [vmem:[#allocation2 + $0x1a4] sm:$0xf] %v243_v15  ;;  %246 = vst [vmem:[#allocation2 + $0x1a8] sm:$0xf] %v245_v16  ;;  %v251_v18 = vld [vmem:[%s8822_s3 + $0x1b8] sm:$0xf] }
  0x2f   :  { %v253_v19 = vld [vmem:[%s8822_s3 + $0x1b4] sm:$0xf]  ;;  %248 = vst [vmem:[#allocation2 + $0x1ac] sm:$0xff] %v247_v17   ;;  %252 = vst [vmem:[#allocation2 + $0x1b4] sm:$0xf] %v251_v18  ;;  %v263_v23 = vld [vmem:[%s8822_s3 + $0x1cc] sm:$0xff]  }
  0x30   :  { %254 = vst [vmem:[#allocation2 + $0x1b8] sm:$0xf] %v253_v19  ;;  %v259_v21 = vld [vmem:[%s8822_s3 + $0x1c8] sm:$0xf]  ;;  %v261_v22 = vld [vmem:[%s8822_s3 + $0x1c4] sm:$0xf] }
  0x31   :  { %256 = vst [vmem:[#allocation2 + $0x1bc] sm:$0xff] %v255_v20   ;;  %260 = vst [vmem:[#allocation2 + $0x1c4] sm:$0xf] %v259_v21  ;;  %v267_v24 = vld [vmem:[%s8822_s3 + $0x1d8] sm:$0xf]  ;;  %v271_v26 = vld [vmem:[%s8822_s3 + $0x1dc] sm:$0xff]  }
  0x32   :  { %262 = vst [vmem:[#allocation2 + $0x1c8] sm:$0xf] %v261_v22  ;;  %v269_v25 = vld [vmem:[%s8822_s3 + $0x1d4] sm:$0xf]  ;;  %264 = vst [vmem:[#allocation2 + $0x1cc] sm:$0xff] %v263_v23   ;;  %v279_v29 = vld [vmem:[%s8822_s3 + $0x1ec] sm:$0xff]  }
  0x33   :  { %268 = vst [vmem:[#allocation2 + $0x1d4] sm:$0xf] %v267_v24  ;;  %270 = vst [vmem:[#allocation2 + $0x1d8] sm:$0xf] %v269_v25  ;;  %v275_v27 = vld [vmem:[%s8822_s3 + $0x1e8] sm:$0xf] }
  0x34   :  { %v277_v28 = vld [vmem:[%s8822_s3 + $0x1e4] sm:$0xf]  ;;  %272 = vst [vmem:[#allocation2 + $0x1dc] sm:$0xff] %v271_v26   ;;  %276 = vst [vmem:[#allocation2 + $0x1e4] sm:$0xf] %v275_v27  ;;  %v287_v32 = vld [vmem:[%s8822_s3 + $0x1fc] sm:$0xff]  }
  0x35   :  { %278 = vst [vmem:[#allocation2 + $0x1e8] sm:$0xf] %v277_v28  ;;  %v283_v30 = vld [vmem:[%s8822_s3 + $0x1f8] sm:$0xf]  ;;  %v285_v31 = vld [vmem:[%s8822_s3 + $0x1f4] sm:$0xf] }
  0x36   :  { %280 = vst [vmem:[#allocation2 + $0x1ec] sm:$0xff] %v279_v29   ;;  %284 = vst [vmem:[#allocation2 + $0x1f4] sm:$0xf] %v283_v30  ;;  %v291_v33 = vld [vmem:[%s8822_s3 + $0x208] sm:$0xf]  ;;  %v295_v35 = vld [vmem:[%s8822_s3 + $0x20c] sm:$0xff]  }
  0x37   :  { %286 = vst [vmem:[#allocation2 + $0x1f8] sm:$0xf] %v285_v31  ;;  %v293_v34 = vld [vmem:[%s8822_s3 + $0x204] sm:$0xf]  ;;  %288 = vst [vmem:[#allocation2 + $0x1fc] sm:$0xff] %v287_v32   ;;  %v303_v38 = vld [vmem:[%s8822_s3 + $0x21c] sm:$0xff]  }
  0x38   :  { %292 = vst [vmem:[#allocation2 + $0x204] sm:$0xf] %v291_v33  ;;  %294 = vst [vmem:[#allocation2 + $0x208] sm:$0xf] %v293_v34  ;;  %v299_v36 = vld [vmem:[%s8822_s3 + $0x218] sm:$0xf] }
  0x39   :  { %v301_v37 = vld [vmem:[%s8822_s3 + $0x214] sm:$0xf]  ;;  %296 = vst [vmem:[#allocation2 + $0x20c] sm:$0xff] %v295_v35   ;;  %300 = vst [vmem:[#allocation2 + $0x214] sm:$0xf] %v299_v36  ;;  %v311_v41 = vld [vmem:[%s8822_s3 + $0x22c] sm:$0xff]  }
  0x3a   :  { %302 = vst [vmem:[#allocation2 + $0x218] sm:$0xf] %v301_v37  ;;  %v307_v39 = vld [vmem:[%s8822_s3 + $0x228] sm:$0xf]  ;;  %v309_v40 = vld [vmem:[%s8822_s3 + $0x224] sm:$0xf] }
  0x3b   :  { %304 = vst [vmem:[#allocation2 + $0x21c] sm:$0xff] %v303_v38   ;;  %308 = vst [vmem:[#allocation2 + $0x224] sm:$0xf] %v307_v39  ;;  %v315_v42 = vld [vmem:[%s8822_s3 + $0x238] sm:$0xf]  ;;  %v319_v44 = vld [vmem:[%s8822_s3 + $0x23c] sm:$0xff]  }
  0x3c   :  { %310 = vst [vmem:[#allocation2 + $0x228] sm:$0xf] %v309_v40  ;;  %v317_v43 = vld [vmem:[%s8822_s3 + $0x234] sm:$0xf]  ;;  %312 = vst [vmem:[#allocation2 + $0x22c] sm:$0xff] %v311_v41   ;;  %v327_v47 = vld [vmem:[%s8822_s3 + $0x24c] sm:$0xff]  }
  0x3d   :  { %316 = vst [vmem:[#allocation2 + $0x234] sm:$0xf] %v315_v42  ;;  %318 = vst [vmem:[#allocation2 + $0x238] sm:$0xf] %v317_v43  ;;  %v323_v45 = vld [vmem:[%s8822_s3 + $0x248] sm:$0xf] }
  0x3e   :  { %v325_v46 = vld [vmem:[%s8822_s3 + $0x244] sm:$0xf]  ;;  %320 = vst [vmem:[#allocation2 + $0x23c] sm:$0xff] %v319_v44   ;;  %324 = vst [vmem:[#allocation2 + $0x244] sm:$0xf] %v323_v45  ;;  %v335_v50 = vld [vmem:[%s8822_s3 + $0x25c] sm:$0xff]  }
  0x3f   :  { %326 = vst [vmem:[#allocation2 + $0x248] sm:$0xf] %v325_v46  ;;  %v331_v48 = vld [vmem:[%s8822_s3 + $0x258] sm:$0xf]  ;;  %v333_v49 = vld [vmem:[%s8822_s3 + $0x254] sm:$0xf] }
  0x40   :  { %328 = vst [vmem:[#allocation2 + $0x24c] sm:$0xff] %v327_v47   ;;  %332 = vst [vmem:[#allocation2 + $0x254] sm:$0xf] %v331_v48  ;;  %v339_v51 = vld [vmem:[%s8822_s3 + $0x268] sm:$0xf]  ;;  %v343_v53 = vld [vmem:[%s8822_s3 + $0x26c] sm:$0xff]  }
  0x41   :  { %334 = vst [vmem:[#allocation2 + $0x258] sm:$0xf] %v333_v49  ;;  %v341_v52 = vld [vmem:[%s8822_s3 + $0x264] sm:$0xf]  ;;  %336 = vst [vmem:[#allocation2 + $0x25c] sm:$0xff] %v335_v50   ;;  %v351_v56 = vld [vmem:[%s8822_s3 + $0x27c] sm:$0xff]  }
  0x42   :  { %340 = vst [vmem:[#allocation2 + $0x264] sm:$0xf] %v339_v51  ;;  %342 = vst [vmem:[#allocation2 + $0x268] sm:$0xf] %v341_v52  ;;  %v347_v54 = vld [vmem:[%s8822_s3 + $0x278] sm:$0xf] }
  0x43   :  { %v349_v55 = vld [vmem:[%s8822_s3 + $0x274] sm:$0xf]  ;;  %344 = vst [vmem:[#allocation2 + $0x26c] sm:$0xff] %v343_v53   ;;  %348 = vst [vmem:[#allocation2 + $0x274] sm:$0xf] %v347_v54  ;;  %v359_v59 = vld [vmem:[%s8822_s3 + $0x28c] sm:$0xff]  }
  0x44   :  { %350 = vst [vmem:[#allocation2 + $0x278] sm:$0xf] %v349_v55  ;;  %v355_v57 = vld [vmem:[%s8822_s3 + $0x288] sm:$0xf]  ;;  %v357_v58 = vld [vmem:[%s8822_s3 + $0x284] sm:$0xf] }
  0x45   :  { %352 = vst [vmem:[#allocation2 + $0x27c] sm:$0xff] %v351_v56   ;;  %356 = vst [vmem:[#allocation2 + $0x284] sm:$0xf] %v355_v57  ;;  %v363_v60 = vld [vmem:[%s8822_s3 + $0x298] sm:$0xf]  ;;  %v367_v62 = vld [vmem:[%s8822_s3 + $0x29c] sm:$0xff]  }
  0x46   :  { %358 = vst [vmem:[#allocation2 + $0x288] sm:$0xf] %v357_v58  ;;  %v365_v61 = vld [vmem:[%s8822_s3 + $0x294] sm:$0xf]  ;;  %360 = vst [vmem:[#allocation2 + $0x28c] sm:$0xff] %v359_v59   ;;  %v375_v1 = vld [vmem:[%s8822_s3 + $0x2ac] sm:$0xff]  }
  0x47   :  { %364 = vst [vmem:[#allocation2 + $0x294] sm:$0xf] %v363_v60  ;;  %366 = vst [vmem:[#allocation2 + $0x298] sm:$0xf] %v365_v61  ;;  %v371_v63 = vld [vmem:[%s8822_s3 + $0x2a8] sm:$0xf] }
  0x48   :  { %v373_v0 = vld [vmem:[%s8822_s3 + $0x2a4] sm:$0xf]  ;;  %368 = vst [vmem:[#allocation2 + $0x29c] sm:$0xff] %v367_v62   ;;  %372 = vst [vmem:[#allocation2 + $0x2a4] sm:$0xf] %v371_v63  ;;  %v383_v4 = vld [vmem:[%s8822_s3 + $0x2bc] sm:$0xff]  }
  0x49   :  { %374 = vst [vmem:[#allocation2 + $0x2a8] sm:$0xf] %v373_v0  ;;  %v379_v2 = vld [vmem:[%s8822_s3 + $0x2b8] sm:$0xf]  ;;  %v381_v3 = vld [vmem:[%s8822_s3 + $0x2b4] sm:$0xf] }
  0x4a   :  { %376 = vst [vmem:[#allocation2 + $0x2ac] sm:$0xff] %v375_v1   ;;  %380 = vst [vmem:[#allocation2 + $0x2b4] sm:$0xf] %v379_v2  ;;  %v387_v5 = vld [vmem:[%s8822_s3 + $0x2c8] sm:$0xf]  ;;  %v391_v7 = vld [vmem:[%s8822_s3 + $0x2cc] sm:$0xff]  }
  0x4b   :  { %382 = vst [vmem:[#allocation2 + $0x2b8] sm:$0xf] %v381_v3  ;;  %v389_v6 = vld [vmem:[%s8822_s3 + $0x2c4] sm:$0xf]  ;;  %384 = vst [vmem:[#allocation2 + $0x2bc] sm:$0xff] %v383_v4   ;;  %v399_v10 = vld [vmem:[%s8822_s3 + $0x2dc] sm:$0xff]  }
  0x4c   :  { %388 = vst [vmem:[#allocation2 + $0x2c4] sm:$0xf] %v387_v5  ;;  %390 = vst [vmem:[#allocation2 + $0x2c8] sm:$0xf] %v389_v6  ;;  %v395_v8 = vld [vmem:[%s8822_s3 + $0x2d8] sm:$0xf] }
  0x4d   :  { %v397_v9 = vld [vmem:[%s8822_s3 + $0x2d4] sm:$0xf]  ;;  %392 = vst [vmem:[#allocation2 + $0x2cc] sm:$0xff] %v391_v7   ;;  %396 = vst [vmem:[#allocation2 + $0x2d4] sm:$0xf] %v395_v8  ;;  %v407_v13 = vld [vmem:[%s8822_s3 + $0x2ec] sm:$0xff]  }
  0x4e   :  { %398 = vst [vmem:[#allocation2 + $0x2d8] sm:$0xf] %v397_v9  ;;  %v403_v11 = vld [vmem:[%s8822_s3 + $0x2e8] sm:$0xf]  ;;  %v405_v12 = vld [vmem:[%s8822_s3 + $0x2e4] sm:$0xf] }
  0x4f   :  { %400 = vst [vmem:[#allocation2 + $0x2dc] sm:$0xff] %v399_v10   ;;  %404 = vst [vmem:[#allocation2 + $0x2e4] sm:$0xf] %v403_v11  ;;  %v411_v14 = vld [vmem:[%s8822_s3 + $0x2f8] sm:$0xf]  ;;  %v415_v16 = vld [vmem:[%s8822_s3 + $0x2fc] sm:$0xff]  }
  0x50   :  { %406 = vst [vmem:[#allocation2 + $0x2e8] sm:$0xf] %v405_v12  ;;  %v413_v15 = vld [vmem:[%s8822_s3 + $0x2f4] sm:$0xf]  ;;  %408 = vst [vmem:[#allocation2 + $0x2ec] sm:$0xff] %v407_v13   ;;  %v423_v19 = vld [vmem:[%s8822_s3 + $0x30c] sm:$0xff]  }
  0x51   :  { %412 = vst [vmem:[#allocation2 + $0x2f4] sm:$0xf] %v411_v14  ;;  %414 = vst [vmem:[#allocation2 + $0x2f8] sm:$0xf] %v413_v15  ;;  %v419_v17 = vld [vmem:[%s8822_s3 + $0x308] sm:$0xf] }
  0x52   :  { %v421_v18 = vld [vmem:[%s8822_s3 + $0x304] sm:$0xf]  ;;  %416 = vst [vmem:[#allocation2 + $0x2fc] sm:$0xff] %v415_v16   ;;  %420 = vst [vmem:[#allocation2 + $0x304] sm:$0xf] %v419_v17  ;;  %v431_v22 = vld [vmem:[%s8822_s3 + $0x31c] sm:$0xff]  }
  0x53   :  { %422 = vst [vmem:[#allocation2 + $0x308] sm:$0xf] %v421_v18  ;;  %v427_v20 = vld [vmem:[%s8822_s3 + $0x318] sm:$0xf]  ;;  %v429_v21 = vld [vmem:[%s8822_s3 + $0x314] sm:$0xf] }
  0x54   :  { %424 = vst [vmem:[#allocation2 + $0x30c] sm:$0xff] %v423_v19   ;;  %428 = vst [vmem:[#allocation2 + $0x314] sm:$0xf] %v427_v20  ;;  %v435_v23 = vld [vmem:[%s8822_s3 + $0x328] sm:$0xf]  ;;  %v439_v25 = vld [vmem:[%s8822_s3 + $0x32c] sm:$0xff]  }
  0x55   :  { %430 = vst [vmem:[#allocation2 + $0x318] sm:$0xf] %v429_v21  ;;  %v437_v24 = vld [vmem:[%s8822_s3 + $0x324] sm:$0xf]  ;;  %432 = vst [vmem:[#allocation2 + $0x31c] sm:$0xff] %v431_v22   ;;  %v447_v28 = vld [vmem:[%s8822_s3 + $0x33c] sm:$0xff]  }
  0x56   :  { %436 = vst [vmem:[#allocation2 + $0x324] sm:$0xf] %v435_v23  ;;  %438 = vst [vmem:[#allocation2 + $0x328] sm:$0xf] %v437_v24  ;;  %v443_v26 = vld [vmem:[%s8822_s3 + $0x338] sm:$0xf] }
  0x57   :  { %v445_v27 = vld [vmem:[%s8822_s3 + $0x334] sm:$0xf]  ;;  %440 = vst [vmem:[#allocation2 + $0x32c] sm:$0xff] %v439_v25   ;;  %444 = vst [vmem:[#allocation2 + $0x334] sm:$0xf] %v443_v26  ;;  %v455_v31 = vld [vmem:[%s8822_s3 + $0x34c] sm:$0xff]  }
  0x58   :  { %446 = vst [vmem:[#allocation2 + $0x338] sm:$0xf] %v445_v27  ;;  %v451_v29 = vld [vmem:[%s8822_s3 + $0x348] sm:$0xf]  ;;  %v453_v30 = vld [vmem:[%s8822_s3 + $0x344] sm:$0xf] }
  0x59   :  { %448 = vst [vmem:[#allocation2 + $0x33c] sm:$0xff] %v447_v28   ;;  %452 = vst [vmem:[#allocation2 + $0x344] sm:$0xf] %v451_v29  ;;  %v459_v32 = vld [vmem:[%s8822_s3 + $0x358] sm:$0xf]  ;;  %v463_v34 = vld [vmem:[%s8822_s3 + $0x35c] sm:$0xff]  }
  0x5a   :  { %454 = vst [vmem:[#allocation2 + $0x348] sm:$0xf] %v453_v30  ;;  %v461_v33 = vld [vmem:[%s8822_s3 + $0x354] sm:$0xf]  ;;  %456 = vst [vmem:[#allocation2 + $0x34c] sm:$0xff] %v455_v31   ;;  %v471_v37 = vld [vmem:[%s8822_s3 + $0x36c] sm:$0xff]  }
  0x5b   :  { %460 = vst [vmem:[#allocation2 + $0x354] sm:$0xf] %v459_v32  ;;  %462 = vst [vmem:[#allocation2 + $0x358] sm:$0xf] %v461_v33  ;;  %v467_v35 = vld [vmem:[%s8822_s3 + $0x368] sm:$0xf] }
  0x5c   :  { %v469_v36 = vld [vmem:[%s8822_s3 + $0x364] sm:$0xf]  ;;  %464 = vst [vmem:[#allocation2 + $0x35c] sm:$0xff] %v463_v34   ;;  %468 = vst [vmem:[#allocation2 + $0x364] sm:$0xf] %v467_v35  ;;  %v479_v40 = vld [vmem:[%s8822_s3 + $0x37c] sm:$0xff]  }
  0x5d   :  { %470 = vst [vmem:[#allocation2 + $0x368] sm:$0xf] %v469_v36  ;;  %v475_v38 = vld [vmem:[%s8822_s3 + $0x378] sm:$0xf]  ;;  %v477_v39 = vld [vmem:[%s8822_s3 + $0x374] sm:$0xf] }
  0x5e   :  { %472 = vst [vmem:[#allocation2 + $0x36c] sm:$0xff] %v471_v37   ;;  %476 = vst [vmem:[#allocation2 + $0x374] sm:$0xf] %v475_v38  ;;  %v483_v41 = vld [vmem:[%s8822_s3 + $0x388] sm:$0xf]  ;;  %v487_v43 = vld [vmem:[%s8822_s3 + $0x38c] sm:$0xff]  }
  0x5f   :  { %478 = vst [vmem:[#allocation2 + $0x378] sm:$0xf] %v477_v39  ;;  %v485_v42 = vld [vmem:[%s8822_s3 + $0x384] sm:$0xf]  ;;  %480 = vst [vmem:[#allocation2 + $0x37c] sm:$0xff] %v479_v40   ;;  %v495_v46 = vld [vmem:[%s8822_s3 + $0x39c] sm:$0xff]  }
  0x60   :  { %484 = vst [vmem:[#allocation2 + $0x384] sm:$0xf] %v483_v41  ;;  %486 = vst [vmem:[#allocation2 + $0x388] sm:$0xf] %v485_v42  ;;  %v491_v44 = vld [vmem:[%s8822_s3 + $0x398] sm:$0xf] }
  0x61   :  { %v493_v45 = vld [vmem:[%s8822_s3 + $0x394] sm:$0xf]  ;;  %488 = vst [vmem:[#allocation2 + $0x38c] sm:$0xff] %v487_v43   ;;  %492 = vst [vmem:[#allocation2 + $0x394] sm:$0xf] %v491_v44  ;;  %v503_v49 = vld [vmem:[%s8822_s3 + $0x3ac] sm:$0xff]  }
  0x62   :  { %494 = vst [vmem:[#allocation2 + $0x398] sm:$0xf] %v493_v45  ;;  %v499_v47 = vld [vmem:[%s8822_s3 + $0x3a8] sm:$0xf]  ;;  %v501_v48 = vld [vmem:[%s8822_s3 + $0x3a4] sm:$0xf] }
  0x63   :  { %496 = vst [vmem:[#allocation2 + $0x39c] sm:$0xff] %v495_v46   ;;  %500 = vst [vmem:[#allocation2 + $0x3a4] sm:$0xf] %v499_v47  ;;  %v507_v50 = vld [vmem:[%s8822_s3 + $0x3b8] sm:$0xf]  ;;  %v511_v52 = vld [vmem:[%s8822_s3 + $0x3bc] sm:$0xff]  }
  0x64   :  { %502 = vst [vmem:[#allocation2 + $0x3a8] sm:$0xf] %v501_v48  ;;  %v509_v51 = vld [vmem:[%s8822_s3 + $0x3b4] sm:$0xf]  ;;  %504 = vst [vmem:[#allocation2 + $0x3ac] sm:$0xff] %v503_v49   ;;  %v519_v55 = vld [vmem:[%s8822_s3 + $0x3cc] sm:$0xff]  }
  0x65   :  { %508 = vst [vmem:[#allocation2 + $0x3b4] sm:$0xf] %v507_v50  ;;  %510 = vst [vmem:[#allocation2 + $0x3b8] sm:$0xf] %v509_v51  ;;  %v515_v53 = vld [vmem:[%s8822_s3 + $0x3c8] sm:$0xf] }
  0x66   :  { %v517_v54 = vld [vmem:[%s8822_s3 + $0x3c4] sm:$0xf]  ;;  %512 = vst [vmem:[#allocation2 + $0x3bc] sm:$0xff] %v511_v52   ;;  %516 = vst [vmem:[#allocation2 + $0x3c4] sm:$0xf] %v515_v53  ;;  %v527_v58 = vld [vmem:[%s8822_s3 + $0x3dc] sm:$0xff]  }
  0x67   :  { %518 = vst [vmem:[#allocation2 + $0x3c8] sm:$0xf] %v517_v54  ;;  %v523_v56 = vld [vmem:[%s8822_s3 + $0x3d8] sm:$0xf]  ;;  %v525_v57 = vld [vmem:[%s8822_s3 + $0x3d4] sm:$0xf] }
  0x68   :  { %520 = vst [vmem:[#allocation2 + $0x3cc] sm:$0xff] %v519_v55   ;;  %524 = vst [vmem:[#allocation2 + $0x3d4] sm:$0xf] %v523_v56  ;;  %v531_v59 = vld [vmem:[%s8822_s3 + $0x3e8] sm:$0xf]  ;;  %v535_v61 = vld [vmem:[%s8822_s3 + $0x3ec] sm:$0xff]  }
  0x69   :  { %526 = vst [vmem:[#allocation2 + $0x3d8] sm:$0xf] %v525_v57  ;;  %v533_v60 = vld [vmem:[%s8822_s3 + $0x3e4] sm:$0xf]  ;;  %528 = vst [vmem:[#allocation2 + $0x3dc] sm:$0xff] %v527_v58   ;;  %v543_v0 = vld [vmem:[%s8822_s3 + $0x3fc] sm:$0xff]  }
  0x6a   :  { %532 = vst [vmem:[#allocation2 + $0x3e4] sm:$0xf] %v531_v59  ;;  %534 = vst [vmem:[#allocation2 + $0x3e8] sm:$0xf] %v533_v60  ;;  %v539_v62 = vld [vmem:[%s8822_s3 + $0x3f8] sm:$0xf] }
  0x6b   :  { %v541_v63 = vld [vmem:[%s8822_s3 + $0x3f4] sm:$0xf]  ;;  %536 = vst [vmem:[#allocation2 + $0x3ec] sm:$0xff] %v535_v61   ;;  %540 = vst [vmem:[#allocation2 + $0x3f4] sm:$0xf] %v539_v62  ;;  %v551_v3 = vld [vmem:[%s8822_s3 + $0x40c] sm:$0xff]  }
  0x6c   :  { %542 = vst [vmem:[#allocation2 + $0x3f8] sm:$0xf] %v541_v63  ;;  %v547_v1 = vld [vmem:[%s8822_s3 + $0x408] sm:$0xf]  ;;  %v549_v2 = vld [vmem:[%s8822_s3 + $0x404] sm:$0xf] }
  0x6d   :  { %544 = vst [vmem:[#allocation2 + $0x3fc] sm:$0xff] %v543_v0   ;;  %548 = vst [vmem:[#allocation2 + $0x404] sm:$0xf] %v547_v1  ;;  %v555_v4 = vld [vmem:[%s8822_s3 + $0x418] sm:$0xf]  ;;  %v559_v6 = vld [vmem:[%s8822_s3 + $0x41c] sm:$0xff]  }
  0x6e   :  { %550 = vst [vmem:[#allocation2 + $0x408] sm:$0xf] %v549_v2  ;;  %v557_v5 = vld [vmem:[%s8822_s3 + $0x414] sm:$0xf]  ;;  %552 = vst [vmem:[#allocation2 + $0x40c] sm:$0xff] %v551_v3   ;;  %v567_v9 = vld [vmem:[%s8822_s3 + $0x42c] sm:$0xff]  }
  0x6f   :  { %556 = vst [vmem:[#allocation2 + $0x414] sm:$0xf] %v555_v4  ;;  %558 = vst [vmem:[#allocation2 + $0x418] sm:$0xf] %v557_v5  ;;  %v563_v7 = vld [vmem:[%s8822_s3 + $0x428] sm:$0xf] }
  0x70   :  { %v565_v8 = vld [vmem:[%s8822_s3 + $0x424] sm:$0xf]  ;;  %560 = vst [vmem:[#allocation2 + $0x41c] sm:$0xff] %v559_v6   ;;  %564 = vst [vmem:[#allocation2 + $0x424] sm:$0xf] %v563_v7  ;;  %v575_v12 = vld [vmem:[%s8822_s3 + $0x43c] sm:$0xff]  }
  0x71   :  { %566 = vst [vmem:[#allocation2 + $0x428] sm:$0xf] %v565_v8  ;;  %v571_v10 = vld [vmem:[%s8822_s3 + $0x438] sm:$0xf]  ;;  %v573_v11 = vld [vmem:[%s8822_s3 + $0x434] sm:$0xf] }
  0x72   :  { %568 = vst [vmem:[#allocation2 + $0x42c] sm:$0xff] %v567_v9   ;;  %572 = vst [vmem:[#allocation2 + $0x434] sm:$0xf] %v571_v10  ;;  %v579_v13 = vld [vmem:[%s8822_s3 + $0x448] sm:$0xf]  ;;  %v583_v15 = vld [vmem:[%s8822_s3 + $0x44c] sm:$0xff]  }
  0x73   :  { %574 = vst [vmem:[#allocation2 + $0x438] sm:$0xf] %v573_v11  ;;  %v581_v14 = vld [vmem:[%s8822_s3 + $0x444] sm:$0xf]  ;;  %576 = vst [vmem:[#allocation2 + $0x43c] sm:$0xff] %v575_v12   ;;  %v591_v18 = vld [vmem:[%s8822_s3 + $0x45c] sm:$0xff]  }
  0x74   :  { %580 = vst [vmem:[#allocation2 + $0x444] sm:$0xf] %v579_v13  ;;  %582 = vst [vmem:[#allocation2 + $0x448] sm:$0xf] %v581_v14  ;;  %v587_v16 = vld [vmem:[%s8822_s3 + $0x458] sm:$0xf] }
  0x75   :  { %v589_v17 = vld [vmem:[%s8822_s3 + $0x454] sm:$0xf]  ;;  %584 = vst [vmem:[#allocation2 + $0x44c] sm:$0xff] %v583_v15   ;;  %588 = vst [vmem:[#allocation2 + $0x454] sm:$0xf] %v587_v16  ;;  %v599_v21 = vld [vmem:[%s8822_s3 + $0x46c] sm:$0xff]  }
  0x76   :  { %590 = vst [vmem:[#allocation2 + $0x458] sm:$0xf] %v589_v17  ;;  %v595_v19 = vld [vmem:[%s8822_s3 + $0x468] sm:$0xf]  ;;  %v597_v20 = vld [vmem:[%s8822_s3 + $0x464] sm:$0xf] }
  0x77   :  { %592 = vst [vmem:[#allocation2 + $0x45c] sm:$0xff] %v591_v18   ;;  %596 = vst [vmem:[#allocation2 + $0x464] sm:$0xf] %v595_v19  ;;  %v603_v22 = vld [vmem:[%s8822_s3 + $0x478] sm:$0xf]  ;;  %v607_v24 = vld [vmem:[%s8822_s3 + $0x47c] sm:$0xff]  }
  0x78   :  { %598 = vst [vmem:[#allocation2 + $0x468] sm:$0xf] %v597_v20  ;;  %v605_v23 = vld [vmem:[%s8822_s3 + $0x474] sm:$0xf]  ;;  %600 = vst [vmem:[#allocation2 + $0x46c] sm:$0xff] %v599_v21   ;;  %v615_v27 = vld [vmem:[%s8822_s3 + $0x48c] sm:$0xff]  }
  0x79   :  { %604 = vst [vmem:[#allocation2 + $0x474] sm:$0xf] %v603_v22  ;;  %606 = vst [vmem:[#allocation2 + $0x478] sm:$0xf] %v605_v23  ;;  %v611_v25 = vld [vmem:[%s8822_s3 + $0x488] sm:$0xf] }
  0x7a   :  { %v613_v26 = vld [vmem:[%s8822_s3 + $0x484] sm:$0xf]  ;;  %608 = vst [vmem:[#allocation2 + $0x47c] sm:$0xff] %v607_v24   ;;  %612 = vst [vmem:[#allocation2 + $0x484] sm:$0xf] %v611_v25  ;;  %v623_v30 = vld [vmem:[%s8822_s3 + $0x49c] sm:$0xff]  }
  0x7b   :  { %614 = vst [vmem:[#allocation2 + $0x488] sm:$0xf] %v613_v26  ;;  %v619_v28 = vld [vmem:[%s8822_s3 + $0x498] sm:$0xf]  ;;  %v621_v29 = vld [vmem:[%s8822_s3 + $0x494] sm:$0xf] }
  0x7c   :  { %616 = vst [vmem:[#allocation2 + $0x48c] sm:$0xff] %v615_v27   ;;  %620 = vst [vmem:[#allocation2 + $0x494] sm:$0xf] %v619_v28  ;;  %v627_v31 = vld [vmem:[%s8822_s3 + $0x4a8] sm:$0xf]  ;;  %v631_v33 = vld [vmem:[%s8822_s3 + $0x4ac] sm:$0xff]  }
  0x7d   :  { %622 = vst [vmem:[#allocation2 + $0x498] sm:$0xf] %v621_v29  ;;  %v629_v32 = vld [vmem:[%s8822_s3 + $0x4a4] sm:$0xf]  ;;  %624 = vst [vmem:[#allocation2 + $0x49c] sm:$0xff] %v623_v30   ;;  %v639_v36 = vld [vmem:[%s8822_s3 + $0x4bc] sm:$0xff]  }
  0x7e   :  { %628 = vst [vmem:[#allocation2 + $0x4a4] sm:$0xf] %v627_v31  ;;  %630 = vst [vmem:[#allocation2 + $0x4a8] sm:$0xf] %v629_v32  ;;  %v635_v34 = vld [vmem:[%s8822_s3 + $0x4b8] sm:$0xf] }
  0x7f   :  { %v637_v35 = vld [vmem:[%s8822_s3 + $0x4b4] sm:$0xf]  ;;  %632 = vst [vmem:[#allocation2 + $0x4ac] sm:$0xff] %v631_v33   ;;  %636 = vst [vmem:[#allocation2 + $0x4b4] sm:$0xf] %v635_v34  ;;  %v647_v39 = vld [vmem:[%s8822_s3 + $0x4cc] sm:$0xff]  }
  0x80   :  { %638 = vst [vmem:[#allocation2 + $0x4b8] sm:$0xf] %v637_v35  ;;  %v643_v37 = vld [vmem:[%s8822_s3 + $0x4c8] sm:$0xf]  ;;  %v645_v38 = vld [vmem:[%s8822_s3 + $0x4c4] sm:$0xf] }
  0x81   :  { %640 = vst [vmem:[#allocation2 + $0x4bc] sm:$0xff] %v639_v36   ;;  %644 = vst [vmem:[#allocation2 + $0x4c4] sm:$0xf] %v643_v37  ;;  %v651_v40 = vld [vmem:[%s8822_s3 + $0x4d8] sm:$0xf]  ;;  %v655_v42 = vld [vmem:[%s8822_s3 + $0x4dc] sm:$0xff]  }
  0x82   :  { %646 = vst [vmem:[#allocation2 + $0x4c8] sm:$0xf] %v645_v38  ;;  %v653_v41 = vld [vmem:[%s8822_s3 + $0x4d4] sm:$0xf]  ;;  %648 = vst [vmem:[#allocation2 + $0x4cc] sm:$0xff] %v647_v39   ;;  %v663_v45 = vld [vmem:[%s8822_s3 + $0x4ec] sm:$0xff]  }
  0x83   :  { %652 = vst [vmem:[#allocation2 + $0x4d4] sm:$0xf] %v651_v40  ;;  %654 = vst [vmem:[#allocation2 + $0x4d8] sm:$0xf] %v653_v41  ;;  %v659_v43 = vld [vmem:[%s8822_s3 + $0x4e8] sm:$0xf] }
  0x84   :  { %v661_v44 = vld [vmem:[%s8822_s3 + $0x4e4] sm:$0xf]  ;;  %656 = vst [vmem:[#allocation2 + $0x4dc] sm:$0xff] %v655_v42   ;;  %660 = vst [vmem:[#allocation2 + $0x4e4] sm:$0xf] %v659_v43  ;;  %v671_v48 = vld [vmem:[%s8822_s3 + $0x4fc] sm:$0xff]  }
  0x85   :  { %662 = vst [vmem:[#allocation2 + $0x4e8] sm:$0xf] %v661_v44  ;;  %v667_v46 = vld [vmem:[%s8822_s3 + $0x4f8] sm:$0xf]  ;;  %v669_v47 = vld [vmem:[%s8822_s3 + $0x4f4] sm:$0xf] }
  0x86   :  { %664 = vst [vmem:[#allocation2 + $0x4ec] sm:$0xff] %v663_v45   ;;  %668 = vst [vmem:[#allocation2 + $0x4f4] sm:$0xf] %v667_v46  ;;  %v675_v49 = vld [vmem:[%s8822_s3 + $0x508] sm:$0xf]  ;;  %v679_v51 = vld [vmem:[%s8822_s3 + $0x50c] sm:$0xff]  }
  0x87   :  { %670 = vst [vmem:[#allocation2 + $0x4f8] sm:$0xf] %v669_v47  ;;  %v677_v50 = vld [vmem:[%s8822_s3 + $0x504] sm:$0xf]  ;;  %672 = vst [vmem:[#allocation2 + $0x4fc] sm:$0xff] %v671_v48   ;;  %v687_v54 = vld [vmem:[%s8822_s3 + $0x51c] sm:$0xff]  }
  0x88   :  { %676 = vst [vmem:[#allocation2 + $0x504] sm:$0xf] %v675_v49  ;;  %678 = vst [vmem:[#allocation2 + $0x508] sm:$0xf] %v677_v50  ;;  %v683_v52 = vld [vmem:[%s8822_s3 + $0x518] sm:$0xf] }
  0x89   :  { %v685_v53 = vld [vmem:[%s8822_s3 + $0x514] sm:$0xf]  ;;  %680 = vst [vmem:[#allocation2 + $0x50c] sm:$0xff] %v679_v51   ;;  %684 = vst [vmem:[#allocation2 + $0x514] sm:$0xf] %v683_v52  ;;  %v695_v57 = vld [vmem:[%s8822_s3 + $0x52c] sm:$0xff]  }
  0x8a   :  { %686 = vst [vmem:[#allocation2 + $0x518] sm:$0xf] %v685_v53  ;;  %v691_v55 = vld [vmem:[%s8822_s3 + $0x528] sm:$0xf]  ;;  %v693_v56 = vld [vmem:[%s8822_s3 + $0x524] sm:$0xf] }
  0x8b   :  { %688 = vst [vmem:[#allocation2 + $0x51c] sm:$0xff] %v687_v54   ;;  %692 = vst [vmem:[#allocation2 + $0x524] sm:$0xf] %v691_v55  ;;  %v699_v58 = vld [vmem:[%s8822_s3 + $0x538] sm:$0xf]  ;;  %v703_v60 = vld [vmem:[%s8822_s3 + $0x53c] sm:$0xff]  }
  0x8c   :  { %694 = vst [vmem:[#allocation2 + $0x528] sm:$0xf] %v693_v56  ;;  %v701_v59 = vld [vmem:[%s8822_s3 + $0x534] sm:$0xf]  ;;  %696 = vst [vmem:[#allocation2 + $0x52c] sm:$0xff] %v695_v57   ;;  %v711_v63 = vld [vmem:[%s8822_s3 + $0x54c] sm:$0xff]  }
  0x8d   :  { %700 = vst [vmem:[#allocation2 + $0x534] sm:$0xf] %v699_v58  ;;  %702 = vst [vmem:[#allocation2 + $0x538] sm:$0xf] %v701_v59  ;;  %v707_v61 = vld [vmem:[%s8822_s3 + $0x548] sm:$0xf] }
  0x8e   :  { %v709_v62 = vld [vmem:[%s8822_s3 + $0x544] sm:$0xf]  ;;  %704 = vst [vmem:[#allocation2 + $0x53c] sm:$0xff] %v703_v60   ;;  %708 = vst [vmem:[#allocation2 + $0x544] sm:$0xf] %v707_v61  ;;  %v719_v2 = vld [vmem:[%s8822_s3 + $0x55c] sm:$0xff]  }
  0x8f   :  { %710 = vst [vmem:[#allocation2 + $0x548] sm:$0xf] %v709_v62  ;;  %v715_v0 = vld [vmem:[%s8822_s3 + $0x558] sm:$0xf]  ;;  %v717_v1 = vld [vmem:[%s8822_s3 + $0x554] sm:$0xf] }
  0x90   :  { %712 = vst [vmem:[#allocation2 + $0x54c] sm:$0xff] %v711_v63   ;;  %716 = vst [vmem:[#allocation2 + $0x554] sm:$0xf] %v715_v0  ;;  %v723_v3 = vld [vmem:[%s8822_s3 + $0x568] sm:$0xf]  ;;  %v727_v5 = vld [vmem:[%s8822_s3 + $0x56c] sm:$0xff]  }
  0x91   :  { %718 = vst [vmem:[#allocation2 + $0x558] sm:$0xf] %v717_v1  ;;  %v725_v4 = vld [vmem:[%s8822_s3 + $0x564] sm:$0xf]  ;;  %720 = vst [vmem:[#allocation2 + $0x55c] sm:$0xff] %v719_v2   ;;  %v735_v8 = vld [vmem:[%s8822_s3 + $0x57c] sm:$0xff]  }
  0x92   :  { %724 = vst [vmem:[#allocation2 + $0x564] sm:$0xf] %v723_v3  ;;  %726 = vst [vmem:[#allocation2 + $0x568] sm:$0xf] %v725_v4  ;;  %v731_v6 = vld [vmem:[%s8822_s3 + $0x578] sm:$0xf] }
  0x93   :  { %v733_v7 = vld [vmem:[%s8822_s3 + $0x574] sm:$0xf]  ;;  %728 = vst [vmem:[#allocation2 + $0x56c] sm:$0xff] %v727_v5   ;;  %732 = vst [vmem:[#allocation2 + $0x574] sm:$0xf] %v731_v6  ;;  %v743_v11 = vld [vmem:[%s8822_s3 + $0x58c] sm:$0xff]  }
  0x94   :  { %734 = vst [vmem:[#allocation2 + $0x578] sm:$0xf] %v733_v7  ;;  %v739_v9 = vld [vmem:[%s8822_s3 + $0x588] sm:$0xf]  ;;  %v741_v10 = vld [vmem:[%s8822_s3 + $0x584] sm:$0xf] }
  0x95   :  { %736 = vst [vmem:[#allocation2 + $0x57c] sm:$0xff] %v735_v8   ;;  %740 = vst [vmem:[#allocation2 + $0x584] sm:$0xf] %v739_v9  ;;  %v747_v12 = vld [vmem:[%s8822_s3 + $0x598] sm:$0xf]  ;;  %v751_v14 = vld [vmem:[%s8822_s3 + $0x59c] sm:$0xff]  }
  0x96   :  { %742 = vst [vmem:[#allocation2 + $0x588] sm:$0xf] %v741_v10  ;;  %v749_v13 = vld [vmem:[%s8822_s3 + $0x594] sm:$0xf]  ;;  %744 = vst [vmem:[#allocation2 + $0x58c] sm:$0xff] %v743_v11   ;;  %v759_v17 = vld [vmem:[%s8822_s3 + $0x5ac] sm:$0xff]  }
  0x97   :  { %748 = vst [vmem:[#allocation2 + $0x594] sm:$0xf] %v747_v12  ;;  %750 = vst [vmem:[#allocation2 + $0x598] sm:$0xf] %v749_v13  ;;  %v755_v15 = vld [vmem:[%s8822_s3 + $0x5a8] sm:$0xf] }
  0x98   :  { %v757_v16 = vld [vmem:[%s8822_s3 + $0x5a4] sm:$0xf]  ;;  %752 = vst [vmem:[#allocation2 + $0x59c] sm:$0xff] %v751_v14   ;;  %756 = vst [vmem:[#allocation2 + $0x5a4] sm:$0xf] %v755_v15  ;;  %v767_v20 = vld [vmem:[%s8822_s3 + $0x5bc] sm:$0xff]  }
  0x99   :  { %758 = vst [vmem:[#allocation2 + $0x5a8] sm:$0xf] %v757_v16  ;;  %v763_v18 = vld [vmem:[%s8822_s3 + $0x5b8] sm:$0xf]  ;;  %v765_v19 = vld [vmem:[%s8822_s3 + $0x5b4] sm:$0xf] }
  0x9a   :  { %760 = vst [vmem:[#allocation2 + $0x5ac] sm:$0xff] %v759_v17   ;;  %764 = vst [vmem:[#allocation2 + $0x5b4] sm:$0xf] %v763_v18  ;;  %v771_v21 = vld [vmem:[%s8822_s3 + $0x5c8] sm:$0xf]  ;;  %v775_v23 = vld [vmem:[%s8822_s3 + $0x5cc] sm:$0xff]  }
  0x9b   :  { %766 = vst [vmem:[#allocation2 + $0x5b8] sm:$0xf] %v765_v19  ;;  %v773_v22 = vld [vmem:[%s8822_s3 + $0x5c4] sm:$0xf]  ;;  %768 = vst [vmem:[#allocation2 + $0x5bc] sm:$0xff] %v767_v20   ;;  %v783_v26 = vld [vmem:[%s8822_s3 + $0x5dc] sm:$0xff]  }
  0x9c   :  { %772 = vst [vmem:[#allocation2 + $0x5c4] sm:$0xf] %v771_v21  ;;  %774 = vst [vmem:[#allocation2 + $0x5c8] sm:$0xf] %v773_v22  ;;  %v779_v24 = vld [vmem:[%s8822_s3 + $0x5d8] sm:$0xf] }
  0x9d   :  { %v781_v25 = vld [vmem:[%s8822_s3 + $0x5d4] sm:$0xf]  ;;  %776 = vst [vmem:[#allocation2 + $0x5cc] sm:$0xff] %v775_v23   ;;  %780 = vst [vmem:[#allocation2 + $0x5d4] sm:$0xf] %v779_v24  ;;  %v791_v29 = vld [vmem:[%s8822_s3 + $0x5ec] sm:$0xff]  }
  0x9e   :  { %782 = vst [vmem:[#allocation2 + $0x5d8] sm:$0xf] %v781_v25  ;;  %v787_v27 = vld [vmem:[%s8822_s3 + $0x5e8] sm:$0xf]  ;;  %v789_v28 = vld [vmem:[%s8822_s3 + $0x5e4] sm:$0xf] }
  0x9f   :  { %784 = vst [vmem:[#allocation2 + $0x5dc] sm:$0xff] %v783_v26   ;;  %788 = vst [vmem:[#allocation2 + $0x5e4] sm:$0xf] %v787_v27  ;;  %v795_v30 = vld [vmem:[%s8822_s3 + $0x5f8] sm:$0xf]  ;;  %v799_v32 = vld [vmem:[%s8822_s3 + $0x5fc] sm:$0xff]  }
  0xa0   :  { %790 = vst [vmem:[#allocation2 + $0x5e8] sm:$0xf] %v789_v28  ;;  %v797_v31 = vld [vmem:[%s8822_s3 + $0x5f4] sm:$0xf]  ;;  %792 = vst [vmem:[#allocation2 + $0x5ec] sm:$0xff] %v791_v29   ;;  %v807_v35 = vld [vmem:[%s8822_s3 + $0x60c] sm:$0xff]  }
  0xa1   :  { %796 = vst [vmem:[#allocation2 + $0x5f4] sm:$0xf] %v795_v30  ;;  %798 = vst [vmem:[#allocation2 + $0x5f8] sm:$0xf] %v797_v31  ;;  %v803_v33 = vld [vmem:[%s8822_s3 + $0x608] sm:$0xf] }
  0xa2   :  { %v805_v34 = vld [vmem:[%s8822_s3 + $0x604] sm:$0xf]  ;;  %800 = vst [vmem:[#allocation2 + $0x5fc] sm:$0xff] %v799_v32   ;;  %804 = vst [vmem:[#allocation2 + $0x604] sm:$0xf] %v803_v33  ;;  %v815_v38 = vld [vmem:[%s8822_s3 + $0x61c] sm:$0xff]  }
  0xa3   :  { %806 = vst [vmem:[#allocation2 + $0x608] sm:$0xf] %v805_v34  ;;  %v811_v36 = vld [vmem:[%s8822_s3 + $0x618] sm:$0xf]  ;;  %v813_v37 = vld [vmem:[%s8822_s3 + $0x614] sm:$0xf] }
  0xa4   :  { %808 = vst [vmem:[#allocation2 + $0x60c] sm:$0xff] %v807_v35   ;;  %812 = vst [vmem:[#allocation2 + $0x614] sm:$0xf] %v811_v36  ;;  %v819_v39 = vld [vmem:[%s8822_s3 + $0x628] sm:$0xf]  ;;  %v823_v41 = vld [vmem:[%s8822_s3 + $0x62c] sm:$0xff]  }
  0xa5   :  { %814 = vst [vmem:[#allocation2 + $0x618] sm:$0xf] %v813_v37  ;;  %v821_v40 = vld [vmem:[%s8822_s3 + $0x624] sm:$0xf]  ;;  %816 = vst [vmem:[#allocation2 + $0x61c] sm:$0xff] %v815_v38   ;;  %v831_v44 = vld [vmem:[%s8822_s3 + $0x63c] sm:$0xff]  }
  0xa6   :  { %820 = vst [vmem:[#allocation2 + $0x624] sm:$0xf] %v819_v39  ;;  %822 = vst [vmem:[#allocation2 + $0x628] sm:$0xf] %v821_v40  ;;  %v827_v42 = vld [vmem:[%s8822_s3 + $0x638] sm:$0xf] }
  0xa7   :  { %v829_v43 = vld [vmem:[%s8822_s3 + $0x634] sm:$0xf]  ;;  %824 = vst [vmem:[#allocation2 + $0x62c] sm:$0xff] %v823_v41   ;;  %828 = vst [vmem:[#allocation2 + $0x634] sm:$0xf] %v827_v42  ;;  %v839_v47 = vld [vmem:[%s8822_s3 + $0x64c] sm:$0xff]  }
  0xa8   :  { %830 = vst [vmem:[#allocation2 + $0x638] sm:$0xf] %v829_v43  ;;  %v835_v45 = vld [vmem:[%s8822_s3 + $0x648] sm:$0xf]  ;;  %v837_v46 = vld [vmem:[%s8822_s3 + $0x644] sm:$0xf] }
  0xa9   :  { %832 = vst [vmem:[#allocation2 + $0x63c] sm:$0xff] %v831_v44   ;;  %836 = vst [vmem:[#allocation2 + $0x644] sm:$0xf] %v835_v45  ;;  %v843_v48 = vld [vmem:[%s8822_s3 + $0x658] sm:$0xf]  ;;  %v847_v50 = vld [vmem:[%s8822_s3 + $0x65c] sm:$0xff]  }
  0xaa   :  { %838 = vst [vmem:[#allocation2 + $0x648] sm:$0xf] %v837_v46  ;;  %v845_v49 = vld [vmem:[%s8822_s3 + $0x654] sm:$0xf]  ;;  %840 = vst [vmem:[#allocation2 + $0x64c] sm:$0xff] %v839_v47   ;;  %v855_v53 = vld [vmem:[%s8822_s3 + $0x66c] sm:$0xff]  }
  0xab   :  { %844 = vst [vmem:[#allocation2 + $0x654] sm:$0xf] %v843_v48  ;;  %846 = vst [vmem:[#allocation2 + $0x658] sm:$0xf] %v845_v49  ;;  %v851_v51 = vld [vmem:[%s8822_s3 + $0x668] sm:$0xf] }
  0xac   :  { %v853_v52 = vld [vmem:[%s8822_s3 + $0x664] sm:$0xf]  ;;  %848 = vst [vmem:[#allocation2 + $0x65c] sm:$0xff] %v847_v50   ;;  %852 = vst [vmem:[#allocation2 + $0x664] sm:$0xf] %v851_v51  ;;  %v863_v56 = vld [vmem:[%s8822_s3 + $0x67c] sm:$0xff]  }
  0xad   :  { %854 = vst [vmem:[#allocation2 + $0x668] sm:$0xf] %v853_v52  ;;  %v859_v54 = vld [vmem:[%s8822_s3 + $0x678] sm:$0xf]  ;;  %v861_v55 = vld [vmem:[%s8822_s3 + $0x674] sm:$0xf] }
  0xae   :  { %856 = vst [vmem:[#allocation2 + $0x66c] sm:$0xff] %v855_v53   ;;  %860 = vst [vmem:[#allocation2 + $0x674] sm:$0xf] %v859_v54  ;;  %v867_v57 = vld [vmem:[%s8822_s3 + $0x688] sm:$0xf]  ;;  %v871_v59 = vld [vmem:[%s8822_s3 + $0x68c] sm:$0xff]  }
  0xaf   :  { %862 = vst [vmem:[#allocation2 + $0x678] sm:$0xf] %v861_v55  ;;  %v869_v58 = vld [vmem:[%s8822_s3 + $0x684] sm:$0xf]  ;;  %864 = vst [vmem:[#allocation2 + $0x67c] sm:$0xff] %v863_v56   ;;  %v879_v62 = vld [vmem:[%s8822_s3 + $0x69c] sm:$0xff]  }
  0xb0   :  { %868 = vst [vmem:[#allocation2 + $0x684] sm:$0xf] %v867_v57  ;;  %870 = vst [vmem:[#allocation2 + $0x688] sm:$0xf] %v869_v58  ;;  %v875_v60 = vld [vmem:[%s8822_s3 + $0x698] sm:$0xf] }
  0xb1   :  { %v877_v61 = vld [vmem:[%s8822_s3 + $0x694] sm:$0xf]  ;;  %872 = vst [vmem:[#allocation2 + $0x68c] sm:$0xff] %v871_v59   ;;  %876 = vst [vmem:[#allocation2 + $0x694] sm:$0xf] %v875_v60  ;;  %v887_v1 = vld [vmem:[%s8822_s3 + $0x6ac] sm:$0xff]  }
  0xb2   :  { %878 = vst [vmem:[#allocation2 + $0x698] sm:$0xf] %v877_v61  ;;  %v883_v63 = vld [vmem:[%s8822_s3 + $0x6a8] sm:$0xf]  ;;  %v885_v0 = vld [vmem:[%s8822_s3 + $0x6a4] sm:$0xf] }
  0xb3   :  { %880 = vst [vmem:[#allocation2 + $0x69c] sm:$0xff] %v879_v62   ;;  %884 = vst [vmem:[#allocation2 + $0x6a4] sm:$0xf] %v883_v63  ;;  %v891_v2 = vld [vmem:[%s8822_s3 + $0x6b8] sm:$0xf]  ;;  %v895_v4 = vld [vmem:[%s8822_s3 + $0x6bc] sm:$0xff]  }
  0xb4   :  { %886 = vst [vmem:[#allocation2 + $0x6a8] sm:$0xf] %v885_v0  ;;  %v893_v3 = vld [vmem:[%s8822_s3 + $0x6b4] sm:$0xf]  ;;  %888 = vst [vmem:[#allocation2 + $0x6ac] sm:$0xff] %v887_v1   ;;  %v903_v7 = vld [vmem:[%s8822_s3 + $0x6cc] sm:$0xff]  }
  0xb5   :  { %892 = vst [vmem:[#allocation2 + $0x6b4] sm:$0xf] %v891_v2  ;;  %894 = vst [vmem:[#allocation2 + $0x6b8] sm:$0xf] %v893_v3  ;;  %v899_v5 = vld [vmem:[%s8822_s3 + $0x6c8] sm:$0xf] }
  0xb6   :  { %v901_v6 = vld [vmem:[%s8822_s3 + $0x6c4] sm:$0xf]  ;;  %896 = vst [vmem:[#allocation2 + $0x6bc] sm:$0xff] %v895_v4   ;;  %900 = vst [vmem:[#allocation2 + $0x6c4] sm:$0xf] %v899_v5  ;;  %v911_v10 = vld [vmem:[%s8822_s3 + $0x6dc] sm:$0xff]  }
  0xb7   :  { %902 = vst [vmem:[#allocation2 + $0x6c8] sm:$0xf] %v901_v6  ;;  %v907_v8 = vld [vmem:[%s8822_s3 + $0x6d8] sm:$0xf]  ;;  %v909_v9 = vld [vmem:[%s8822_s3 + $0x6d4] sm:$0xf] }
  0xb8   :  { %904 = vst [vmem:[#allocation2 + $0x6cc] sm:$0xff] %v903_v7   ;;  %908 = vst [vmem:[#allocation2 + $0x6d4] sm:$0xf] %v907_v8  ;;  %v915_v11 = vld [vmem:[%s8822_s3 + $0x6e8] sm:$0xf]  ;;  %v919_v13 = vld [vmem:[%s8822_s3 + $0x6ec] sm:$0xff]  }
  0xb9   :  { %910 = vst [vmem:[#allocation2 + $0x6d8] sm:$0xf] %v909_v9  ;;  %v917_v12 = vld [vmem:[%s8822_s3 + $0x6e4] sm:$0xf]  ;;  %912 = vst [vmem:[#allocation2 + $0x6dc] sm:$0xff] %v911_v10   ;;  %v927_v16 = vld [vmem:[%s8822_s3 + $0x6fc] sm:$0xff]  }
  0xba   :  { %916 = vst [vmem:[#allocation2 + $0x6e4] sm:$0xf] %v915_v11  ;;  %918 = vst [vmem:[#allocation2 + $0x6e8] sm:$0xf] %v917_v12  ;;  %v923_v14 = vld [vmem:[%s8822_s3 + $0x6f8] sm:$0xf] }
  0xbb   :  { %v925_v15 = vld [vmem:[%s8822_s3 + $0x6f4] sm:$0xf]  ;;  %920 = vst [vmem:[#allocation2 + $0x6ec] sm:$0xff] %v919_v13   ;;  %924 = vst [vmem:[#allocation2 + $0x6f4] sm:$0xf] %v923_v14  ;;  %v935_v19 = vld [vmem:[%s8822_s3 + $0x70c] sm:$0xff]  }
  0xbc   :  { %926 = vst [vmem:[#allocation2 + $0x6f8] sm:$0xf] %v925_v15  ;;  %v931_v17 = vld [vmem:[%s8822_s3 + $0x708] sm:$0xf]  ;;  %v933_v18 = vld [vmem:[%s8822_s3 + $0x704] sm:$0xf] }
  0xbd   :  { %928 = vst [vmem:[#allocation2 + $0x6fc] sm:$0xff] %v927_v16   ;;  %932 = vst [vmem:[#allocation2 + $0x704] sm:$0xf] %v931_v17  ;;  %v939_v20 = vld [vmem:[%s8822_s3 + $0x718] sm:$0xf]  ;;  %v943_v22 = vld [vmem:[%s8822_s3 + $0x71c] sm:$0xff]  }
  0xbe   :  { %934 = vst [vmem:[#allocation2 + $0x708] sm:$0xf] %v933_v18  ;;  %v941_v21 = vld [vmem:[%s8822_s3 + $0x714] sm:$0xf]  ;;  %936 = vst [vmem:[#allocation2 + $0x70c] sm:$0xff] %v935_v19   ;;  %v951_v25 = vld [vmem:[%s8822_s3 + $0x72c] sm:$0xff]  }
  0xbf   :  { %940 = vst [vmem:[#allocation2 + $0x714] sm:$0xf] %v939_v20  ;;  %942 = vst [vmem:[#allocation2 + $0x718] sm:$0xf] %v941_v21  ;;  %v947_v23 = vld [vmem:[%s8822_s3 + $0x728] sm:$0xf] }
  0xc0   :  { %v949_v24 = vld [vmem:[%s8822_s3 + $0x724] sm:$0xf]  ;;  %944 = vst [vmem:[#allocation2 + $0x71c] sm:$0xff] %v943_v22   ;;  %948 = vst [vmem:[#allocation2 + $0x724] sm:$0xf] %v947_v23  ;;  %v959_v28 = vld [vmem:[%s8822_s3 + $0x73c] sm:$0xff]  }
  0xc1   :  { %950 = vst [vmem:[#allocation2 + $0x728] sm:$0xf] %v949_v24  ;;  %v955_v26 = vld [vmem:[%s8822_s3 + $0x738] sm:$0xf]  ;;  %v957_v27 = vld [vmem:[%s8822_s3 + $0x734] sm:$0xf] }
  0xc2   :  { %952 = vst [vmem:[#allocation2 + $0x72c] sm:$0xff] %v951_v25   ;;  %956 = vst [vmem:[#allocation2 + $0x734] sm:$0xf] %v955_v26  ;;  %v963_v29 = vld [vmem:[%s8822_s3 + $0x748] sm:$0xf] }
  0xc3   :  { %958 = vst [vmem:[#allocation2 + $0x738] sm:$0xf] %v957_v27  ;;  %v965_v30 = vld [vmem:[%s8822_s3 + $0x744] sm:$0xf]  ;;  %960 = vst [vmem:[#allocation2 + $0x73c] sm:$0xff] %v959_v28  }
  0xc4   :  { %964 = vst [vmem:[#allocation2 + $0x744] sm:$0xf] %v963_v29  ;;  %966 = vst [vmem:[#allocation2 + $0x748] sm:$0xf] %v965_v30  ;;  %v967_v31 = vld [vmem:[%s8822_s3 + $0x74c] sm:$0xf] }
  0xc5   :  { %968 = vst [vmem:[#allocation2 + $0x74c] sm:$0xf] %v967_v31 }
  0xc6   :  { %1935 = vsyncadd [#allocation3], 29952  ;;  %v1936_v32 = vld [vmem:[%s8819_s0] sm:$0xff]  ;;  %v1937_v33 = vld [vmem:[%s8819_s0 + $0x8] sm:$0xff]  ;;  %vm2231_vm0 = vcmask 654336   ;;  %vm2053_vm1 = vcmask 1040384  }
  0xc7   :  { %v1938_v34 = vld [vmem:[%s8819_s0 + $0x10] sm:$0xff]  ;;  %v1939_v35 = vld [vmem:[%s8819_s0 + $0x18] sm:$0xff]  ;;  %v1940_v36 = vld [vmem:[%s8819_s0 + $0x20] sm:$0xff]  ;;  %v5858_v47 = vmul.f32 %v1936_v32, %v1936_v32  ;;  %v5860_v48 = vmul.f32 %v1937_v33, %v1937_v33  ;;  %vm2243_vm2 = vcmask 647168  }
  0xc8   :  { %v1941_v37 = vld [vmem:[%s8819_s0 + $0x28] sm:$0xff]  ;;  %v1942_v38 = vld [vmem:[%s8819_s0 + $0x30] sm:$0xff]  ;;  %v1943_v39 = vld [vmem:[%s8819_s0 + $0x38] sm:$0xff]  ;;  %v5871_v52 = vmul.f32 %v1938_v34, %v1938_v34  ;;  %v5873_v53 = vmul.f32 %v1939_v35, %v1939_v35  ;;  %v5875_v54 = vmul.f32 %v1940_v36, %v1940_v36 }
  0xc9   :  { %v1944_v40 = vld [vmem:[%s8819_s0 + $0x40] sm:$0xff]  ;;  %v1945_v41 = vld [vmem:[%s8819_s0 + $0x48] sm:$0xff]  ;;  %v1946_v42 = vld [vmem:[%s8819_s0 + $0x50] sm:$0xff]  ;;  %8934 = vst [vmem:[#allocation6_spill] sm:$0xff] %v5858_v47  ;;  %v5877_v55 = vmul.f32 %v1941_v37, %v1941_v37  ;;  %v5890_v59 = vmul.f32 %v1942_v38, %v1942_v38  ;;  %v5892_v60 = vmul.f32 %v1943_v39, %v1943_v39 }
  0xca   :  { %v1947_v43 = vld [vmem:[%s8819_s0 + $0x58] sm:$0xff]  ;;  %v1948_v44 = vld [vmem:[%s8819_s0 + $0x60] sm:$0xff]  ;;  %v1949_v45 = vld [vmem:[%s8819_s0 + $0x68] sm:$0xff]  ;;  %8935 = vst [vmem:[#allocation7_spill] sm:$0xff] %v5860_v48  ;;  %v5894_v61 = vmul.f32 %v1944_v40, %v1944_v40  ;;  %v5896_v62 = vmul.f32 %v1945_v41, %v1945_v41  ;;  %v5913_v2 = vmul.f32 %v1946_v42, %v1946_v42 }
  0xcb   :  { %v1950_v46 = vld [vmem:[%s8819_s0 + $0x70] sm:$0xff]  ;;  %v1951_v49 = vld [vmem:[%s8819_s0 + $0x78] sm:$0xff]  ;;  %v1952_v50 = vld [vmem:[%s8819_s0 + $0x80] sm:$0xff]  ;;  %8936 = vst [vmem:[#allocation8_spill] sm:$0xff] %v5871_v52  ;;  %v5915_v3 = vmul.f32 %v1947_v43, %v1947_v43  ;;  %v5917_v4 = vmul.f32 %v1948_v44, %v1948_v44  ;;  %v5919_v5 = vmul.f32 %v1949_v45, %v1949_v45 }
  0xcc   :  { %v1953_v51 = vld [vmem:[%s8819_s0 + $0x88] sm:$0xff]  ;;  %8937 = vst [vmem:[#allocation9_spill] sm:$0xff] %v5873_v53  ;;  %8938 = vst [vmem:[#allocation10_spill] sm:$0xff] %v5875_v54  ;;  %v1954_v56 = vld [vmem:[%s8819_s0 + $0x90] sm:$0xff]  ;;  %v2048_v9 = vadd.f32 %v1951_v49, %v1936_v32  ;;  %v2062_v10 = vadd.f32 %v1952_v50, %v1937_v33  ;;  %v2232_v11 = vsel %vm2231_vm0, %v1950_v46, 0.0  ;;  %v5937_v12 = vmul.f32 %v1950_v46, %v1950_v46 }
  0xcd   :  { %8939 = vst [vmem:[#allocation11_spill] sm:$0xff] %v5877_v55  ;;  %v1955_v57 = vld [vmem:[%s8819_s0 + $0x98] sm:$0xff]  ;;  %v5888_v58 = vld [vmem:[%s8819_s0 + $0xa0] sm:$0xff]  ;;  %8940 = vst [vmem:[#allocation12_spill] sm:$0xff] %v5890_v59  ;;  %v2075_v16 = vadd.f32 %v1953_v51, %v1938_v34  ;;  %v2088_v17 = vadd.f32 %v1954_v56, %v1939_v35  ;;  %v5954_v19 = vmul.f32 %v1951_v49, %v1951_v49 }
  0xce   :  { %8941 = vst [vmem:[#allocation13_spill] sm:$0xff] %v5892_v60  ;;  %8942 = vst [vmem:[#allocation14_spill] sm:$0xff] %v5894_v61  ;;  %v5901_v63 = vld [vmem:[%s8819_s0 + $0xa8] sm:$0xff]  ;;  %v5906_v0 = vld [vmem:[%s8819_s0 + $0xb0] sm:$0xff]  ;;  %v2101_v18 = vadd.f32 %v1955_v57, %v1940_v36  ;;  %v2114_v23 = vadd.f32 %v5888_v58, %v1941_v37  ;;  %v5974_v26 = vmul.f32 %v1952_v50, %v1952_v50 }
  0xcf   :  { %8943 = vst [vmem:[#allocation15_spill] sm:$0xff] %v5896_v62  ;;  %v5911_v1 = vld [vmem:[%s8819_s0 + $0xb8] sm:$0xff]  ;;  %8944 = vst [vmem:[#allocation16_spill] sm:$0xff] %v5913_v2  ;;  %v5924_v6 = vld [vmem:[%s8819_s0 + $0xc0] sm:$0xff]  ;;  %v2127_v24 = vadd.f32 %v5901_v63, %v1942_v38  ;;  %v2140_v25 = vadd.f32 %v5906_v0, %v1943_v39  ;;  %v6033_v46 = vmul.f32 %v1954_v56, %v1954_v56 }
  0xd0   :  { %8945 = vst [vmem:[#allocation17_spill] sm:$0xff] %v5915_v3  ;;  %8946 = vst [vmem:[#allocation18_spill] sm:$0xff] %v5917_v4  ;;  %v5929_v7 = vld [vmem:[%s8819_s0 + $0xc8] sm:$0xff]  ;;  %v5934_v8 = vld [vmem:[%s8819_s0 + $0xd0] sm:$0xff]  ;;  %v2153_v30 = vadd.f32 %v5911_v1, %v1944_v40  ;;  %v2166_v31 = vadd.f32 %v5924_v6, %v1945_v41  ;;  %v6014_v40 = vmul.f32 %v1953_v51, %v1953_v51 }
  0xd1   :  { %8947 = vst [vmem:[#allocation19_spill] sm:$0xff] %v5919_v5  ;;  %8948 = vst [vmem:[#allocation20_spill] sm:$0xff] %v5937_v12  ;;  %v5942_v13 = vld [vmem:[%s8819_s0 + $0xd8] sm:$0xff]  ;;  %v5947_v14 = vld [vmem:[%s8819_s0 + $0xe0] sm:$0xff]  ;;  %v2179_v32 = vadd.f32 %v5929_v7, %v1946_v42  ;;  %v2192_v37 = vadd.f32 %v5934_v8, %v1947_v43  ;;  %v6035_v49 = vmul.f32 %v1955_v57, %v1955_v57 }
  0xd2   :  { %v5952_v15 = vld [vmem:[%s8819_s0 + $0xe8] sm:$0xff]  ;;  %8949 = vst [vmem:[#allocation21_spill] sm:$0xff] %v5954_v19  ;;  %v5959_v20 = vld [vmem:[%s8819_s0 + $0xf0] sm:$0xff]  ;;  %v5964_v21 = vld [vmem:[%s8819_s0 + $0xf8] sm:$0xff]  ;;  %v2205_v38 = vadd.f32 %v5942_v13, %v1948_v44  ;;  %v2218_v39 = vadd.f32 %v5947_v14, %v1949_v45  ;;  %v6224_v47 = vmul.f32 %v5929_v7, %v5929_v7 }
  0xd3   :  { %v5969_v22 = vld [vmem:[%s8819_s0 + $0x100] sm:$0xff]  ;;  %8950 = vst [vmem:[#allocation22_spill] sm:$0xff] %v5974_v26  ;;  %v5979_v27 = vld [vmem:[%s8819_s0 + $0x108] sm:$0xff]  ;;  %v5984_v28 = vld [vmem:[%s8819_s0 + $0x110] sm:$0xff]  ;;  %v2233_v33 = vsel %vm2231_vm0, %v5952_v15, 0.0  ;;  %v2049_v44 = vadd.f32 %v2048_v9, %v5959_v20  ;;  %v2063_v45 = vadd.f32 %v2062_v10, %v5964_v21 }
  0xd4   :  { %v5989_v29 = vld [vmem:[%s8819_s0 + $0x118] sm:$0xff]  ;;  %v5999_v34 = vld [vmem:[%s8819_s0 + $0x120] sm:$0xff]  ;;  %v6004_v35 = vld [vmem:[%s8819_s0 + $0x128] sm:$0xff]  ;;  %8951 = vst [vmem:[#allocation23_spill] sm:$0xff] %v6014_v40  ;;  %v2076_v56 = vadd.f32 %v2075_v16, %v5969_v22  ;;  %v2089_v57 = vadd.f32 %v2088_v17, %v5979_v27  ;;  %v2102_v10 = vadd.f32 %v2101_v18, %v5984_v28  ;;  %v2234_v12 = vadd.f32 %v2233_v33, %v2232_v11 }
  0xd5   :  { %v6009_v36 = vld [vmem:[%s8819_s0 + $0x130] sm:$0xff]  ;;  %v6019_v41 = vld [vmem:[%s8819_s0 + $0x138] sm:$0xff]  ;;  %v6024_v42 = vld [vmem:[%s8819_s0 + $0x140] sm:$0xff]  ;;  %8952 = vst [vmem:[#allocation24_spill] sm:$0xff] %v6033_v46  ;;  %v2115_v16 = vadd.f32 %v2114_v23, %v5989_v29  ;;  %v2128_v17 = vadd.f32 %v2127_v24, %v5999_v34  ;;  %v2141_v11 = vadd.f32 %v2140_v25, %v6004_v35  ;;  %v6075_v18 = vmul.f32 %v5888_v58, %v5888_v58 }
  0xd6   :  { %v6029_v43 = vld [vmem:[%s8819_s0 + $0x148] sm:$0xff]  ;;  %8953 = vst [vmem:[#allocation25_spill] sm:$0xff] %v6035_v49  ;;  %v6040_v50 = vld [vmem:[%s8819_s0 + $0x150] sm:$0xff]  ;;  %v6045_v51 = vld [vmem:[%s8819_s0 + $0x158] sm:$0xff]  ;;  %v2154_v24 = vadd.f32 %v2153_v30, %v6009_v36  ;;  %v2167_v58 = vadd.f32 %v2166_v31, %v6019_v41  ;;  %v2180_v25 = vadd.f32 %v2179_v32, %v6024_v42 }
  0xd7   :  { %v6050_v9 = vld [vmem:[%s8819_s0 + $0x160] sm:$0xff]  ;;  %v6058_v5 = vld [vmem:[%s8819_s0 + $0x168] sm:$0xff]  ;;  %v6063_v4 = vld [vmem:[%s8819_s0 + $0x170] sm:$0xff]  ;;  %8954 = vst [vmem:[#allocation26_spill] sm:$0xff] %v6075_v18  ;;  %v2193_v31 = vadd.f32 %v2192_v37, %v6029_v43  ;;  %v2206_v32 = vadd.f32 %v2205_v38, %v6040_v50  ;;  %v2219_v59 = vadd.f32 %v2218_v39, %v6045_v51  ;;  %v6117_v18 = vmul.f32 %v5901_v63, %v5901_v63 }
  0xd8   :  { %v6068_v3 = vld [vmem:[%s8819_s0 + $0x178] sm:$0xff]  ;;  %v6080_v33 = vld [vmem:[%s8819_s0 + $0x180] sm:$0xff]  ;;  %v6085_v2 = vld [vmem:[%s8819_s0 + $0x188] sm:$0xff]  ;;  %v2235_v62 = vsel %vm2231_vm0, %v6050_v9, 0.0  ;;  %v2050_v38 = vadd.f32 %v2049_v44, %v6058_v5  ;;  %v2064_v63 = vadd.f32 %v2063_v45, %v6063_v4  ;;  %v6138_v39 = vmul.f32 %v5906_v0, %v5906_v0  ;;  %8969 = vst [vmem:[#allocation41_spill] sm:$0xff] %v6224_v47 }
  0xd9   :  { %v6090_v23 = vld [vmem:[%s8819_s0 + $0x190] sm:$0xff]  ;;  %v6100_v61 = vld [vmem:[%s8819_s0 + $0x198] sm:$0xff]  ;;  %v6105_v60 = vld [vmem:[%s8819_s0 + $0x1a0] sm:$0xff]  ;;  %8955 = vst [vmem:[#allocation27_spill] sm:$0xff] %v6117_v18  ;;  %v6142_v18 = vmul.f32 %v5911_v1, %v5911_v1  ;;  %v2077_v0 = vadd.f32 %v2076_v56, %v6068_v3  ;;  %v2090_v1 = vadd.f32 %v2089_v57, %v6080_v33  ;;  %v2103_v45 = vadd.f32 %v2102_v10, %v6085_v2 }
  0xda   :  { %v6110_v30 = vld [vmem:[%s8819_s0 + $0x1a8] sm:$0xff]  ;;  %v6122_v55 = vld [vmem:[%s8819_s0 + $0x1b0] sm:$0xff]  ;;  %v6127_v49 = vld [vmem:[%s8819_s0 + $0x1b8] sm:$0xff]  ;;  %8957 = vst [vmem:[#allocation29_spill] sm:$0xff] %v6138_v39  ;;  %v2116_v56 = vadd.f32 %v2115_v16, %v6090_v23  ;;  %v2129_v57 = vadd.f32 %v2128_v17, %v6100_v61  ;;  %v6249_v47 = vmul.f32 %v5942_v13, %v5942_v13 }
  0xdb   :  { %8956 = vst [vmem:[#allocation28_spill] sm:$0xff] %v6127_v49  ;;  %v6132_v37 = vld [vmem:[%s8819_s0 + $0x1c0] sm:$0xff]  ;;  %8958 = vst [vmem:[#allocation30_spill] sm:$0xff] %v6142_v18  ;;  %v6147_v54 = vld [vmem:[%s8819_s0 + $0x1c8] sm:$0xff]  ;;  %v2236_v18 = vadd.f32 %v2235_v62, %v2234_v12  ;;  %v2142_v62 = vadd.f32 %v2141_v11, %v6105_v60  ;;  %v6182_v12 = vmul.f32 %v5924_v6, %v5924_v6 }
  0xdc   :  { %8959 = vst [vmem:[#allocation31_spill] sm:$0xff] %v6147_v54  ;;  %v6152_v46 = vld [vmem:[%s8819_s0 + $0x1d0] sm:$0xff]  ;;  %v6157_v44 = vld [vmem:[%s8819_s0 + $0x1d8] sm:$0xff]  ;;  %v6165_v39 = vld [vmem:[%s8819_s0 + $0x1e0] sm:$0xff]  ;;  %v2155_v17 = vadd.f32 %v2154_v24, %v6110_v30  ;;  %v2168_v6 = vadd.f32 %v2167_v58, %v6122_v55  ;;  %v2181_v11 = vadd.f32 %v2180_v25, %v6127_v49  ;;  %v2194_v58 = vadd.f32 %v2193_v31, %v6132_v37 }
  0xdd   :  { %8960 = vst [vmem:[#allocation32_spill] sm:$0xff] %v6152_v46  ;;  %8961 = vst [vmem:[#allocation33_spill] sm:$0xff] %v6157_v44  ;;  %v6170_v53 = vld [vmem:[%s8819_s0 + $0x1e8] sm:$0xff]  ;;  %v6175_v40 = vld [vmem:[%s8819_s0 + $0x1f0] sm:$0xff]  ;;  %v2207_v25 = vadd.f32 %v2206_v32, %v6147_v54  ;;  %v2220_v19 = vadd.f32 %v2219_v59, %v6152_v46  ;;  %v2051_v59 = vadd.f32 %v2050_v38, %v6165_v39 }
  0xde   :  { %8962 = vst [vmem:[#allocation34_spill] sm:$0xff] %v6165_v39  ;;  %8963 = vst [vmem:[#allocation35_spill] sm:$0xff] %v6170_v53  ;;  %v6187_v10 = vld [vmem:[%s8819_s0 + $0x1f8] sm:$0xff]  ;;  %v6192_v52 = vld [vmem:[%s8819_s0 + $0x200] sm:$0xff]  ;;  %v2065_v7 = vadd.f32 %v2064_v63, %v6170_v53  ;;  %v6245_v32 = vmul.f32 %v5934_v8, %v5934_v8  ;;  %v2078_v8 = vadd.f32 %v2077_v0, %v6175_v40 }
  0xdf   :  { %8964 = vst [vmem:[#allocation36_spill] sm:$0xff] %v6182_v12  ;;  %v6197_v16 = vld [vmem:[%s8819_s0 + $0x208] sm:$0xff]  ;;  %v2237_v12 = vsel %vm2231_vm0, %v6157_v44, 0.0  ;;  %v6207_v26 = vld [vmem:[%s8819_s0 + $0x210] sm:$0xff]  ;;  %v6212_v48 = vld [vmem:[%s8819_s0 + $0x218] sm:$0xff]  ;;  %v2091_v13 = vadd.f32 %v2090_v1, %v6187_v10  ;;  %v2104_v63 = vadd.f32 %v2103_v45, %v6192_v52 }
  0xe0   :  { %8965 = vst [vmem:[#allocation37_spill] sm:$0xff] %v6197_v16  ;;  %8966 = vst [vmem:[#allocation38_spill] sm:$0xff] %v6207_v26  ;;  %v6217_v24 = vld [vmem:[%s8819_s0 + $0x220] sm:$0xff]  ;;  %v6229_v44 = vld [vmem:[%s8819_s0 + $0x228] sm:$0xff]  ;;  %v2117_v39 = vadd.f32 %v2116_v56, %v6197_v16  ;;  %v2130_v0 = vadd.f32 %v2129_v57, %v6207_v26  ;;  %v2143_v1 = vadd.f32 %v2142_v62, %v6212_v48 }
  0xe1   :  { %8967 = vst [vmem:[#allocation39_spill] sm:$0xff] %v6212_v48  ;;  %8968 = vst [vmem:[#allocation40_spill] sm:$0xff] %v6217_v24  ;;  %v6234_v49 = vld [vmem:[%s8819_s0 + $0x230] sm:$0xff]  ;;  %v6239_v31 = vld [vmem:[%s8819_s0 + $0x238] sm:$0xff]  ;;  %v2156_v57 = vadd.f32 %v2155_v17, %v6217_v24 }
  0xe2   :  { %8970 = vst [vmem:[#allocation42_spill] sm:$0xff] %v6229_v44  ;;  %8971 = vst [vmem:[#allocation43_spill] sm:$0xff] %v6234_v49  ;;  %v6254_v46 = vld [vmem:[%s8819_s0 + $0x240] sm:$0xff]  ;;  %v6259_v54 = vld [vmem:[%s8819_s0 + $0x248] sm:$0xff]  ;;  %v2182_v62 = vadd.f32 %v2181_v11, %v6234_v49  ;;  %v6326_v49 = vmul.f32 %v5952_v15, %v5952_v15 }
  0xe3   :  { %8972 = vst [vmem:[#allocation44_spill] sm:$0xff] %v6239_v31  ;;  %8973 = vst [vmem:[#allocation45_spill] sm:$0xff] %v6245_v32  ;;  %v6264_v38 = vld [vmem:[%s8819_s0 + $0x250] sm:$0xff]  ;;  %v6272_v32 = vld [vmem:[%s8819_s0 + $0x258] sm:$0xff]  ;;  %v2208_v11 = vadd.f32 %v2207_v25, %v6254_v46  ;;  %v6347_v25 = vmul.f32 %v5959_v20, %v5959_v20 }
  0xe4   :  { %8974 = vst [vmem:[#allocation46_spill] sm:$0xff] %v6249_v47  ;;  %8975 = vst [vmem:[#allocation47_spill] sm:$0xff] %v6254_v46  ;;  %v2238_v47 = vadd.f32 %v2237_v12, %v2236_v18  ;;  %v6277_v53 = vld [vmem:[%s8819_s0 + $0x260] sm:$0xff]  ;;  %v6284_v18 = vmul.f32 %v5947_v14, %v5947_v14  ;;  %v6289_v45 = vld [vmem:[%s8819_s0 + $0x268] sm:$0xff]  ;;  %v2169_v14 = vadd.f32 %v2168_v6, %v6229_v44 }
  0xe5   :  { %8976 = vst [vmem:[#allocation48_spill] sm:$0xff] %v6259_v54  ;;  %8977 = vst [vmem:[#allocation49_spill] sm:$0xff] %v6264_v38  ;;  %v6294_v12 = vld [vmem:[%s8819_s0 + $0x270] sm:$0xff]  ;;  %v6299_v56 = vld [vmem:[%s8819_s0 + $0x278] sm:$0xff]  ;;  %v2195_v6 = vadd.f32 %v2194_v58, %v6239_v31  ;;  %v2066_v15 = vadd.f32 %v2065_v7, %v6277_v53  ;;  %v2079_v20 = vadd.f32 %v2078_v8, %v6289_v45 }
  0xe6   :  { %8978 = vst [vmem:[#allocation50_spill] sm:$0xff] %v6272_v32  ;;  %8979 = vst [vmem:[#allocation51_spill] sm:$0xff] %v6277_v53  ;;  %v6309_v48 = vld [vmem:[%s8819_s0 + $0x280] sm:$0xff]  ;;  %v6314_v26 = vld [vmem:[%s8819_s0 + $0x288] sm:$0xff]  ;;  %v2105_v7 = vadd.f32 %v2104_v63, %v6299_v56  ;;  %v6378_v31 = vmul.f32 %v5969_v22, %v5969_v22 }
  0xe7   :  { %8980 = vst [vmem:[#allocation52_spill] sm:$0xff] %v6284_v18  ;;  %v2239_v18 = vsel %vm2231_vm0, %v6264_v38, 0.0  ;;  %v6319_v17 = vld [vmem:[%s8819_s0 + $0x290] sm:$0xff]  ;;  %v2221_v38 = vadd.f32 %v2220_v19, %v6259_v54  ;;  %8981 = vst [vmem:[#allocation53_spill] sm:$0xff] %v6326_v49  ;;  %v6331_v44 = vld [vmem:[%s8819_s0 + $0x298] sm:$0xff]  ;;  %v2052_v19 = vadd.f32 %v2051_v59, %v6272_v32  ;;  %v6351_v49 = vmul.f32 %v5964_v21, %v5964_v21 }
  0xe8   :  { %8982 = vst [vmem:[#allocation54_spill] sm:$0xff] %v6331_v44  ;;  %v6336_v24 = vld [vmem:[%s8819_s0 + $0x2a0] sm:$0xff]  ;;  %v6341_v58 = vld [vmem:[%s8819_s0 + $0x2a8] sm:$0xff]  ;;  %8985 = vst [vmem:[#allocation57_spill] sm:$0xff] %v6347_v25  ;;  %v2092_v21 = vadd.f32 %v2091_v13, %v6294_v12  ;;  %v2118_v25 = vadd.f32 %v2117_v39, %v6309_v48  ;;  %v2131_v53 = vadd.f32 %v2130_v0, %v6314_v26 }
  0xe9   :  { %8983 = vst [vmem:[#allocation55_spill] sm:$0xff] %v6336_v24  ;;  %8984 = vst [vmem:[#allocation56_spill] sm:$0xff] %v6341_v58  ;;  %v6356_v54 = vld [vmem:[%s8819_s0 + $0x2b0] sm:$0xff]  ;;  %v6361_v46 = vld [vmem:[%s8819_s0 + $0x2b8] sm:$0xff]  ;;  %v2144_v32 = vadd.f32 %v2143_v1, %v6319_v17  ;;  %v6381_v16 = vadd.f32 %v2156_v57, %v6331_v44  ;;  %v6384_v8 = vadd.f32 %v2169_v14, %v6336_v24 }
  0xea   :  { %8986 = vst [vmem:[#allocation58_spill] sm:$0xff] %v6351_v49  ;;  %8987 = vst [vmem:[#allocation59_spill] sm:$0xff] %v6356_v54  ;;  %v6366_v59 = vld [vmem:[%s8819_s0 + $0x2c0] sm:$0xff]  ;;  %v6371_v49 = vadd.f32 %v2239_v18, %v2238_v47  ;;  %v6387_v13 = vadd.f32 %v2182_v62, %v6341_v58  ;;  %v6391_v47 = vmul.f32 %v5979_v27, %v5979_v27  ;;  %v6396_v39 = vld [vmem:[%s8819_s0 + $0x2d0] sm:$0x1] }
  0xeb   :  { %8988 = vst [vmem:[#allocation60_spill] sm:$0xff] %v6361_v46  ;;  %8989 = vst [vmem:[#allocation61_spill] sm:$0xff] %v6366_v59  ;;  %v6399_v22 = vadd.f32 %v2195_v6, %v6356_v54  ;;  %v6402_v63 = vadd.f32 %v2208_v11, %v6361_v46  ;;  %v6405_v0 = vadd.f32 %v2221_v38, %v6366_v59  ;;  %v6414_v27 = vld [vmem:[%s8819_s0 + $0x2d8] sm:$0x1]  ;;  %v6419_v18 = vld [vmem:[%s8819_s0 + $0x2e0] sm:$0x1] }
  0xec   :  { %8990 = vst [vmem:[#allocation62_spill] sm:$0xff] %v6378_v31  ;;  %8991 = vst [vmem:[#allocation63_spill] sm:$0xff] %v6391_v47  ;;  %v6409_v1 = vmul.f32 %v5984_v28, %v5984_v28  ;;  %v6424_v57 = vld [vmem:[%s8819_s0 + $0x2e8] sm:$0x1]  ;;  %v6428_v38 = vmul.f32 %v5989_v29, %v5989_v29  ;;  %v6432_v28 = vmul.f32 %v5999_v34, %v5999_v34  ;;  %v6445_v6 = vld [vmem:[%s8819_s0 + $0x2f0] sm:$0x1] }
  0xed   :  { %v6436_v14 = vmul.f32 %v6004_v35, %v6004_v35  ;;  %v6440_v62 = vmul.f32 %v6009_v36, %v6009_v36  ;;  %8997 = vst [vmem:[#allocation69_spill] sm:$0xff] %v6445_v6  ;;  %v6449_v29 = vmul.f32 %v6019_v41, %v6019_v41  ;;  %v6453_v34 = vmul.f32 %v6024_v42, %v6024_v42  ;;  %v6466_v11 = vld [vmem:[%s8819_s0 + $0x2f8] sm:$0x1]  ;;  %v6471_v41 = vld [vmem:[%s8819_s0 + $0x300] sm:$0x1] }
  0xee   :  { %8992 = vst [vmem:[#allocation64_spill] sm:$0xff] %v6409_v1  ;;  %8993 = vst [vmem:[#allocation65_spill] sm:$0xff] %v6428_v38  ;;  %v6457_v35 = vmul.f32 %v6029_v43, %v6029_v43  ;;  %v6461_v36 = vmul.f32 %v6040_v50, %v6040_v50  ;;  %v6476_v42 = vld [vmem:[%s8819_s0 + $0x308] sm:$0x1]  ;;  %v6480_v43 = vmul.f32 %v6045_v51, %v6045_v51  ;;  %v2080_v51 = vsel %vm2053_vm1, %v6419_v18, 0.0 }
  0xef   :  { %8994 = vst [vmem:[#allocation66_spill] sm:$0xff] %v6432_v28  ;;  %8995 = vst [vmem:[#allocation67_spill] sm:$0xff] %v6436_v14  ;;  %v6484_v50 = vmul.f32 %v6050_v9, %v6050_v9  ;;  %v2093_v9 = vsel %vm2053_vm1, %v6424_v57, 0.0  ;;  %v2119_v59 = vsel %vm2053_vm1, %v6466_v11, 0.0  ;;  %v2132_v46 = vsel %vm2053_vm1, %v6471_v41, 0.0 }
  0xf0   :  { %8996 = vst [vmem:[#allocation68_spill] sm:$0xff] %v6440_v62  ;;  %8998 = vst [vmem:[#allocation70_spill] sm:$0xff] %v6449_v29  ;;  %v2067_v29 = vsel %vm2053_vm1, %v6414_v27, 0.0  ;;  %v2094_v62 = vadd.f32 %v2093_v9, %v2092_v21  ;;  %v2145_v54 = vsel %vm2053_vm1, %v6476_v42, 0.0 }
  0xf1   :  { %8999 = vst [vmem:[#allocation71_spill] sm:$0xff] %v6453_v34  ;;  %9000 = vst [vmem:[#allocation72_spill] sm:$0xff] %v6457_v35  ;;  %v6492_v35 = vmul.f32 %v6063_v4, %v6063_v4  ;;  %v2054_v34 = vsel %vm2053_vm1, %v6396_v39, 0.0  ;;  %v2106_v4 = vsel %vm2053_vm1, %v6445_v6, 0.0  ;;  %v2146_v21 = vadd.f32 %v2145_v54, %v2144_v32 }
  0xf2   :  { %9001 = vst [vmem:[#allocation73_spill] sm:$0xff] %v6461_v36  ;;  %9002 = vst [vmem:[#allocation74_spill] sm:$0xff] %v6466_v11  ;;  %v6488_v36 = vmul.f32 %v6058_v5, %v6058_v5  ;;  %v2081_v5 = vadd.f32 %v2080_v51, %v2079_v20  ;;  %v2095_v38 = vrot.slane %v2094_v62, 4  ;;  %v2133_v20 = vadd.f32 %v2132_v46, %v2131_v53 }
  0xf3   :  { %9003 = vst [vmem:[#allocation75_spill] sm:$0xff] %v6471_v41  ;;  %9004 = vst [vmem:[#allocation76_spill] sm:$0xff] %v6476_v42  ;;  %v6512_v53 = vmul.f32 %v6068_v3, %v6068_v3  ;;  %v6516_v54 = vmul.f32 %v6080_v33, %v6080_v33  ;;  %v6520_v46 = vmul.f32 %v6085_v2, %v6085_v2  ;;  %v6534_v3 = vld [vmem:[%s8819_s0 + $0x318] sm:$0x1]  ;;  %v6539_v2 = vld [vmem:[%s8819_s0 + $0x320] sm:$0x1] }
  0xf4   :  { %9005 = vst [vmem:[#allocation77_spill] sm:$0xff] %v6480_v43  ;;  %9006 = vst [vmem:[#allocation78_spill] sm:$0xff] %v6484_v50  ;;  %v2055_v50 = vadd.f32 %v2054_v34, %v2052_v19  ;;  %v2068_v43 = vadd.f32 %v2067_v29, %v2066_v15  ;;  %v2082_v28 = vrot.slane %v2081_v5, 4  ;;  %v2107_v19 = vadd.f32 %v2106_v4, %v2105_v7 }
  0xf5   :  { %9007 = vst [vmem:[#allocation79_spill] sm:$0xff] %v6488_v36  ;;  %9008 = vst [vmem:[#allocation80_spill] sm:$0xff] %v6492_v35  ;;  %v2120_v15 = vadd.f32 %v2119_v59, %v2118_v25  ;;  %v2096_v9 = vadd.f32 %v2095_v38, %v2094_v62  ;;  %v2134_v47 = vrot.slane %v2133_v20, 4  ;;  %v2147_v36 = vrot.slane %v2146_v21, 4 }
  0xf6   :  { %v2056_v58 = vrot.slane %v2055_v50, 4  ;;  %v2069_v14 = vrot.slane %v2068_v43, 4  ;;  %v2083_v51 = vadd.f32 %v2082_v28, %v2081_v5  ;;  %v2108_v1 = vrot.slane %v2107_v19, 4  ;;  %9010 = vst [vmem:[#allocation82_spill] sm:$0xff] %v6534_v3  ;;  %9011 = vst [vmem:[#allocation83_spill] sm:$0xff] %v6539_v2 }
  0xf7   :  { %v2121_v35 = vrot.slane %v2120_v15, 4  ;;  %v2097_v42 = vrot.slane %v2096_v9, 2  ;;  %v2135_v44 = vadd.f32 %v2134_v47, %v2133_v20  ;;  %v2148_v7 = vadd.f32 %v2147_v36, %v2146_v21 }
  0xf8   :  { %v2057_v29 = vadd.f32 %v2056_v58, %v2055_v50  ;;  %v2070_v34 = vadd.f32 %v2069_v14, %v2068_v43  ;;  %v2084_v11 = vrot.slane %v2083_v51, 2  ;;  %v2109_v6 = vadd.f32 %v2108_v1, %v2107_v19  ;;  %v6560_v14 = vld [vmem:[%s8819_s0 + $0x328] sm:$0x1] }
  0xf9   :  { %v2122_v24 = vadd.f32 %v2121_v35, %v2120_v15  ;;  %v6524_v59 = vadd.f32 %v2097_v42, %v2096_v9  ;;  %v6543_v33 = vmul.f32 %v6090_v23, %v6090_v23  ;;  %v6547_v1 = vmul.f32 %v6100_v61, %v6100_v61  ;;  %9013 = vst [vmem:[#allocation85_spill] sm:$0xff] %v6560_v14  ;;  %v6565_v61 = vld [vmem:[%s8819_s0 + $0x330] sm:$0x1]  ;;  %v9019_v42 = vld [vmem:[#allocation31_spill] sm:$0xff]  ;;  %v6586_v50 = vld [vmem:[%s8819_s0 + $0x2c8] sm:$0xff] }
  0xfa   :  { %v2058_v31 = vrot.slane %v2057_v29, 2  ;;  %v2071_v41 = vrot.slane %v2070_v34, 2  ;;  %v6522_v58 = vadd.f32 %v2084_v11, %v2083_v51  ;;  %v2110_v47 = vrot.slane %v2109_v6, 2  ;;  %9014 = vst [vmem:[#allocation86_spill] sm:$0xff] %v6565_v61  ;;  %v6598_v15 = vld [vmem:[%s8819_s0 + $0x340] sm:$0x1] }
  0xfb   :  { %v6551_v38 = vmul.f32 %v6105_v60, %v6105_v60  ;;  %v6555_v28 = vmul.f32 %v6110_v30, %v6110_v30  ;;  %v2123_v23 = vrot.slane %v2122_v24, 2  ;;  %v2136_v35 = vrot.slane %v2135_v44, 2  ;;  %v9016_v30 = vld [vmem:[#allocation28_spill] sm:$0xff]  ;;  %9022 = vst [vmem:[#allocation90_spill] sm:$0xff] %v6598_v15 }
  0xfc   :  { %v2059_v25 = vadd.f32 %v2058_v31, %v2057_v29  ;;  %v2072_v32 = vadd.f32 %v2071_v41, %v2070_v34  ;;  %v6529_v31 = vld [vmem:[%s8819_s0 + $0x310] sm:$0x1]  ;;  %v2149_v36 = vrot.slane %v2148_v7, 2  ;;  %v6569_v60 = vmul.f32 %v6122_v55, %v6122_v55  ;;  %v6591_v55 = vld [vmem:[%s8819_s0 + $0x338] sm:$0x1] }
  0xfd   :  { %9009 = vst [vmem:[#allocation81_spill] sm:$0xff] %v6529_v31  ;;  %9012 = vst [vmem:[#allocation84_spill] sm:$0xff] %v6555_v28  ;;  %v6573_v11 = vmul.f32 %v9016_v30, %v9016_v30  ;;  %v6577_v41 = vmul.f32 %v6132_v37, %v6132_v37  ;;  %v6581_v43 = vmul.f32 %v9019_v42, %v9019_v42  ;;  %v2086_v4 = vrot.slane %v6522_v58, 1 }
  0xfe   :  { %v2060_v62 = vrot.slane %v2059_v25, 1  ;;  %9015 = vst [vmem:[#allocation87_spill] sm:$0xff] %v6569_v60  ;;  %9021 = vst [vmem:[#allocation89_spill] sm:$0xff] %v6591_v55  ;;  %v2073_v5 = vrot.slane %v2072_v32, 1  ;;  %v2099_v37 = vrot.slane %v6524_v59, 1  ;;  %v2111_v19 = vadd.f32 %v2110_v47, %v2109_v6 }
  0xff   :  { %9017 = vst [vmem:[#allocation28_spill] sm:$0xff] %v6573_v11  ;;  %9018 = vst [vmem:[#allocation88_spill] sm:$0xff] %v6577_v41  ;;  %v2158_v20 = vsel %vm2053_vm1, %v6529_v31, 0.0  ;;  %v2171_v21 = vsel %vm2053_vm1, %v6534_v3, 0.0  ;;  %v2184_v29 = vsel %vm2053_vm1, %v6539_v2, 0.0  ;;  %v2197_v34 = vsel %vm2053_vm1, %v6560_v14, 0.0 }
 0x100   :  { %9020 = vst [vmem:[#allocation31_spill] sm:$0xff] %v6581_v43  ;;  %v2061_v51 = vadd.f32 %v2060_v62, %v2059_v25  ;;  %v2124_v9 = vadd.f32 %v2123_v23, %v2122_v24  ;;  %v2137_v6 = vadd.f32 %v2136_v35, %v2135_v44  ;;  %v2150_v47 = vadd.f32 %v2149_v36, %v2148_v7 }
 0x101   :  { %v2159_v30 = vadd.f32 %v2158_v20, %v6381_v16  ;;  %v2172_v42 = vadd.f32 %v2171_v21, %v6384_v8  ;;  %v2185_v43 = vadd.f32 %v2184_v29, %v6387_v13  ;;  %v2198_v41 = vadd.f32 %v2197_v34, %v6399_v22 }
 0x102   :  { %v2210_v11 = vsel %vm2053_vm1, %v6565_v61, 0.0  ;;  %v2223_v60 = vsel %vm2053_vm1, %v6591_v55, 0.0  ;;  %v2241_v25 = vsel %vm2231_vm0, %v6586_v50, 0.0  ;;  %v2244_v44 = vsel %vm2243_vm2, %v6598_v15, 0.0 }
 0x103   :  { %v2160_v24 = vrot.slane %v2159_v30, 4  ;;  %v2173_v16 = vrot.slane %v2172_v42, 4  ;;  %v2186_v7 = vrot.slane %v2185_v43, 4  ;;  %v2199_v8 = vrot.slane %v2198_v41, 4 }
 0x104   :  { %v2074_v62 = vadd.f32 %v2073_v5, %v2072_v32  ;;  %v2211_v13 = vadd.f32 %v2210_v11, %v6402_v63  ;;  %v2224_v22 = vadd.f32 %v2223_v60, %v6405_v0  ;;  %v2242_v23 = vadd.f32 %v2241_v25, %v6371_v49 }
 0x105   :  { %v2161_v35 = vadd.f32 %v2160_v24, %v2159_v30  ;;  %v2174_v36 = vadd.f32 %v2173_v16, %v2172_v42  ;;  %v2187_v20 = vadd.f32 %v2186_v7, %v2185_v43  ;;  %v2200_v21 = vadd.f32 %v2199_v8, %v2198_v41 }
 0x106   :  { %v2112_v29 = vrot.slane %v2111_v19, 1  ;;  %v2212_v34 = vrot.slane %v2211_v13, 4  ;;  %v2225_v28 = vrot.slane %v2224_v22, 4  ;;  %v2245_v55 = vadd.f32 %v2244_v44, %v2242_v23 }
 0x107   :  { %v2162_v15 = vrot.slane %v2161_v35, 2  ;;  %v2175_v61 = vrot.slane %v2174_v36, 2  ;;  %v2188_v14 = vrot.slane %v2187_v20, 2  ;;  %v2201_v2 = vrot.slane %v2200_v21, 2 }
 0x108   :  { %v2125_v3 = vrot.slane %v2124_v9, 1  ;;  %v2213_v32 = vadd.f32 %v2212_v34, %v2211_v13  ;;  %v2226_v5 = vadd.f32 %v2225_v28, %v2224_v22  ;;  %v2246_v63 = vrot.slane %v2245_v55, 4 }
 0x109   :  { %v2163_v11 = vadd.f32 %v2162_v15, %v2161_v35  ;;  %v2176_v0 = vadd.f32 %v2175_v61, %v2174_v36  ;;  %v2189_v60 = vadd.f32 %v2188_v14, %v2187_v20  ;;  %v2202_v49 = vadd.f32 %v2201_v2, %v2200_v21 }
 0x10a   :  { %v2138_v30 = vrot.slane %v2137_v6, 1  ;;  %v2214_v42 = vrot.slane %v2213_v32, 2  ;;  %v2227_v43 = vrot.slane %v2226_v5, 2  ;;  %v2247_v41 = vadd.f32 %v2246_v63, %v2245_v55 }
 0x10b   :  { %v2151_v25 = vrot.slane %v2150_v47, 1  ;;  %v2164_v24 = vrot.slane %v2163_v11, 1  ;;  %v2177_v16 = vrot.slane %v2176_v0, 1  ;;  %v2190_v44 = vrot.slane %v2189_v60, 1 }
 0x10c   :  { %v2203_v7 = vrot.slane %v2202_v49, 1  ;;  %v2215_v8 = vadd.f32 %v2214_v42, %v2213_v32  ;;  %v2228_v23 = vadd.f32 %v2227_v43, %v2226_v5  ;;  %v2248_v31 = vrot.slane %v2247_v41, 2 }
 0x10d   :  { %v2087_v13 = vadd.f32 %v2086_v4, %v6522_v58  ;;  %v2100_v28 = vadd.f32 %v2099_v37, %v6524_v59  ;;  %v2113_v15 = vadd.f32 %v2112_v29, %v2111_v19  ;;  %v2126_v61 = vadd.f32 %v2125_v3, %v2124_v9  ;;  %v9030_v19 = vld [vmem:[#allocation32_spill] sm:$0xff] }
 0x10e   :  { %v2139_v14 = vadd.f32 %v2138_v30, %v2137_v6  ;;  %v2216_v2 = vrot.slane %v2215_v8, 1  ;;  %v2229_v22 = vrot.slane %v2228_v23, 1  ;;  %v2249_v35 = vadd.f32 %v2248_v31, %v2247_v41 }
 0x10f   :  { %v2152_v36 = vadd.f32 %v2151_v25, %v2150_v47  ;;  %v2165_v55 = vadd.f32 %v2164_v24, %v2163_v11  ;;  %v6625_v20 = vmul.f32 0.020408163, %v2061_v51  ;;  %v6627_v21 = vmul.f32 0.020408163, %v2074_v62  ;;  %v9033_v62 = vld [vmem:[#allocation33_spill] sm:$0xff]  ;;  %v9040_v25 = vld [vmem:[#allocation35_spill] sm:$0xff] }
 0x110   :  { %v2178_v34 = vadd.f32 %v2177_v16, %v2176_v0  ;;  %v2191_v32 = vadd.f32 %v2190_v44, %v2189_v60  ;;  %v2204_v5 = vadd.f32 %v2203_v7, %v2202_v49  ;;  %v2250_v63 = vrot.slane %v2249_v35, 1  ;;  %v9037_v49 = vld [vmem:[#allocation34_spill] sm:$0xff] }
 0x111   :  { %9023 = vst [vmem:[#allocation91_spill] sm:$0xff] %v6625_v20  ;;  %9024 = vst [vmem:[#allocation92_spill] sm:$0xff] %v6627_v21  ;;  %v2217_v42 = vadd.f32 %v2216_v2, %v2215_v8  ;;  %v2230_v58 = vadd.f32 %v2229_v22, %v2228_v23  ;;  %v6629_v4 = vmul.f32 0.020408163, %v2087_v13  ;;  %v6631_v59 = vmul.f32 0.020408163, %v2100_v28 }
 0x112   :  { %v6633_v3 = vmul.f32 0.020408163, %v2113_v15  ;;  %v6635_v37 = vmul.f32 0.020408163, %v2126_v61  ;;  %v6637_v31 = vmul.f32 0.020408163, %v2139_v14  ;;  %v6641_v51 = vmul.f32 %v9030_v19, %v9030_v19 }
 0x113   :  { %9025 = vst [vmem:[#allocation93_spill] sm:$0xff] %v6629_v4  ;;  %9026 = vst [vmem:[#allocation94_spill] sm:$0xff] %v6631_v59  ;;  %v2251_v9 = vadd.f32 %v2250_v63, %v2249_v35  ;;  %v6643_v6 = vmul.f32 0.020408163, %v2152_v36  ;;  %v6645_v47 = vmul.f32 0.020408163, %v2165_v55  ;;  %v6649_v29 = vmul.f32 %v9033_v62, %v9033_v62 }
 0x114   :  { %9027 = vst [vmem:[#allocation95_spill] sm:$0xff] %v6633_v3  ;;  %9028 = vst [vmem:[#allocation96_spill] sm:$0xff] %v6635_v37  ;;  %v6651_v11 = vmul.f32 0.020408163, %v2178_v34  ;;  %v6653_v0 = vmul.f32 0.020408163, %v2191_v32  ;;  %v2327_v30 = vmul.f32 %v9037_v49, %v9037_v49  ;;  %v2328_v24 = vmul.f32 %v9040_v25, %v9040_v25 }
 0x115   :  { %9029 = vst [vmem:[#allocation97_spill] sm:$0xff] %v6637_v31  ;;  %9031 = vst [vmem:[#allocation32_spill] sm:$0xff] %v6643_v6  ;;  %v6655_v60 = vmul.f32 0.020408163, %v2204_v5  ;;  %v6659_v43 = vmul.f32 0.020408163, %v2217_v42  ;;  %v2329_v16 = vmul.f32 %v6175_v40, %v6175_v40  ;;  %v2330_v44 = vmul.f32 %v6187_v10, %v6187_v10 }
 0x116   :  { %9032 = vst [vmem:[#allocation98_spill] sm:$0xff] %v6645_v47  ;;  %9034 = vst [vmem:[#allocation33_spill] sm:$0xff] %v6651_v11  ;;  %v6661_v41 = vmul.f32 0.020408163, %v2230_v58  ;;  %v6671_v7 = vmul.f32 %v6192_v52, %v6192_v52  ;;  %v9041_v8 = vld [vmem:[#allocation37_spill] sm:$0xff]  ;;  %v9042_v13 = vld [vmem:[#allocation38_spill] sm:$0xff]  ;;  %v2344_v25 = vmul.f32 %v6289_v45, %v6289_v45  ;;  %v2359_v45 = vmul.f32 %v6419_v18, %v6419_v18 }
 0x117   :  { %9035 = vst [vmem:[#allocation99_spill] sm:$0xff] %v6653_v0  ;;  %9036 = vst [vmem:[#allocation100_spill] sm:$0xff] %v6655_v60  ;;  %v6675_v23 = vmul.f32 %v9041_v8, %v9041_v8  ;;  %v6679_v28 = vmul.f32 %v9042_v13, %v9042_v13  ;;  %v6681_v15 = vmul.f32 0.020408163, %v2251_v9  ;;  %v9044_v61 = vld [vmem:[#allocation39_spill] sm:$0xff]  ;;  %v9045_v14 = vld [vmem:[#allocation40_spill] sm:$0xff]  ;;  %v2345_v8 = vmul.f32 %v6294_v12, %v6294_v12 }
 0x118   :  { %9038 = vst [vmem:[#allocation34_spill] sm:$0xff] %v6659_v43  ;;  %9039 = vst [vmem:[#allocation101_spill] sm:$0xff] %v6661_v41  ;;  %v6685_v40 = vmul.f32 %v9044_v61, %v9044_v61  ;;  %v6689_v10 = vmul.f32 %v9045_v14, %v9045_v14  ;;  %v9046_v52 = vld [vmem:[#allocation42_spill] sm:$0xff]  ;;  %v9047_v22 = vld [vmem:[#allocation43_spill] sm:$0xff]  ;;  %v2346_v13 = vmul.f32 %v6299_v56, %v6299_v56 }
 0x119   :  { %9043 = vst [vmem:[#allocation35_spill] sm:$0xff] %v6681_v15  ;;  %v6693_v2 = vmul.f32 %v9046_v52, %v9046_v52  ;;  %v6697_v35 = vmul.f32 %v9047_v22, %v9047_v22  ;;  %v9048_v36 = vld [vmem:[#allocation44_spill] sm:$0xff]  ;;  %v9049_v34 = vld [vmem:[#allocation47_spill] sm:$0xff]  ;;  %v9051_v42 = vld [vmem:[#allocation49_spill] sm:$0xff]  ;;  %v2357_v61 = vmul.f32 %v6396_v39, %v6396_v39  ;;  %v2358_v14 = vmul.f32 %v6414_v27, %v6414_v27 }
 0x11a   :  { %v6701_v55 = vmul.f32 %v9048_v36, %v9048_v36  ;;  %v6705_v32 = vmul.f32 %v9049_v34, %v9049_v34  ;;  %v9050_v5 = vld [vmem:[#allocation48_spill] sm:$0xff]  ;;  %v6713_v58 = vmul.f32 %v9051_v42, %v9051_v42  ;;  %v9053_v19 = vld [vmem:[#allocation50_spill] sm:$0xff]  ;;  %v9054_v62 = vld [vmem:[#allocation51_spill] sm:$0xff]  ;;  %v2347_v52 = vmul.f32 %v6309_v48, %v6309_v48 }
 0x11b   :  { %v6709_v63 = vmul.f32 %v9050_v5, %v9050_v5  ;;  %v2342_v9 = vmul.f32 %v9053_v19, %v9053_v19  ;;  %v2343_v49 = vmul.f32 %v9054_v62, %v9054_v62  ;;  %v2348_v22 = vmul.f32 %v6314_v26, %v6314_v26  ;;  %v9055_v39 = vld [vmem:[#allocation54_spill] sm:$0xff]  ;;  %v9056_v27 = vld [vmem:[#allocation55_spill] sm:$0xff]  ;;  %v9057_v34 = vld [vmem:[#allocation69_spill] sm:$0xff] }
 0x11c   :  { %9052 = vst [vmem:[#allocation37_spill] sm:$0xff] %v6713_v58  ;;  %v2360_v12 = vmul.f32 %v6424_v57, %v6424_v57  ;;  %v6739_v56 = vmul.f32 %v6319_v17, %v6319_v17  ;;  %v6743_v36 = vmul.f32 %v9055_v39, %v9055_v39  ;;  %v6747_v48 = vmul.f32 %v9056_v27, %v9056_v27  ;;  %v9058_v5 = vld [vmem:[#allocation74_spill] sm:$0xff]  ;;  %v9059_v42 = vld [vmem:[#allocation75_spill] sm:$0xff]  ;;  %v9060_v19 = vld [vmem:[#allocation76_spill] sm:$0xff] }
 0x11d   :  { %v2361_v26 = vmul.f32 %v9057_v34, %v9057_v34  ;;  %v2362_v18 = vmul.f32 %v9058_v5, %v9058_v5  ;;  %v2363_v57 = vmul.f32 %v9059_v42, %v9059_v42  ;;  %v6757_v17 = vmul.f32 %v9060_v19, %v9060_v19  ;;  %v9061_v62 = vld [vmem:[#allocation6_spill] sm:$0xff]  ;;  %v9062_v39 = vld [vmem:[#allocation21_spill] sm:$0xff]  ;;  %v9063_v27 = vld [vmem:[#allocation7_spill] sm:$0xff] }
 0x11e   :  { %v2372_v15 = vadd.f32 %v9062_v39, %v9061_v62  ;;  %v2377_v41 = vsel %vm2053_vm1, %v2357_v61, 0.0  ;;  %v9064_v43 = vld [vmem:[#allocation22_spill] sm:$0xff]  ;;  %v2390_v34 = vsel %vm2053_vm1, %v2358_v14, 0.0  ;;  %v9065_v0 = vld [vmem:[#allocation8_spill] sm:$0xff]  ;;  %v9066_v11 = vld [vmem:[#allocation23_spill] sm:$0xff]  ;;  %v2403_v42 = vsel %vm2053_vm1, %v2359_v45, 0.0 }
 0x11f   :  { %v2385_v60 = vadd.f32 %v9064_v43, %v9063_v27  ;;  %v2398_v5 = vadd.f32 %v9066_v11, %v9065_v0  ;;  %v9067_v47 = vld [vmem:[#allocation57_spill] sm:$0xff]  ;;  %v9069_v19 = vld [vmem:[#allocation24_spill] sm:$0xff]  ;;  %v2416_v3 = vsel %vm2053_vm1, %v2360_v12, 0.0  ;;  %v9070_v62 = vld [vmem:[#allocation58_spill] sm:$0xff]  ;;  %v2429_v14 = vsel %vm2053_vm1, %v2361_v26, 0.0 }
 0x120   :  { %v2373_v6 = vadd.f32 %v2372_v15, %v9067_v47  ;;  %v9068_v31 = vld [vmem:[#allocation9_spill] sm:$0xff]  ;;  %v9071_v61 = vld [vmem:[#allocation62_spill] sm:$0xff]  ;;  %v9074_v21 = vld [vmem:[#allocation79_spill] sm:$0xff] }
 0x121   :  { %v2411_v37 = vadd.f32 %v9069_v19, %v9068_v31  ;;  %v2386_v39 = vadd.f32 %v2385_v60, %v9070_v62  ;;  %v2399_v59 = vadd.f32 %v2398_v5, %v9071_v61  ;;  %v9072_v4 = vld [vmem:[#allocation10_spill] sm:$0xff]  ;;  %v9073_v43 = vld [vmem:[#allocation25_spill] sm:$0xff]  ;;  %v9075_v0 = vld [vmem:[#allocation63_spill] sm:$0xff]  ;;  %v2442_v31 = vsel %vm2053_vm1, %v2362_v18, 0.0 }
 0x122   :  { %v2424_v27 = vadd.f32 %v9073_v43, %v9072_v4  ;;  %v2374_v11 = vadd.f32 %v2373_v6, %v9074_v21  ;;  %v9076_v15 = vld [vmem:[#allocation11_spill] sm:$0xff]  ;;  %v9077_v45 = vld [vmem:[#allocation26_spill] sm:$0xff]  ;;  %v9078_v19 = vld [vmem:[#allocation80_spill] sm:$0xff] }
 0x123   :  { %v2412_v47 = vadd.f32 %v2411_v37, %v9075_v0  ;;  %v2437_v20 = vadd.f32 %v9077_v45, %v9076_v15  ;;  %v2387_v12 = vadd.f32 %v2386_v39, %v9078_v19  ;;  %v2400_v60 = vadd.f32 %v2399_v59, %v6512_v53  ;;  %v9079_v62 = vld [vmem:[#allocation64_spill] sm:$0xff]  ;;  %v9081_v58 = vld [vmem:[#allocation27_spill] sm:$0xff]  ;;  %v9082_v21 = vld [vmem:[#allocation65_spill] sm:$0xff] }
 0x124   :  { %v2425_v5 = vadd.f32 %v2424_v27, %v9079_v62  ;;  %v9080_v61 = vld [vmem:[#allocation12_spill] sm:$0xff]  ;;  %v2375_v43 = vadd.f32 %v2374_v11, %v2327_v30  ;;  %v2455_v37 = vsel %vm2053_vm1, %v2363_v57, 0.0  ;;  %v9083_v45 = vld [vmem:[#allocation66_spill] sm:$0xff]  ;;  %v9084_v27 = vld [vmem:[#allocation13_spill] sm:$0xff] }
 0x125   :  { %v2450_v4 = vadd.f32 %v9081_v58, %v9080_v61  ;;  %v2413_v26 = vadd.f32 %v2412_v47, %v6516_v54  ;;  %v2438_v6 = vadd.f32 %v2437_v20, %v9082_v21  ;;  %v2388_v0 = vadd.f32 %v2387_v12, %v2328_v24  ;;  %v9085_v62 = vld [vmem:[#allocation29_spill] sm:$0xff] }
 0x126   :  { %v2401_v15 = vadd.f32 %v2400_v60, %v2329_v16  ;;  %v2426_v18 = vadd.f32 %v2425_v5, %v6520_v46  ;;  %v2376_v19 = vadd.f32 %v2375_v43, %v2342_v9  ;;  %v2463_v58 = vadd.f32 %v9085_v62, %v9084_v27  ;;  %v9086_v46 = vld [vmem:[#allocation67_spill] sm:$0xff] }
 0x127   :  { %v2451_v39 = vadd.f32 %v2450_v4, %v9083_v45  ;;  %v2414_v53 = vadd.f32 %v2413_v26, %v2330_v44  ;;  %v2439_v59 = vadd.f32 %v2438_v6, %v6543_v33  ;;  %v2389_v30 = vadd.f32 %v2388_v0, %v2343_v49  ;;  %v9088_v45 = vld [vmem:[#allocation59_spill] sm:$0xff] }
 0x128   :  { %v2402_v11 = vadd.f32 %v2401_v15, %v2344_v25  ;;  %v2427_v54 = vadd.f32 %v2426_v18, %v6671_v7  ;;  %v2378_v57 = vadd.f32 %v2377_v41, %v2376_v19  ;;  %v2464_v47 = vadd.f32 %v2463_v58, %v9086_v46  ;;  %v9091_v58 = vld [vmem:[#allocation81_spill] sm:$0xff] }
 0x129   :  { %v2452_v20 = vadd.f32 %v2451_v39, %v6547_v1  ;;  %v2415_v24 = vadd.f32 %v2414_v53, %v2345_v8  ;;  %v2440_v16 = vadd.f32 %v2439_v59, %v6675_v23  ;;  %v2391_v12 = vadd.f32 %v2390_v34, %v2389_v30  ;;  %v9089_v39 = vld [vmem:[#allocation60_spill] sm:$0xff]  ;;  %v9090_v59 = vld [vmem:[#allocation61_spill] sm:$0xff] }
 0x12a   :  { %v2404_v9 = vadd.f32 %v2403_v42, %v2402_v11  ;;  %v2428_v44 = vadd.f32 %v2427_v54, %v2346_v13  ;;  %v2379_v60 = vrot.slane %v2378_v57, 4  ;;  %v2465_v49 = vadd.f32 %v2464_v47, %v6551_v38  ;;  %v9092_v11 = vld [vmem:[#allocation82_spill] sm:$0xff] }
 0x12b   :  { %v2453_v33 = vadd.f32 %v2452_v20, %v6679_v28  ;;  %v2417_v5 = vadd.f32 %v2416_v3, %v2415_v24  ;;  %v2441_v61 = vadd.f32 %v2440_v16, %v2347_v52  ;;  %v2392_v25 = vrot.slane %v2391_v12, 4 }
 0x12c   :  { %v2405_v7 = vrot.slane %v2404_v9, 4  ;;  %v2430_v4 = vadd.f32 %v2429_v14, %v2428_v44  ;;  %v2380_v41 = vadd.f32 %v2379_v60, %v2378_v57  ;;  %v2466_v23 = vadd.f32 %v2465_v49, %v6685_v40  ;;  %v9087_v14 = vld [vmem:[#allocation56_spill] sm:$0xff]  ;;  %v9094_v44 = vld [vmem:[#allocation85_spill] sm:$0xff]  ;;  %v9095_v60 = vld [vmem:[#allocation86_spill] sm:$0xff] }
 0x12d   :  { %v2454_v1 = vadd.f32 %v2453_v33, %v2348_v22  ;;  %v2418_v8 = vrot.slane %v2417_v5, 4  ;;  %v2443_v43 = vadd.f32 %v2442_v31, %v2441_v61  ;;  %v2393_v26 = vadd.f32 %v2392_v25, %v2391_v12  ;;  %v9093_v12 = vld [vmem:[#allocation83_spill] sm:$0xff]  ;;  %v9096_v49 = vld [vmem:[#allocation89_spill] sm:$0xff] }
 0x12e   :  { %v2406_v34 = vadd.f32 %v2405_v7, %v2404_v9  ;;  %v2431_v42 = vrot.slane %v2430_v4, 4  ;;  %v2381_v21 = vrot.slane %v2380_v41, 2  ;;  %v2467_v3 = vadd.f32 %v2466_v23, %v6739_v56  ;;  %v9097_v7 = vld [vmem:[#allocation90_spill] sm:$0xff] }
 0x12f   :  { %v2456_v13 = vadd.f32 %v2455_v37, %v2454_v1  ;;  %v2419_v28 = vadd.f32 %v2418_v8, %v2417_v5  ;;  %v2444_v6 = vrot.slane %v2443_v43, 4  ;;  %v2394_v52 = vrot.slane %v2393_v26, 2  ;;  %v9099_v8 = vld [vmem:[#allocation30_spill] sm:$0xff] }
 0x130   :  { %v2407_v38 = vrot.slane %v2406_v34, 2  ;;  %v2432_v0 = vadd.f32 %v2431_v42, %v2430_v4  ;;  %v6805_v22 = vmul.f32 %v9087_v14, %v9087_v14  ;;  %v2468_v40 = vsel %vm2053_vm1, %v6757_v17, 0.0  ;;  %v9100_v42 = vld [vmem:[#allocation15_spill] sm:$0xff]  ;;  %v9103_v14 = vld [vmem:[#allocation70_spill] sm:$0xff] }
 0x131   :  { %v2457_v15 = vrot.slane %v2456_v13, 4  ;;  %v2420_v31 = vrot.slane %v2419_v28, 2  ;;  %v2445_v18 = vadd.f32 %v2444_v6, %v2443_v43  ;;  %v6811_v37 = vmul.f32 %v9088_v45, %v9088_v45  ;;  %v9105_v45 = vld [vmem:[#allocation41_spill] sm:$0xff] }
 0x132   :  { %v6815_v56 = vmul.f32 %v9089_v39, %v9089_v39  ;;  %v2433_v19 = vrot.slane %v2432_v0, 2  ;;  %v6819_v27 = vmul.f32 %v9090_v59, %v9090_v59  ;;  %v6823_v62 = vmul.f32 %v6586_v50, %v6586_v50  ;;  %v9106_v59 = vld [vmem:[#allocation84_spill] sm:$0xff] }
 0x133   :  { %v2458_v53 = vadd.f32 %v2457_v15, %v2456_v13  ;;  %v2365_v17 = vmul.f32 %v9091_v58, %v9091_v58  ;;  %v2469_v30 = vadd.f32 %v2468_v40, %v2467_v3  ;;  %v2366_v54 = vmul.f32 %v9092_v11, %v9092_v11  ;;  %v9101_v13 = vld [vmem:[#allocation36_spill] sm:$0xff]  ;;  %v9107_v11 = vld [vmem:[#allocation17_spill] sm:$0xff] }
 0x134   :  { %v6829_v20 = vadd.f32 %v2381_v21, %v2380_v41  ;;  %v6831_v57 = vadd.f32 %v2394_v52, %v2393_v26  ;;  %v6833_v24 = vadd.f32 %v2407_v38, %v2406_v34  ;;  %v6835_v16 = vadd.f32 %v2420_v31, %v2419_v28  ;;  %v9098_v41 = vld [vmem:[#allocation14_spill] sm:$0xff]  ;;  %v9102_v52 = vld [vmem:[#allocation68_spill] sm:$0xff] }
 0x135   :  { %v6837_v46 = vadd.f32 %v2433_v19, %v2432_v0  ;;  %v2446_v47 = vrot.slane %v2445_v18, 2  ;;  %v2470_v50 = vrot.slane %v2469_v30, 4  ;;  %v2367_v9 = vmul.f32 %v9093_v12, %v9093_v12  ;;  %v9104_v40 = vld [vmem:[#allocation16_spill] sm:$0xff] }
 0x136   :  { %v2368_v33 = vmul.f32 %v9094_v44, %v9094_v44  ;;  %v2369_v5 = vmul.f32 %v9095_v60, %v9095_v60  ;;  %v2459_v61 = vrot.slane %v2458_v53, 2  ;;  %v2370_v25 = vmul.f32 %v9096_v49, %v9096_v49  ;;  %v9111_v60 = vld [vmem:[#allocation18_spill] sm:$0xff] }
 0x137   :  { %v6849_v4 = vmul.f32 %v9097_v7, %v9097_v7  ;;  %v6851_v1 = vadd.f32 %v2470_v50, %v2469_v30  ;;  %v2476_v43 = vadd.f32 %v9099_v8, %v9098_v41  ;;  %v2383_v23 = vrot.slane %v6829_v20, 1  ;;  %v9109_v50 = vld [vmem:[#allocation87_spill] sm:$0xff]  ;;  %v9113_v41 = vld [vmem:[#allocation72_spill] sm:$0xff] }
 0x138   :  { %v2396_v26 = vrot.slane %v6831_v57, 1  ;;  %v2409_v34 = vrot.slane %v6833_v24, 1  ;;  %v2489_v21 = vadd.f32 %v9101_v13, %v9100_v42  ;;  %v2422_v28 = vrot.slane %v6835_v16, 1  ;;  %v9114_v42 = vld [vmem:[#allocation19_spill] sm:$0xff] }
 0x139   :  { %v2435_v6 = vrot.slane %v6837_v46, 1  ;;  %v6862_v3 = vadd.f32 %v2446_v47, %v2445_v18  ;;  %v2477_v38 = vadd.f32 %v2476_v43, %v9102_v52  ;;  %v6865_v0 = vadd.f32 %v2459_v61, %v2458_v53  ;;  %v9108_v18 = vld [vmem:[#allocation45_spill] sm:$0xff]  ;;  %v9110_v53 = vld [vmem:[#allocation71_spill] sm:$0xff]  ;;  %v9112_v61 = vld [vmem:[#allocation46_spill] sm:$0xff] }
 0x13a   :  { %v2481_v15 = vsel %vm2053_vm1, %v2365_v17, 0.0  ;;  %v2490_v31 = vadd.f32 %v2489_v21, %v9103_v14  ;;  %v2502_v39 = vadd.f32 %v9105_v45, %v9104_v40  ;;  %v2472_v19 = vrot.slane %v6851_v1, 2  ;;  %v9116_v52 = vld [vmem:[#allocation28_spill] sm:$0xff]  ;;  %v9117_v14 = vld [vmem:[#allocation73_spill] sm:$0xff] }
 0x13b   :  { %v2478_v58 = vadd.f32 %v2477_v38, %v9106_v59  ;;  %v2494_v30 = vsel %vm2053_vm1, %v2366_v54, 0.0  ;;  %v2515_v47 = vadd.f32 %v9108_v18, %v9107_v11  ;;  %v2507_v17 = vsel %vm2053_vm1, %v2367_v9, 0.0  ;;  %v9115_v54 = vld [vmem:[#allocation52_spill] sm:$0xff]  ;;  %v9120_v18 = vld [vmem:[#allocation31_spill] sm:$0xff] }
 0x13c   :  { %v2491_v12 = vadd.f32 %v2490_v31, %v9109_v50  ;;  %v2503_v44 = vadd.f32 %v2502_v39, %v9110_v53  ;;  %v2528_v49 = vadd.f32 %v9112_v61, %v9111_v60  ;;  %v2520_v43 = vsel %vm2053_vm1, %v2368_v33, 0.0  ;;  %v9118_v45 = vld [vmem:[#allocation88_spill] sm:$0xff]  ;;  %v9122_v53 = vld [vmem:[#allocation53_spill] sm:$0xff] }
 0x13d   :  { %v2479_v7 = vadd.f32 %v2478_v58, %v6689_v10  ;;  %v2516_v8 = vadd.f32 %v2515_v47, %v9113_v41  ;;  %v2541_v13 = vadd.f32 %v9115_v54, %v9114_v42  ;;  %v2533_v9 = vsel %vm2053_vm1, %v2369_v5, 0.0  ;;  %v9119_v10 = vld [vmem:[#allocation77_spill] sm:$0xff]  ;;  %v9121_v47 = vld [vmem:[#allocation20_spill] sm:$0xff]  ;;  %v9123_v41 = vld [vmem:[#allocation78_spill] sm:$0xff] }
 0x13e   :  { %v2492_v21 = vadd.f32 %v2491_v12, %v6693_v2  ;;  %v2504_v38 = vadd.f32 %v2503_v44, %v9116_v52  ;;  %v2529_v31 = vadd.f32 %v2528_v49, %v9117_v14  ;;  %v2546_v58 = vsel %vm2053_vm1, %v2370_v25, 0.0 }
 0x13f   :  { %v2480_v40 = vadd.f32 %v2479_v7, %v6743_v36  ;;  %v2517_v39 = vadd.f32 %v2516_v8, %v9118_v45  ;;  %v2542_v59 = vadd.f32 %v2541_v13, %v9119_v10  ;;  %v2554_v50 = vsel %vm2231_vm0, %v9121_v47, 0.0 }
 0x140   :  { %v2493_v33 = vadd.f32 %v2492_v21, %v6747_v48  ;;  %v2505_v11 = vadd.f32 %v2504_v38, %v6697_v35  ;;  %v2530_v2 = vadd.f32 %v2529_v31, %v9120_v18  ;;  %v2555_v44 = vsel %vm2231_vm0, %v9122_v53, 0.0  ;;  %v9124_v31 = vld [vmem:[#allocation37_spill] sm:$0xff] }
 0x141   :  { %v2482_v12 = vadd.f32 %v2481_v15, %v2480_v40  ;;  %v2518_v5 = vadd.f32 %v2517_v39, %v6701_v55  ;;  %v2543_v36 = vadd.f32 %v2542_v59, %v6641_v51  ;;  %v2556_v61 = vadd.f32 %v2555_v44, %v2554_v50 }
 0x142   :  { %v2495_v60 = vadd.f32 %v2494_v30, %v2493_v33  ;;  %v2506_v25 = vadd.f32 %v2505_v11, %v6805_v22  ;;  %v2531_v48 = vadd.f32 %v2530_v2, %v6705_v32  ;;  %v2557_v15 = vsel %vm2231_vm0, %v9123_v41, 0.0 }
 0x143   :  { %v2483_v35 = vrot.slane %v2482_v12, 4  ;;  %v2519_v49 = vadd.f32 %v2518_v5, %v6811_v37  ;;  %v2544_v7 = vadd.f32 %v2543_v36, %v6709_v63  ;;  %v2558_v42 = vadd.f32 %v2557_v15, %v2556_v61 }
 0x144   :  { %v2496_v55 = vrot.slane %v2495_v60, 4  ;;  %v2508_v8 = vadd.f32 %v2507_v17, %v2506_v25  ;;  %v2532_v51 = vadd.f32 %v2531_v48, %v6815_v56  ;;  %v2559_v32 = vsel %vm2231_vm0, %v6649_v29, 0.0 }
 0x145   :  { %v2484_v54 = vadd.f32 %v2483_v35, %v2482_v12  ;;  %v2521_v30 = vadd.f32 %v2520_v43, %v2519_v49  ;;  %v2545_v22 = vadd.f32 %v2544_v7, %v6819_v27  ;;  %v2560_v52 = vadd.f32 %v2559_v32, %v2558_v42 }
 0x146   :  { %v2497_v13 = vadd.f32 %v2496_v55, %v2495_v60  ;;  %v2509_v21 = vrot.slane %v2508_v8, 4  ;;  %v2534_v37 = vadd.f32 %v2533_v9, %v2532_v51  ;;  %v2561_v17 = vsel %vm2231_vm0, %v9124_v31, 0.0  ;;  %v9128_v31 = vld [vmem:[#allocation94_spill] sm:$0xff] }
 0x147   :  { %v2485_v63 = vrot.slane %v2484_v54, 2  ;;  %v2522_v38 = vrot.slane %v2521_v30, 4  ;;  %v2547_v14 = vadd.f32 %v2546_v58, %v2545_v22  ;;  %v2562_v39 = vadd.f32 %v2561_v17, %v2560_v52 }
 0x148   :  { %v2498_v40 = vrot.slane %v2497_v13, 2  ;;  %v2510_v56 = vadd.f32 %v2509_v21, %v2508_v8  ;;  %v2535_v45 = vrot.slane %v2534_v37, 4  ;;  %v2473_v43 = vadd.f32 %v2472_v19, %v6851_v1 }
 0x149   :  { %v2523_v27 = vadd.f32 %v2522_v38, %v2521_v30  ;;  %v2548_v10 = vrot.slane %v2547_v14, 4  ;;  %v2563_v29 = vsel %vm2231_vm0, %v6823_v62, 0.0  ;;  %v2486_v59 = vadd.f32 %v2485_v63, %v2484_v54 }
 0x14a   :  { %v2511_v9 = vrot.slane %v2510_v56, 2  ;;  %v2536_v33 = vadd.f32 %v2535_v45, %v2534_v37  ;;  %v2564_v11 = vadd.f32 %v2563_v29, %v2562_v39  ;;  %v2499_v18 = vadd.f32 %v2498_v40, %v2497_v13  ;;  %v9125_v37 = vld [vmem:[#allocation91_spill] sm:$0xff] }
 0x14b   :  { %v2524_v58 = vrot.slane %v2523_v27, 2  ;;  %v2549_v2 = vadd.f32 %v2548_v10, %v2547_v14  ;;  %v2565_v47 = vsel %vm2243_vm2, %v6849_v4, 0.0  ;;  %v2448_v50 = vrot.slane %v6862_v3, 1  ;;  %v9129_v39 = vld [vmem:[#allocation95_spill] sm:$0xff] }
 0x14c   :  { %v2512_v12 = vadd.f32 %v2511_v9, %v2510_v56  ;;  %v2537_v5 = vrot.slane %v2536_v33, 2  ;;  %v2566_v1 = vadd.f32 %v2565_v47, %v2564_v11  ;;  %v2461_v19 = vrot.slane %v6865_v0, 1 }
 0x14d   :  { %v2474_v36 = vrot.slane %v2473_v43, 1  ;;  %v2525_v53 = vadd.f32 %v2524_v58, %v2523_v27  ;;  %v2550_v62 = vrot.slane %v2549_v2, 2  ;;  %v2384_v44 = vadd.f32 %v2383_v23, %v6829_v20 }
 0x14e   :  { %v2487_v60 = vrot.slane %v2486_v59, 1  ;;  %v2538_v25 = vadd.f32 %v2537_v5, %v2536_v33  ;;  %v2567_v48 = vrot.slane %v2566_v1, 4  ;;  %v2397_v4 = vadd.f32 %v2396_v26, %v6831_v57  ;;  %v9131_v33 = vld [vmem:[#allocation97_spill] sm:$0xff] }
 0x14f   :  { %v2410_v61 = vadd.f32 %v2409_v34, %v6833_v24  ;;  %v2500_v35 = vrot.slane %v2499_v18, 1  ;;  %v2551_v49 = vadd.f32 %v2550_v62, %v2549_v2  ;;  %v2423_v7 = vadd.f32 %v2422_v28, %v6835_v16  ;;  %v9134_v62 = vld [vmem:[#allocation33_spill] sm:$0xff] }
 0x150   :  { %v2513_v41 = vrot.slane %v2512_v12, 1  ;;  %v2526_v15 = vrot.slane %v2525_v53, 1  ;;  %v2568_v20 = vadd.f32 %v2567_v48, %v2566_v1  ;;  %v2436_v23 = vadd.f32 %v2435_v6, %v6837_v46  ;;  %v9126_v6 = vld [vmem:[#allocation92_spill] sm:$0xff]  ;;  %v9135_v48 = vld [vmem:[#allocation99_spill] sm:$0xff] }
 0x151   :  { %v2449_v55 = vadd.f32 %v2448_v50, %v6862_v3  ;;  %v2462_v57 = vadd.f32 %v2461_v19, %v6865_v0  ;;  %v2475_v26 = vadd.f32 %v2474_v36, %v2473_v43  ;;  %v2488_v8 = vadd.f32 %v2487_v60, %v2486_v59  ;;  %v9127_v0 = vld [vmem:[#allocation93_spill] sm:$0xff]  ;;  %v9130_v59 = vld [vmem:[#allocation96_spill] sm:$0xff]  ;;  %v9133_v36 = vld [vmem:[#allocation98_spill] sm:$0xff] }
 0x152   :  { %v2539_v24 = vrot.slane %v2538_v25, 1  ;;  %v2569_v34 = vrot.slane %v2568_v20, 2  ;;  %v2573_v51 = vmul.f32 0.020408163, %v2384_v44  ;;  %v2501_v42 = vadd.f32 %v2500_v35, %v2499_v18 }
 0x153   :  { %v2552_v54 = vrot.slane %v2551_v49, 1  ;;  %v2574_v30 = vmul.f32 0.020408163, %v2397_v4  ;;  %v2575_v16 = vmul.f32 0.020408163, %v2410_v61  ;;  %v2514_v28 = vadd.f32 %v2513_v41, %v2512_v12  ;;  %v9132_v12 = vld [vmem:[#allocation32_spill] sm:$0xff] }
 0x154   :  { %v2527_v22 = vadd.f32 %v2526_v15, %v2525_v53  ;;  %v2570_v32 = vadd.f32 %v2569_v34, %v2568_v20  ;;  %v2576_v13 = vmul.f32 0.020408163, %v2423_v7  ;;  %v2577_v21 = vmul.f32 0.020408163, %v2436_v23  ;;  %v9136_v61 = vld [vmem:[#allocation100_spill] sm:$0xff]  ;;  %v9137_v23 = vld [vmem:[#allocation34_spill] sm:$0xff] }
 0x155   :  { %v2588_v46 = vmul.f32 %v9125_v37, %v9125_v37  ;;  %v2589_v3 = vmul.f32 %v9126_v6, %v9126_v6  ;;  %v2590_v52 = vmul.f32 %v9127_v0, %v9127_v0  ;;  %v2540_v63 = vadd.f32 %v2539_v24, %v2538_v25  ;;  %v9139_v34 = vld [vmem:[#allocation35_spill] sm:$0xff] }
 0x156   :  { %v2578_v38 = vmul.f32 0.020408163, %v2449_v55  ;;  %v2579_v14 = vmul.f32 0.020408163, %v2462_v57  ;;  %v2591_v17 = vmul.f32 %v9128_v31, %v9128_v31  ;;  %v2553_v40 = vadd.f32 %v2552_v54, %v2551_v49  ;;  %v9138_v57 = vld [vmem:[#allocation101_spill] sm:$0xff] }
 0x157   :  { %v2580_v56 = vmul.f32 0.020408163, %v2475_v26  ;;  %v2581_v45 = vmul.f32 0.020408163, %v2488_v8  ;;  %v2592_v43 = vmul.f32 %v9129_v39, %v9129_v39  ;;  %v2571_v27 = vrot.slane %v2570_v32, 1 }
 0x158   :  { %v2582_v10 = vmul.f32 0.020408163, %v2501_v42  ;;  %v2583_v29 = vmul.f32 0.020408163, %v2514_v28  ;;  %v2593_v9 = vmul.f32 %v9130_v59, %v9130_v59  ;;  %v2594_v11 = vmul.f32 %v9131_v33, %v9131_v33 }
 0x159   :  { %v2603_v18 = vsub.f32 %v2573_v51, %v2588_v46  ;;  %v2604_v58 = vsub.f32 %v2574_v30, %v2589_v3  ;;  %v2605_v2 = vsub.f32 %v2575_v16, %v2590_v52  ;;  %v2584_v47 = vmul.f32 0.020408163, %v2527_v22 }
 0x15a   :  { %v2585_v50 = vmul.f32 0.020408163, %v2540_v63  ;;  %v2595_v5 = vmul.f32 %v9132_v12, %v9132_v12  ;;  %v2606_v1 = vsub.f32 %v2576_v13, %v2591_v17  ;;  %v2586_v19 = vmul.f32 0.020408163, %v2553_v40 }
 0x15b   :  { %v2596_v53 = vmul.f32 %v9133_v36, %v9133_v36  ;;  %v2597_v44 = vmul.f32 %v9134_v62, %v9134_v62  ;;  %v2607_v60 = vsub.f32 %v2577_v21, %v2592_v43  ;;  %v2572_v25 = vadd.f32 %v2571_v27, %v2570_v32 }
 0x15c   :  { %v2598_v4 = vmul.f32 %v9135_v48, %v9135_v48  ;;  %v2599_v35 = vmul.f32 %v9136_v61, %v9136_v61  ;;  %v2608_v49 = vsub.f32 %v2578_v38, %v2593_v9  ;;  %v2609_v7 = vsub.f32 %v2579_v14, %v2594_v11 }
 0x15d   :  { %v2618_v41 = vadd.f32 1e-05, %v2603_v18  ;;  %v2619_v15 = vadd.f32 1e-05, %v2604_v58  ;;  %v2620_v20 = vadd.f32 1e-05, %v2605_v2  ;;  %v2600_v55 = vmul.f32 %v9137_v23, %v9137_v23 }
 0x15e   :  { %v2601_v26 = vmul.f32 %v9138_v57, %v9138_v57  ;;  %v2610_v8 = vsub.f32 %v2580_v56, %v2595_v5  ;;  %v2621_v24 = vadd.f32 1e-05, %v2606_v1  ;;  %v2602_v51 = vmul.f32 %v9139_v34, %v9139_v34 }
 0x15f   :  { %v2611_v42 = vsub.f32 %v2581_v45, %v2596_v53  ;;  %v2622_v54 = vadd.f32 1e-05, %v2607_v60  ;;  %4589 = vrsqrt.f32 %v2618_v41  ;;  %v2587_v30 = vmul.f32 0.020408163, %v2572_v25 }
 0x160   :  { %v2612_v16 = vsub.f32 %v2582_v10, %v2597_v44  ;;  %v2623_v28 = vadd.f32 1e-05, %v2608_v49  ;;  %4591 = vrsqrt.f32 %v2619_v15  ;;  %v2613_v22 = vsub.f32 %v2583_v29, %v2598_v4 }
 0x161   :  { %v2624_v32 = vadd.f32 1e-05, %v2609_v7  ;;  %4593 = vrsqrt.f32 %v2620_v20  ;;  %v2670_v13 = vlaneseq  ;;  %v2614_v21 = vsub.f32 %v2584_v47, %v2599_v35 }
 0x162   :  { %v2625_v46 = vadd.f32 1e-05, %v2610_v8  ;;  %4595 = vrsqrt.f32 %v2621_v24  ;;  %v2615_v3 = vsub.f32 %v2585_v50, %v2600_v55  ;;  %v2626_v52 = vadd.f32 1e-05, %v2611_v42 }
 0x163   :  { %4597 = vrsqrt.f32 %v2622_v54  ;;  %v4730_v63 = vmov 1966171168   ;;  %v2616_v14 = vsub.f32 %v2586_v19, %v2601_v26  ;;  %v2617_v17 = vsub.f32 %v2587_v30, %v2602_v51 }
 0x164   :  { %v2668_v38 = vunpack.c.l.s4 %v4730_v63  ;;  %v2627_v40 = vadd.f32 1e-05, %v2612_v16  ;;  %4599 = vrsqrt.f32 %v2623_v28  ;;  %v2628_v56 = vadd.f32 1e-05, %v2613_v22 }
 0x165   :  { %4601 = vrsqrt.f32 %v2624_v32  ;;  %v6969_v43 = vshrl.u32 %v2670_v13, 7  ;;  %v2629_v27 = vadd.f32 1e-05, %v2614_v21  ;;  %v2630_v10 = vadd.f32 1e-05, %v2615_v3 }
 0x166   :  { %v2669_v45 = vunpack.c.0.s8 %v2668_v38  ;;  %4603 = vrsqrt.f32 %v2625_v46  ;;  %v2631_v29 = vadd.f32 1e-05, %v2616_v14  ;;  %v2632_v11 = vadd.f32 1e-05, %v2617_v17  ;;  %v2041_v21 = vld [vmem:[%s8820_s1] ss:$2 sm:$0xff] }
 0x167   :  { %4605 = vrsqrt.f32 %v2626_v52  ;;  %v6987_v3 = vsub.s32 0, %v6969_v43  ;;  %v6990_v52 = vsub.s32 1, %v6969_v43  ;;  %v6994_v17 = vsub.s32 2, %v6969_v43 }
 0x168   :  { %4607 = vrsqrt.f32 %v2627_v40  ;;  %v6972_v18 = vsub.s32 %v2669_v45, %v6969_v43  ;;  %v6997_v40 = vsub.s32 3, %v6969_v43  ;;  %v7003_v45 = vsub.s32 5, %v6969_v43 }
 0x169   :  { %v4590_v9 = vpop.eup %4589  ;;  %4609 = vrsqrt.f32 %v2628_v56  ;;  %9141 = vst [vmem:[#allocation39_spill] sm:$0xff] %v6987_v3  ;;  %9142 = vst [vmem:[#allocation40_spill] sm:$0xff] %v6990_v52  ;;  %v7000_v56 = vsub.s32 4, %v6969_v43 }
 0x16a   :  { %9140 = vst [vmem:[#allocation38_spill] sm:$0xff] %v6972_v18  ;;  %v4592_v58 = vpop.eup %4591  ;;  %4611 = vrsqrt.f32 %v2629_v27  ;;  %v7006_v27 = vsub.s32 6, %v6969_v43 }
 0x16b   :  { %v4594_v2 = vpop.eup %4593  ;;  %4613 = vrsqrt.f32 %v2630_v10  ;;  %v2663_v47 = vcombine.low %v4590_v9, %v4592_v58 }
 0x16c   :  { %v4596_v50 = vpop.eup %4595  ;;  %4615 = vrsqrt.f32 %v2631_v29 }
 0x16d   :  { %v4598_v5 = vpop.eup %4597  ;;  %4617 = vrsqrt.f32 %v2632_v11  ;;  %v2664_v1 = vcombine.low %v4594_v2, %v4596_v50  ;;  %v2673_v19 = vrot.slane %v2663_v47, %v6972_v18  ;;  %v8874_v11 = vsub.s32 7, %v6969_v43 }
 0x16e   :  { %v4600_v53 = vpop.eup %4599 }
 0x16f   :  { %v4602_v44 = vpop.eup %4601  ;;  %v2665_v60 = vcombine.low %v4598_v5, %v4600_v53  ;;  %v2680_v25 = vrot.slane %v2664_v1, %v6972_v18  ;;  %v4468_v5 = vld [vmem:[%s8820_s1 + $0x10] ss:$2 sm:$0x7f] }
 0x170   :  { %v4604_v4 = vpop.eup %4603 }
 0x171   :  { %v4606_v35 = vpop.eup %4605  ;;  %v2666_v49 = vcombine.low %v4602_v44, %v4604_v4  ;;  %v2687_v7 = vrot.slane %v2665_v60, %v6972_v18  ;;  %v2695_v41 = vcombine.low %v2673_v19, %v2680_v25 }
 0x172   :  { %v4608_v15 = vpop.eup %4607 }
 0x173   :  { %v4610_v20 = vpop.eup %4609  ;;  %v2694_v55 = vrot.slane %v2666_v49, %v6972_v18  ;;  %v2712_v26 = vcombine.low %v4606_v35, %v4608_v15  ;;  %v2703_v42 = vrot.slane %v2695_v41, %v6972_v18 }
 0x174   :  { %v4612_v8 = vpop.eup %4611 }
 0x175   :  { %v4614_v24 = vpop.eup %4613  ;;  %v2696_v51 = vcombine.low %v2687_v7, %v2694_v55  ;;  %v2713_v54 = vcombine.low %v4610_v20, %v4612_v8  ;;  %v2721_v30 = vrot.slane %v2712_v26, %v6972_v18 }
 0x176   :  { %v4616_v16 = vpop.eup %4615 }
 0x177   :  { %v4618_v28 = vpop.eup %4617  ;;  %v2710_v22 = vrot.slane %v2696_v51, %v6972_v18  ;;  %v2714_v32 = vcombine.low %v4614_v24, %v4616_v16  ;;  %v2728_v13 = vrot.slane %v2713_v54, %v6972_v18 }
 0x178   :  { %v2742_v46 = vrot.slane %v4618_v28, %v6972_v18 }
 0x179   :  { %v2711_v63 = vcombine.low %v2703_v42, %v2710_v22  ;;  %v2735_v38 = vrot.slane %v2714_v32, %v6972_v18  ;;  %v2743_v14 = vcombine.low %v2721_v30, %v2728_v13 }
 0x17b   :  { %v2744_v10 = vcombine.low %v2735_v38, %v2742_v46  ;;  %v2751_v29 = vrot.slane %v2743_v14, %v6972_v18  ;;  %v2762_v9 = vmul.f32 %v2711_v63, %v2041_v21 }
 0x17d   :  { %v2758_v58 = vrot.slane %v2744_v10, %v6972_v18  ;;  %v7012_v2 = vrot.slane %v2762_v9, %v6987_v3  ;;  %v7015_v47 = vrot.slane %v2762_v9, %v6990_v52  ;;  %v7018_v50 = vrot.slane %v2762_v9, %v6994_v17 }
 0x17e   :  { %v7024_v1 = vrot.slane %v2762_v9, %v6997_v40  ;;  %v7027_v19 = vrot.slane %v2762_v9, %v7000_v56  ;;  %v7030_v53 = vrot.slane %v2762_v9, %v7003_v45  ;;  %v7033_v44 = vrot.slane %v2762_v9, %v7006_v27 }
 0x17f   :  { %v2759_v60 = vcombine.low %v2751_v29, %v2758_v58  ;;  %v7037_v25 = vrot.slane %v2762_v9, %v8874_v11  ;;  %v2841_v4 = vmul.f32 %v7012_v2, %v9125_v37  ;;  %v2842_v35 = vmul.f32 %v7015_v47, %v9126_v6  ;;  %v4653_v11 = vld [vmem:[%s8819_s0 + $0x110] sm:$0xff] }
 0x180   :  { %v2843_v49 = vmul.f32 %v7018_v50, %v9127_v0  ;;  %v2844_v7 = vmul.f32 %v7024_v1, %v9128_v31  ;;  %v2845_v41 = vmul.f32 %v7027_v19, %v9129_v39  ;;  %v2846_v15 = vmul.f32 %v7030_v53, %v9130_v59  ;;  %v4619_v0 = vld [vmem:[%s8819_s0] sm:$0xff]  ;;  %v4620_v39 = vld [vmem:[%s8819_s0 + $0x8] sm:$0xff] }
 0x181   :  { %v2763_v20 = vmul.f32 %v4468_v5, %v2759_v60  ;;  %v2847_v55 = vmul.f32 %v7033_v44, %v9131_v33  ;;  %v2848_v37 = vmul.f32 %v7037_v25, %v9132_v12  ;;  %v2871_v6 = vcombine.low %v2841_v4, %v2842_v35  ;;  %v4622_v5 = vld [vmem:[%s8819_s0 + $0x18] sm:$0xff] }
 0x182   :  { %v2872_v26 = vcombine.low %v2843_v49, %v2844_v7  ;;  %v2873_v8 = vcombine.low %v2845_v41, %v2846_v15  ;;  %v7059_v31 = vmul.f32 %v4619_v0, %v7012_v2  ;;  %v7065_v59 = vmul.f32 %v4620_v39, %v7015_v47  ;;  %v4623_v49 = vld [vmem:[%s8819_s0 + $0x20] sm:$0xff]  ;;  %v4624_v41 = vld [vmem:[%s8819_s0 + $0x28] sm:$0xff] }
 0x183   :  { %v7068_v33 = vrot.slane %v2763_v20, %v6987_v3  ;;  %v7071_v12 = vrot.slane %v2763_v20, %v6990_v52  ;;  %v7074_v24 = vrot.slane %v2763_v20, %v6994_v17  ;;  %v7077_v51 = vrot.slane %v2763_v20, %v6997_v40  ;;  %v4469_v0 = vld [vmem:[%s8820_s1 + $0x1] ss:$2 sm:$0xff] }
 0x184   :  { %v7080_v42 = vrot.slane %v2763_v20, %v7000_v56  ;;  %v7083_v54 = vrot.slane %v2763_v20, %v7003_v45  ;;  %v7086_v30 = vrot.slane %v2763_v20, %v7006_v27  ;;  %v2874_v16 = vcombine.low %v2847_v55, %v2848_v37  ;;  %v4625_v37 = vld [vmem:[%s8819_s0 + $0x30] sm:$0xff] }
 0x185   :  { %v2849_v28 = vmul.f32 %v7068_v33, %v9133_v36  ;;  %v2850_v22 = vmul.f32 %v7071_v12, %v9134_v62  ;;  %v2851_v32 = vmul.f32 %v7074_v24, %v9135_v48  ;;  %v2852_v13 = vmul.f32 %v7077_v51, %v9136_v61 }
 0x186   :  { %v2853_v21 = vmul.f32 %v7080_v42, %v9137_v23  ;;  %v2854_v46 = vmul.f32 %v7083_v54, %v9138_v57  ;;  %v2855_v63 = vmul.f32 %v7086_v30, %v9139_v34  ;;  %v2881_v36 = vrot.slane %v2871_v6, %v6972_v18  ;;  %v4621_v23 = vld [vmem:[%s8819_s0 + $0x10] sm:$0xff] }
 0x187   :  { %v2888_v38 = vrot.slane %v2872_v26, %v6972_v18  ;;  %v2895_v62 = vrot.slane %v2873_v8, %v6972_v18  ;;  %v2902_v48 = vrot.slane %v2874_v16, %v6972_v18  ;;  %v2920_v14 = vcombine.low %v2849_v28, %v2850_v22  ;;  %v4626_v26 = vld [vmem:[%s8819_s0 + $0x38] sm:$0xff]  ;;  %v4627_v28 = vld [vmem:[%s8819_s0 + $0x40] sm:$0xff] }
 0x188   :  { %v2921_v10 = vcombine.low %v2851_v32, %v2852_v13  ;;  %v2922_v61 = vcombine.low %v2853_v21, %v2854_v46  ;;  %v2950_v29 = vrot.slane %v2855_v63, %v6972_v18  ;;  %v7111_v57 = vmul.f32 %v4621_v23, %v7018_v50  ;;  %v4628_v32 = vld [vmem:[%s8819_s0 + $0x48] sm:$0xff]  ;;  %v4629_v46 = vld [vmem:[%s8819_s0 + $0x50] sm:$0xff] }
 0x189   :  { %v2903_v34 = vcombine.low %v2881_v36, %v2888_v38  ;;  %v2904_v9 = vcombine.low %v2895_v62, %v2902_v48  ;;  %v2929_v58 = vrot.slane %v2920_v14, %v6972_v18  ;;  %v7118_v60 = vmul.f32 %v4622_v5, %v7024_v1  ;;  %v4630_v36 = vld [vmem:[%s8819_s0 + $0x58] sm:$0xff]  ;;  %v4631_v62 = vld [vmem:[%s8819_s0 + $0x60] sm:$0xff]  ;;  %v4633_v23 = vld [vmem:[%s8819_s0 + $0x70] sm:$0xff] }
 0x18a   :  { %v2936_v4 = vrot.slane %v2921_v10, %v6972_v18  ;;  %v2943_v35 = vrot.slane %v2922_v61, %v6972_v18  ;;  %v7126_v7 = vmul.f32 %v4623_v49, %v7027_v19  ;;  %v7132_v15 = vmul.f32 %v4624_v41, %v7030_v53  ;;  %v4632_v61 = vld [vmem:[%s8819_s0 + $0x68] sm:$0xff]  ;;  %v4634_v5 = vld [vmem:[%s8819_s0 + $0x78] sm:$0xff] }
 0x18b   :  { %v2911_v20 = vrot.slane %v2903_v34, %v6972_v18  ;;  %v2918_v55 = vrot.slane %v2904_v9, %v6972_v18  ;;  %v7140_v6 = vmul.f32 %v4625_v37, %v7033_v44  ;;  %v7146_v8 = vmul.f32 %v4626_v26, %v7037_v25  ;;  %v4470_v9 = vld [vmem:[%s8820_s1 + $0x11] ss:$2 sm:$0x7f]  ;;  %v4636_v41 = vld [vmem:[%s8819_s0 + $0x88] sm:$0xff] }
 0x18c   :  { %v2951_v39 = vcombine.low %v2929_v58, %v2936_v4  ;;  %v2952_v16 = vcombine.low %v2943_v35, %v2950_v29  ;;  %v7155_v22 = vmul.f32 %v4627_v28, %v7068_v33  ;;  %v7161_v13 = vmul.f32 %v4628_v32, %v7071_v12  ;;  %v4635_v35 = vld [vmem:[%s8819_s0 + $0x80] sm:$0xff]  ;;  %v4637_v37 = vld [vmem:[%s8819_s0 + $0x90] sm:$0xff]  ;;  %v4640_v32 = vld [vmem:[%s8819_s0 + $0xa8] sm:$0xff] }
 0x18d   :  { %v2919_v21 = vcombine.low %v2911_v20, %v2918_v55  ;;  %v7167_v63 = vmul.f32 %v4629_v46, %v7074_v24  ;;  %v7173_v38 = vmul.f32 %v4630_v36, %v7077_v51  ;;  %v7179_v48 = vmul.f32 %v4631_v62, %v7080_v42  ;;  %v4641_v46 = vld [vmem:[%s8819_s0 + $0xb0] sm:$0xff]  ;;  %v4642_v62 = vld [vmem:[%s8819_s0 + $0xb8] sm:$0xff] }
 0x18e   :  { %v2959_v14 = vrot.slane %v2951_v39, %v6972_v18  ;;  %v2966_v10 = vrot.slane %v2952_v16, %v6972_v18  ;;  %v7187_v29 = vmul.f32 %v4632_v61, %v7083_v54  ;;  %v7193_v34 = vmul.f32 %v4633_v23, %v7086_v30  ;;  %v4639_v16 = vld [vmem:[%s8819_s0 + $0xa0] sm:$0xff]  ;;  %v4654_v18 = vld [vmem:[%s8819_s0 + $0x118] sm:$0xff] }
 0x18f   :  { %v7198_v58 = vsub.f32 %v4469_v0, %v2919_v21  ;;  %v7204_v4 = vmul.f32 %v4634_v5, %v7012_v2  ;;  %v7210_v49 = vmul.f32 %v4635_v35, %v7015_v47  ;;  %v7216_v20 = vmul.f32 %v4636_v41, %v7018_v50  ;;  %v4638_v0 = vld [vmem:[%s8819_s0 + $0x98] sm:$0xff]  ;;  %v4644_v5 = vld [vmem:[%s8819_s0 + $0xc8] sm:$0xff]  ;;  %v4645_v41 = vld [vmem:[%s8819_s0 + $0xd0] sm:$0xff] }
 0x190   :  { %v2967_v55 = vcombine.low %v2959_v14, %v2966_v10  ;;  %v7222_v26 = vmul.f32 %v4637_v37, %v7024_v1  ;;  %v7228_v39 = vmul.f32 %v4638_v0, %v7027_v19  ;;  %v7234_v28 = vmul.f32 %v4639_v16, %v7030_v53  ;;  %v4643_v10 = vld [vmem:[%s8819_s0 + $0xc0] sm:$0xff]  ;;  %v4646_v0 = vld [vmem:[%s8819_s0 + $0xd8] sm:$0xff] }
 0x191   :  { %v7240_v21 = vmul.f32 %v4640_v32, %v7033_v44  ;;  %v7246_v36 = vmul.f32 %v4641_v46, %v7037_v25  ;;  %v7252_v14 = vmul.f32 %v4642_v62, %v7068_v33  ;;  %v7258_v61 = vmul.f32 %v4643_v10, %v7071_v12  ;;  %v4648_v32 = vld [vmem:[%s8819_s0 + $0xe8] sm:$0xff]  ;;  %v4649_v62 = vld [vmem:[%s8819_s0 + $0xf0] sm:$0xff] }
 0x192   :  { %v7260_v23 = vsub.f32 %v4470_v9, %v2967_v55  ;;  %v7266_v35 = vmul.f32 %v4644_v5, %v7074_v24  ;;  %v7272_v37 = vmul.f32 %v4645_v41, %v7077_v51  ;;  %v7278_v9 = vmul.f32 %v4646_v0, %v7080_v42  ;;  %v4647_v55 = vld [vmem:[%s8819_s0 + $0xe0] sm:$0xff]  ;;  %v4650_v5 = vld [vmem:[%s8819_s0 + $0xf8] sm:$0xff] }
 0x193   :  { %v7284_v16 = vmul.f32 %v4647_v55, %v7083_v54  ;;  %v7290_v46 = vmul.f32 %v4648_v32, %v7086_v30  ;;  %v7296_v10 = vmul.f32 %v4649_v62, %v7012_v2  ;;  %v7302_v41 = vmul.f32 %v4650_v5, %v7015_v47  ;;  %v4651_v0 = vld [vmem:[%s8819_s0 + $0x100] sm:$0xff]  ;;  %v4652_v32 = vld [vmem:[%s8819_s0 + $0x108] sm:$0xff] }
 0x194   :  { %v7308_v55 = vmul.f32 %v4651_v0, %v7018_v50  ;;  %v7314_v62 = vmul.f32 %v4652_v32, %v7024_v1  ;;  %v7320_v5 = vmul.f32 %v4653_v11, %v7027_v19  ;;  %v7326_v0 = vmul.f32 %v4654_v18, %v7030_v53 }
 0x196   :  { %9143 = vst [vmem:[#allocation42_spill] sm:$0xff] %v7308_v55  ;;  %9144 = vst [vmem:[#allocation43_spill] sm:$0xff] %v7314_v62  ;;  %v4655_v55 = vld [vmem:[%s8819_s0 + $0x120] sm:$0xff]  ;;  %v4656_v62 = vld [vmem:[%s8819_s0 + $0x128] sm:$0xff] }
 0x197   :  { %9145 = vst [vmem:[#allocation44_spill] sm:$0xff] %v7320_v5  ;;  %9146 = vst [vmem:[#allocation47_spill] sm:$0xff] %v7326_v0  ;;  %v7332_v32 = vmul.f32 %v4655_v55, %v7033_v44  ;;  %v7338_v11 = vmul.f32 %v4656_v62, %v7037_v25  ;;  %v4657_v5 = vld [vmem:[%s8819_s0 + $0x130] sm:$0xff]  ;;  %v4658_v0 = vld [vmem:[%s8819_s0 + $0x138] sm:$0xff] }
 0x198   :  { %v7344_v18 = vmul.f32 %v4657_v5, %v7068_v33  ;;  %v7350_v55 = vmul.f32 %v4658_v0, %v7071_v12 }
 0x199   :  { %9147 = vst [vmem:[#allocation48_spill] sm:$0xff] %v7332_v32  ;;  %9148 = vst [vmem:[#allocation49_spill] sm:$0xff] %v7338_v11  ;;  %v4659_v32 = vld [vmem:[%s8819_s0 + $0x140] sm:$0xff]  ;;  %v4660_v11 = vld [vmem:[%s8819_s0 + $0x148] sm:$0xff] }
 0x19a   :  { %9149 = vst [vmem:[#allocation50_spill] sm:$0xff] %v7344_v18  ;;  %9150 = vst [vmem:[#allocation51_spill] sm:$0xff] %v7350_v55  ;;  %v7356_v62 = vmul.f32 %v4659_v32, %v7074_v24  ;;  %v7362_v5 = vmul.f32 %v4660_v11, %v7077_v51  ;;  %v4661_v18 = vld [vmem:[%s8819_s0 + $0x150] sm:$0xff]  ;;  %v4662_v55 = vld [vmem:[%s8819_s0 + $0x158] sm:$0xff] }
 0x19b   :  { %v7368_v0 = vmul.f32 %v4661_v18, %v7080_v42  ;;  %v7374_v32 = vmul.f32 %v4662_v55, %v7083_v54 }
 0x19c   :  { %9151 = vst [vmem:[#allocation54_spill] sm:$0xff] %v7356_v62  ;;  %9152 = vst [vmem:[#allocation55_spill] sm:$0xff] %v7362_v5  ;;  %v4663_v62 = vld [vmem:[%s8819_s0 + $0x160] sm:$0xff]  ;;  %v4664_v5 = vld [vmem:[%s8819_s0 + $0x168] sm:$0xff] }
 0x19d   :  { %9153 = vst [vmem:[#allocation69_spill] sm:$0xff] %v7368_v0  ;;  %9154 = vst [vmem:[#allocation74_spill] sm:$0xff] %v7374_v32  ;;  %v7380_v11 = vmul.f32 %v4663_v62, %v7086_v30  ;;  %v7386_v18 = vmul.f32 %v4664_v5, %v7012_v2  ;;  %v4665_v0 = vld [vmem:[%s8819_s0 + $0x170] sm:$0xff]  ;;  %v4666_v32 = vld [vmem:[%s8819_s0 + $0x178] sm:$0xff] }
 0x19e   :  { %v7392_v55 = vmul.f32 %v4665_v0, %v7015_v47  ;;  %v7398_v62 = vmul.f32 %v4666_v32, %v7018_v50 }
 0x19f   :  { %9155 = vst [vmem:[#allocation75_spill] sm:$0xff] %v7380_v11  ;;  %9156 = vst [vmem:[#allocation76_spill] sm:$0xff] %v7386_v18  ;;  %v4667_v11 = vld [vmem:[%s8819_s0 + $0x180] sm:$0xff]  ;;  %v4668_v18 = vld [vmem:[%s8819_s0 + $0x188] sm:$0xff] }
 0x1a0   :  { %9157 = vst [vmem:[#allocation6_spill] sm:$0xff] %v7392_v55  ;;  %9158 = vst [vmem:[#allocation21_spill] sm:$0xff] %v7398_v62  ;;  %v7404_v5 = vmul.f32 %v4667_v11, %v7024_v1  ;;  %v7410_v0 = vmul.f32 %v4668_v18, %v7027_v19  ;;  %v4669_v55 = vld [vmem:[%s8819_s0 + $0x190] sm:$0xff]  ;;  %v4670_v62 = vld [vmem:[%s8819_s0 + $0x198] sm:$0xff] }
 0x1a1   :  { %v7416_v32 = vmul.f32 %v4669_v55, %v7030_v53  ;;  %v7422_v11 = vmul.f32 %v4670_v62, %v7033_v44 }
 0x1a2   :  { %9159 = vst [vmem:[#allocation7_spill] sm:$0xff] %v7404_v5  ;;  %9160 = vst [vmem:[#allocation22_spill] sm:$0xff] %v7410_v0  ;;  %v4671_v5 = vld [vmem:[%s8819_s0 + $0x1a0] sm:$0xff]  ;;  %v4672_v0 = vld [vmem:[%s8819_s0 + $0x1a8] sm:$0xff] }
 0x1a3   :  { %9161 = vst [vmem:[#allocation8_spill] sm:$0xff] %v7416_v32  ;;  %9162 = vst [vmem:[#allocation23_spill] sm:$0xff] %v7422_v11  ;;  %v7428_v18 = vmul.f32 %v4671_v5, %v7037_v25  ;;  %v7434_v55 = vmul.f32 %v4672_v0, %v7068_v33  ;;  %v4673_v32 = vld [vmem:[%s8819_s0 + $0x1b0] sm:$0xff]  ;;  %v4674_v11 = vld [vmem:[%s8819_s0 + $0x1b8] sm:$0xff] }
 0x1a4   :  { %v7440_v62 = vmul.f32 %v4673_v32, %v7071_v12  ;;  %v7446_v5 = vmul.f32 %v4674_v11, %v7074_v24 }
 0x1a5   :  { %9163 = vst [vmem:[#allocation57_spill] sm:$0xff] %v7428_v18  ;;  %9164 = vst [vmem:[#allocation9_spill] sm:$0xff] %v7434_v55  ;;  %v4675_v18 = vld [vmem:[%s8819_s0 + $0x1c0] sm:$0xff]  ;;  %v4676_v55 = vld [vmem:[%s8819_s0 + $0x1c8] sm:$0xff] }
 0x1a6   :  { %9165 = vst [vmem:[#allocation24_spill] sm:$0xff] %v7440_v62  ;;  %9166 = vst [vmem:[#allocation58_spill] sm:$0xff] %v7446_v5  ;;  %v7452_v0 = vmul.f32 %v4675_v18, %v7077_v51  ;;  %v7458_v32 = vmul.f32 %v4676_v55, %v7080_v42  ;;  %v4677_v62 = vld [vmem:[%s8819_s0 + $0x1d0] sm:$0xff]  ;;  %v4678_v5 = vld [vmem:[%s8819_s0 + $0x1d8] sm:$0xff] }
 0x1a7   :  { %v7464_v11 = vmul.f32 %v4677_v62, %v7083_v54  ;;  %v7470_v18 = vmul.f32 %v4678_v5, %v7086_v30 }
 0x1a8   :  { %9167 = vst [vmem:[#allocation62_spill] sm:$0xff] %v7452_v0  ;;  %9168 = vst [vmem:[#allocation10_spill] sm:$0xff] %v7458_v32  ;;  %v4679_v0 = vld [vmem:[%s8819_s0 + $0x1e0] sm:$0xff]  ;;  %v4680_v32 = vld [vmem:[%s8819_s0 + $0x1e8] sm:$0xff] }
 0x1a9   :  { %9169 = vst [vmem:[#allocation25_spill] sm:$0xff] %v7464_v11  ;;  %9170 = vst [vmem:[#allocation79_spill] sm:$0xff] %v7470_v18  ;;  %v7476_v55 = vmul.f32 %v4679_v0, %v7012_v2  ;;  %v7482_v62 = vmul.f32 %v4680_v32, %v7015_v47  ;;  %v4681_v11 = vld [vmem:[%s8819_s0 + $0x1f0] sm:$0xff]  ;;  %v4682_v18 = vld [vmem:[%s8819_s0 + $0x1f8] sm:$0xff] }
 0x1aa   :  { %v7488_v5 = vmul.f32 %v4681_v11, %v7018_v50  ;;  %v7494_v0 = vmul.f32 %v4682_v18, %v7024_v1 }
 0x1ab   :  { %9171 = vst [vmem:[#allocation63_spill] sm:$0xff] %v7476_v55  ;;  %9172 = vst [vmem:[#allocation11_spill] sm:$0xff] %v7482_v62  ;;  %v4683_v55 = vld [vmem:[%s8819_s0 + $0x200] sm:$0xff]  ;;  %v4684_v62 = vld [vmem:[%s8819_s0 + $0x208] sm:$0xff] }
 0x1ac   :  { %9173 = vst [vmem:[#allocation26_spill] sm:$0xff] %v7488_v5  ;;  %9174 = vst [vmem:[#allocation80_spill] sm:$0xff] %v7494_v0  ;;  %v7500_v32 = vmul.f32 %v4683_v55, %v7027_v19  ;;  %v7506_v11 = vmul.f32 %v4684_v62, %v7030_v53  ;;  %v4685_v5 = vld [vmem:[%s8819_s0 + $0x210] sm:$0xff]  ;;  %v4686_v0 = vld [vmem:[%s8819_s0 + $0x218] sm:$0xff] }
 0x1ad   :  { %v7512_v18 = vmul.f32 %v4685_v5, %v7033_v44  ;;  %v7518_v55 = vmul.f32 %v4686_v0, %v7037_v25 }
 0x1ae   :  { %9175 = vst [vmem:[#allocation64_spill] sm:$0xff] %v7500_v32  ;;  %9176 = vst [vmem:[#allocation12_spill] sm:$0xff] %v7506_v11  ;;  %v4687_v32 = vld [vmem:[%s8819_s0 + $0x220] sm:$0xff]  ;;  %v4688_v11 = vld [vmem:[%s8819_s0 + $0x228] sm:$0xff] }
 0x1af   :  { %9177 = vst [vmem:[#allocation27_spill] sm:$0xff] %v7512_v18  ;;  %9178 = vst [vmem:[#allocation65_spill] sm:$0xff] %v7518_v55  ;;  %v7524_v62 = vmul.f32 %v4687_v32, %v7068_v33  ;;  %v7530_v5 = vmul.f32 %v4688_v11, %v7071_v12  ;;  %v4689_v18 = vld [vmem:[%s8819_s0 + $0x230] sm:$0xff]  ;;  %v4690_v55 = vld [vmem:[%s8819_s0 + $0x238] sm:$0xff] }
 0x1b0   :  { %v7536_v0 = vmul.f32 %v4689_v18, %v7074_v24  ;;  %v7542_v32 = vmul.f32 %v4690_v55, %v7077_v51 }
 0x1b1   :  { %9179 = vst [vmem:[#allocation66_spill] sm:$0xff] %v7524_v62  ;;  %9180 = vst [vmem:[#allocation13_spill] sm:$0xff] %v7530_v5  ;;  %v4691_v62 = vld [vmem:[%s8819_s0 + $0x240] sm:$0xff]  ;;  %v4692_v5 = vld [vmem:[%s8819_s0 + $0x248] sm:$0xff] }
 0x1b2   :  { %9181 = vst [vmem:[#allocation29_spill] sm:$0xff] %v7536_v0  ;;  %9182 = vst [vmem:[#allocation67_spill] sm:$0xff] %v7542_v32  ;;  %v7548_v11 = vmul.f32 %v4691_v62, %v7080_v42  ;;  %v7554_v18 = vmul.f32 %v4692_v5, %v7083_v54  ;;  %v4693_v0 = vld [vmem:[%s8819_s0 + $0x250] sm:$0xff]  ;;  %v4694_v32 = vld [vmem:[%s8819_s0 + $0x258] sm:$0xff] }
 0x1b3   :  { %v7560_v55 = vmul.f32 %v4693_v0, %v7086_v30  ;;  %v7566_v62 = vmul.f32 %v4694_v32, %v7012_v2 }
 0x1b4   :  { %9183 = vst [vmem:[#allocation56_spill] sm:$0xff] %v7548_v11  ;;  %9184 = vst [vmem:[#allocation59_spill] sm:$0xff] %v7554_v18  ;;  %v4695_v11 = vld [vmem:[%s8819_s0 + $0x260] sm:$0xff]  ;;  %v4696_v18 = vld [vmem:[%s8819_s0 + $0x268] sm:$0xff] }
 0x1b5   :  { %9185 = vst [vmem:[#allocation60_spill] sm:$0xff] %v7560_v55  ;;  %9186 = vst [vmem:[#allocation61_spill] sm:$0xff] %v7566_v62  ;;  %v7572_v5 = vmul.f32 %v4695_v11, %v7015_v47  ;;  %v7578_v0 = vmul.f32 %v4696_v18, %v7018_v50  ;;  %v4697_v55 = vld [vmem:[%s8819_s0 + $0x270] sm:$0xff]  ;;  %v4698_v62 = vld [vmem:[%s8819_s0 + $0x278] sm:$0xff] }
 0x1b6   :  { %v7584_v32 = vmul.f32 %v4697_v55, %v7024_v1  ;;  %v7590_v11 = vmul.f32 %v4698_v62, %v7027_v19 }
 0x1b7   :  { %9187 = vst [vmem:[#allocation81_spill] sm:$0xff] %v7572_v5  ;;  %9188 = vst [vmem:[#allocation82_spill] sm:$0xff] %v7578_v0  ;;  %v4699_v5 = vld [vmem:[%s8819_s0 + $0x280] sm:$0xff]  ;;  %v4700_v0 = vld [vmem:[%s8819_s0 + $0x288] sm:$0xff] }
 0x1b8   :  { %9189 = vst [vmem:[#allocation83_spill] sm:$0xff] %v7584_v32  ;;  %9190 = vst [vmem:[#allocation85_spill] sm:$0xff] %v7590_v11  ;;  %v7596_v18 = vmul.f32 %v4699_v5, %v7030_v53  ;;  %v7602_v55 = vmul.f32 %v4700_v0, %v7033_v44  ;;  %v4701_v32 = vld [vmem:[%s8819_s0 + $0x290] sm:$0xff]  ;;  %v4702_v11 = vld [vmem:[%s8819_s0 + $0x298] sm:$0xff] }
 0x1b9   :  { %v7608_v62 = vmul.f32 %v4701_v32, %v7037_v25  ;;  %v7614_v5 = vmul.f32 %v4702_v11, %v7068_v33 }
 0x1ba   :  { %9191 = vst [vmem:[#allocation86_spill] sm:$0xff] %v7596_v18  ;;  %9192 = vst [vmem:[#allocation89_spill] sm:$0xff] %v7602_v55  ;;  %v4703_v18 = vld [vmem:[%s8819_s0 + $0x2a0] sm:$0xff]  ;;  %v4704_v55 = vld [vmem:[%s8819_s0 + $0x2a8] sm:$0xff] }
 0x1bb   :  { %9193 = vst [vmem:[#allocation90_spill] sm:$0xff] %v7608_v62  ;;  %9194 = vst [vmem:[#allocation14_spill] sm:$0xff] %v7614_v5  ;;  %v7620_v0 = vmul.f32 %v4703_v18, %v7071_v12  ;;  %v7626_v32 = vmul.f32 %v4704_v55, %v7074_v24  ;;  %v4705_v62 = vld [vmem:[%s8819_s0 + $0x2b0] sm:$0xff]  ;;  %v4706_v5 = vld [vmem:[%s8819_s0 + $0x2b8] sm:$0xff] }
 0x1bc   :  { %v7632_v11 = vmul.f32 %v4705_v62, %v7077_v51  ;;  %v7638_v18 = vmul.f32 %v4706_v5, %v7080_v42 }
 0x1bd   :  { %9195 = vst [vmem:[#allocation30_spill] sm:$0xff] %v7620_v0  ;;  %9196 = vst [vmem:[#allocation15_spill] sm:$0xff] %v7626_v32  ;;  %v4707_v0 = vld [vmem:[%s8819_s0 + $0x2c0] sm:$0xff]  ;;  %v4708_v32 = vld [vmem:[%s8819_s0 + $0x2c8] sm:$0xff] }
 0x1be   :  { %9197 = vst [vmem:[#allocation36_spill] sm:$0xff] %v7632_v11  ;;  %9198 = vst [vmem:[#allocation68_spill] sm:$0xff] %v7638_v18  ;;  %v7644_v55 = vmul.f32 %v4707_v0, %v7083_v54  ;;  %v7650_v62 = vmul.f32 %v4708_v32, %v7086_v30  ;;  %v4709_v11 = vld [vmem:[%s8819_s0 + $0x2d0] sm:$0x1]  ;;  %v4710_v18 = vld [vmem:[%s8819_s0 + $0x2d8] sm:$0x1] }
 0x1bf   :  { %v7656_v5 = vmul.f32 %v4709_v11, %v7012_v2  ;;  %v7662_v0 = vmul.f32 %v4710_v18, %v7015_v47  ;;  %v4713_v11 = vld [vmem:[%s8819_s0 + $0x2f0] sm:$0x1]  ;;  %v4714_v18 = vld [vmem:[%s8819_s0 + $0x2f8] sm:$0x1] }
 0x1c0   :  { %9199 = vst [vmem:[#allocation70_spill] sm:$0xff] %v7644_v55  ;;  %9200 = vst [vmem:[#allocation16_spill] sm:$0xff] %v7650_v62  ;;  %v4711_v55 = vld [vmem:[%s8819_s0 + $0x2e0] sm:$0x1]  ;;  %v4712_v62 = vld [vmem:[%s8819_s0 + $0x2e8] sm:$0x1]  ;;  %v7680_v47 = vmul.f32 %v4713_v11, %v7027_v19 }
 0x1c1   :  { %v7668_v32 = vmul.f32 %v4711_v55, %v7018_v50  ;;  %v7674_v2 = vmul.f32 %v4712_v62, %v7024_v1  ;;  %v7686_v50 = vmul.f32 %v4714_v18, %v7030_v53  ;;  %v4715_v55 = vld [vmem:[%s8819_s0 + $0x300] sm:$0x1]  ;;  %v4716_v62 = vld [vmem:[%s8819_s0 + $0x308] sm:$0x1]  ;;  %v4717_v11 = vld [vmem:[%s8819_s0 + $0x310] sm:$0x1] }
 0x1c2   :  { %v7692_v1 = vmul.f32 %v4715_v55, %v7033_v44  ;;  %v7698_v19 = vmul.f32 %v4716_v62, %v7037_v25  ;;  %v7704_v53 = vmul.f32 %v4717_v11, %v7068_v33  ;;  %v4718_v18 = vld [vmem:[%s8819_s0 + $0x318] sm:$0x1]  ;;  %v4719_v55 = vld [vmem:[%s8819_s0 + $0x320] sm:$0x1]  ;;  %v4720_v62 = vld [vmem:[%s8819_s0 + $0x328] sm:$0x1] }
 0x1c3   :  { %v7710_v44 = vmul.f32 %v4718_v18, %v7071_v12  ;;  %v7716_v25 = vmul.f32 %v4719_v55, %v7074_v24  ;;  %v7722_v33 = vmul.f32 %v4720_v62, %v7077_v51  ;;  %v4721_v11 = vld [vmem:[%s8819_s0 + $0x330] sm:$0x1]  ;;  %v4722_v18 = vld [vmem:[%s8819_s0 + $0x338] sm:$0x1]  ;;  %v4723_v55 = vld [vmem:[%s8819_s0 + $0x340] sm:$0x1]  ;;  %v7744_v62 = vrot.slane %v7198_v58, %v6987_v3 }
 0x1c4   :  { %v7728_v12 = vmul.f32 %v4721_v11, %v7080_v42  ;;  %v7734_v24 = vmul.f32 %v4722_v18, %v7083_v54  ;;  %v7740_v51 = vmul.f32 %v4723_v55, %v7086_v30  ;;  %v7748_v42 = vrot.slane %v7198_v58, %v6990_v52 }
 0x1c5   :  { %9201 = vst [vmem:[#allocation41_spill] sm:$0xff] %v7710_v44  ;;  %9202 = vst [vmem:[#allocation84_spill] sm:$0xff] %v7716_v25  ;;  %v7752_v11 = vrot.slane %v7198_v58, %v6994_v17  ;;  %v7756_v54 = vrot.slane %v7198_v58, %v6997_v40  ;;  %v7760_v30 = vrot.slane %v7198_v58, %v7000_v56 }
 0x1c6   :  { %9203 = vst [vmem:[#allocation17_spill] sm:$0xff] %v7722_v33  ;;  %9204 = vst [vmem:[#allocation45_spill] sm:$0xff] %v7728_v12  ;;  %v7764_v18 = vrot.slane %v7198_v58, %v7003_v45  ;;  %v7768_v55 = vrot.slane %v7198_v58, %v7006_v27  ;;  %v7777_v12 = vrot.slane %v7260_v23, %v6987_v3  ;;  %v9222_v3 = vld [vmem:[#allocation44_spill] sm:$0xff] }
 0x1c7   :  { %9205 = vst [vmem:[#allocation87_spill] sm:$0xff] %v7734_v24  ;;  %9206 = vst [vmem:[#allocation71_spill] sm:$0xff] %v7740_v51  ;;  %v9207_v51 = vsub.s32 7, %v6969_v43  ;;  %v7781_v33 = vrot.slane %v7260_v23, %v6990_v52  ;;  %v7785_v25 = vrot.slane %v7260_v23, %v6994_v17  ;;  %v7789_v44 = vrot.slane %v7260_v23, %v6997_v40  ;;  %v9220_v52 = vld [vmem:[#allocation43_spill] sm:$0xff] }
 0x1c8   :  { %v7793_v43 = vrot.slane %v7260_v23, %v7000_v56  ;;  %v7805_v17 = vadd.f32 %v7744_v62, %v7059_v31  ;;  %v7809_v40 = vadd.f32 %v7748_v42, %v7065_v59  ;;  %v7813_v56 = vadd.f32 %v7752_v11, %v7111_v57 }
 0x1c9   :  { %v7773_v24 = vrot.slane %v7198_v58, %v9207_v51  ;;  %v7797_v58 = vrot.slane %v7260_v23, %v7003_v45  ;;  %v7801_v51 = vrot.slane %v7260_v23, %v7006_v27  ;;  %v7817_v45 = vadd.f32 %v7756_v54, %v7118_v60 }
 0x1ca   :  { %v7821_v27 = vadd.f32 %v7760_v30, %v7126_v7  ;;  %v7825_v31 = vadd.f32 %v7764_v18, %v7132_v15  ;;  %v7829_v59 = vadd.f32 %v7768_v55, %v7140_v6  ;;  %v7837_v60 = vadd.f32 %v7777_v12, %v7155_v22 }
 0x1cb   :  { %v7833_v57 = vadd.f32 %v7773_v24, %v7146_v8  ;;  %v7841_v7 = vadd.f32 %v7781_v33, %v7161_v13  ;;  %v7845_v15 = vadd.f32 %v7785_v25, %v7167_v63  ;;  %v7849_v6 = vadd.f32 %v7789_v44, %v7173_v38 }
 0x1cc   :  { %v7853_v8 = vadd.f32 %v7793_v43, %v7179_v48  ;;  %v7857_v22 = vadd.f32 %v7797_v58, %v7187_v29  ;;  %v7861_v13 = vadd.f32 %v7801_v51, %v7193_v34  ;;  %v7865_v63 = vadd.f32 %v7744_v62, %v7204_v4 }
 0x1cd   :  { %9208 = vst [vmem:[#allocation18_spill] sm:$0xff] %v7849_v6  ;;  %v7869_v38 = vadd.f32 %v7748_v42, %v7210_v49  ;;  %v7873_v48 = vadd.f32 %v7752_v11, %v7216_v20  ;;  %v7877_v29 = vadd.f32 %v7756_v54, %v7222_v26  ;;  %v7881_v34 = vadd.f32 %v7760_v30, %v7228_v39 }
 0x1ce   :  { %9209 = vst [vmem:[#allocation46_spill] sm:$0xff] %v7853_v8  ;;  %9210 = vst [vmem:[#allocation72_spill] sm:$0xff] %v7857_v22  ;;  %v7885_v4 = vadd.f32 %v7764_v18, %v7234_v28  ;;  %v7889_v49 = vadd.f32 %v7768_v55, %v7240_v21  ;;  %v7893_v20 = vadd.f32 %v7773_v24, %v7246_v36 }
 0x1cf   :  { %9211 = vst [vmem:[#allocation19_spill] sm:$0xff] %v7861_v13  ;;  %v7897_v26 = vadd.f32 %v7777_v12, %v7252_v14  ;;  %v7901_v39 = vadd.f32 %v7781_v33, %v7258_v61  ;;  %v7905_v28 = vadd.f32 %v7785_v25, %v7266_v35  ;;  %v7909_v21 = vadd.f32 %v7789_v44, %v7272_v37  ;;  %v9218_v37 = vld [vmem:[#allocation42_spill] sm:$0xff] }
 0x1d0   :  { %v7913_v36 = vadd.f32 %v7793_v43, %v7278_v9  ;;  %v7917_v14 = vadd.f32 %v7797_v58, %v7284_v16  ;;  %v7921_v61 = vadd.f32 %v7801_v51, %v7290_v46  ;;  %v7925_v23 = vadd.f32 %v7744_v62, %v7296_v10 }
 0x1d1   :  { %9212 = vst [vmem:[#allocation52_spill] sm:$0xff] %v7909_v21  ;;  %v7929_v35 = vadd.f32 %v7748_v42, %v7302_v41  ;;  %v7933_v9 = vadd.f32 %v7752_v11, %v9218_v37  ;;  %v7937_v16 = vadd.f32 %v7756_v54, %v9220_v52  ;;  %v7941_v46 = vadd.f32 %v7760_v30, %v9222_v3 }
 0x1d2   :  { %9213 = vst [vmem:[#allocation28_spill] sm:$0xff] %v7913_v36  ;;  %9214 = vst [vmem:[#allocation73_spill] sm:$0xff] %v7917_v14 }
 0x1d3   :  { %9215 = vst [vmem:[#allocation88_spill] sm:$0xff] %v7921_v61  ;;  %9216 = vst [vmem:[#allocation77_spill] sm:$0xff] %v7925_v23  ;;  %v9224_v61 = vld [vmem:[#allocation47_spill] sm:$0xff]  ;;  %v9226_v23 = vld [vmem:[#allocation48_spill] sm:$0xff] }
 0x1d4   :  { %9217 = vst [vmem:[#allocation31_spill] sm:$0xff] %v7929_v35  ;;  %9219 = vst [vmem:[#allocation20_spill] sm:$0xff] %v7933_v9  ;;  %v7945_v10 = vadd.f32 %v7764_v18, %v9224_v61  ;;  %v7949_v41 = vadd.f32 %v7768_v55, %v9226_v23  ;;  %v9228_v35 = vld [vmem:[#allocation49_spill] sm:$0xff]  ;;  %v9230_v9 = vld [vmem:[#allocation50_spill] sm:$0xff] }
 0x1d5   :  { %9221 = vst [vmem:[#allocation53_spill] sm:$0xff] %v7937_v16  ;;  %9223 = vst [vmem:[#allocation78_spill] sm:$0xff] %v7941_v46  ;;  %v7953_v37 = vadd.f32 %v7773_v24, %v9228_v35  ;;  %v7957_v52 = vadd.f32 %v7777_v12, %v9230_v9  ;;  %v9232_v16 = vld [vmem:[#allocation51_spill] sm:$0xff]  ;;  %v9234_v46 = vld [vmem:[#allocation54_spill] sm:$0xff] }
 0x1d6   :  { %9225 = vst [vmem:[#allocation37_spill] sm:$0xff] %v7945_v10  ;;  %9227 = vst [vmem:[#allocation91_spill] sm:$0xff] %v7949_v41  ;;  %v7961_v3 = vadd.f32 %v7781_v33, %v9232_v16  ;;  %v7965_v61 = vadd.f32 %v7785_v25, %v9234_v46  ;;  %v9236_v10 = vld [vmem:[#allocation55_spill] sm:$0xff]  ;;  %v9238_v41 = vld [vmem:[#allocation69_spill] sm:$0xff] }
 0x1d7   :  { %9229 = vst [vmem:[#allocation92_spill] sm:$0xff] %v7953_v37  ;;  %9231 = vst [vmem:[#allocation93_spill] sm:$0xff] %v7957_v52  ;;  %v7969_v23 = vadd.f32 %v7789_v44, %v9236_v10  ;;  %v7973_v35 = vadd.f32 %v7793_v43, %v9238_v41  ;;  %v9240_v37 = vld [vmem:[#allocation74_spill] sm:$0xff]  ;;  %v9242_v52 = vld [vmem:[#allocation75_spill] sm:$0xff] }
 0x1d8   :  { %9233 = vst [vmem:[#allocation94_spill] sm:$0xff] %v7961_v3  ;;  %9235 = vst [vmem:[#allocation95_spill] sm:$0xff] %v7965_v61  ;;  %v7977_v9 = vadd.f32 %v7797_v58, %v9240_v37  ;;  %v7981_v16 = vadd.f32 %v7801_v51, %v9242_v52  ;;  %v9244_v3 = vld [vmem:[#allocation76_spill] sm:$0xff]  ;;  %v9246_v61 = vld [vmem:[#allocation6_spill] sm:$0xff] }
 0x1d9   :  { %9237 = vst [vmem:[#allocation96_spill] sm:$0xff] %v7969_v23  ;;  %9239 = vst [vmem:[#allocation97_spill] sm:$0xff] %v7973_v35  ;;  %v7985_v46 = vadd.f32 %v7744_v62, %v9244_v3  ;;  %v7989_v10 = vadd.f32 %v7748_v42, %v9246_v61  ;;  %v9248_v23 = vld [vmem:[#allocation21_spill] sm:$0xff]  ;;  %v9250_v35 = vld [vmem:[#allocation7_spill] sm:$0xff] }
 0x1da   :  { %9241 = vst [vmem:[#allocation32_spill] sm:$0xff] %v7977_v9  ;;  %9243 = vst [vmem:[#allocation98_spill] sm:$0xff] %v7981_v16  ;;  %v7993_v41 = vadd.f32 %v7752_v11, %v9248_v23  ;;  %v7997_v37 = vadd.f32 %v7756_v54, %v9250_v35  ;;  %v9252_v9 = vld [vmem:[#allocation22_spill] sm:$0xff]  ;;  %v9254_v16 = vld [vmem:[#allocation8_spill] sm:$0xff] }
 0x1db   :  { %9245 = vst [vmem:[#allocation33_spill] sm:$0xff] %v7985_v46  ;;  %9247 = vst [vmem:[#allocation99_spill] sm:$0xff] %v7989_v10  ;;  %v8001_v52 = vadd.f32 %v7760_v30, %v9252_v9  ;;  %v8005_v3 = vadd.f32 %v7764_v18, %v9254_v16  ;;  %v9256_v46 = vld [vmem:[#allocation23_spill] sm:$0xff]  ;;  %v9258_v10 = vld [vmem:[#allocation57_spill] sm:$0xff] }
 0x1dc   :  { %9249 = vst [vmem:[#allocation100_spill] sm:$0xff] %v7993_v41  ;;  %9251 = vst [vmem:[#allocation34_spill] sm:$0xff] %v7997_v37  ;;  %v8009_v61 = vadd.f32 %v7768_v55, %v9256_v46  ;;  %v8013_v23 = vadd.f32 %v7773_v24, %v9258_v10  ;;  %v9260_v41 = vld [vmem:[#allocation9_spill] sm:$0xff]  ;;  %v9262_v37 = vld [vmem:[#allocation24_spill] sm:$0xff] }
 0x1dd   :  { %9253 = vst [vmem:[#allocation101_spill] sm:$0xff] %v8001_v52  ;;  %9255 = vst [vmem:[#allocation35_spill] sm:$0xff] %v8005_v3  ;;  %v8017_v35 = vadd.f32 %v7777_v12, %v9260_v41  ;;  %v8021_v9 = vadd.f32 %v7781_v33, %v9262_v37  ;;  %v9264_v52 = vld [vmem:[#allocation58_spill] sm:$0xff] }
 0x1de   :  { %9257 = vst [vmem:[#allocation42_spill] sm:$0xff] %v8009_v61  ;;  %9259 = vst [vmem:[#allocation43_spill] sm:$0xff] %v8013_v23  ;;  %v8025_v16 = vadd.f32 %v7785_v25, %v9264_v52  ;;  %v9266_v3 = vld [vmem:[#allocation62_spill] sm:$0xff]  ;;  %v9270_v23 = vld [vmem:[#allocation25_spill] sm:$0xff] }
 0x1df   :  { %9261 = vst [vmem:[#allocation44_spill] sm:$0xff] %v8017_v35  ;;  %9263 = vst [vmem:[#allocation47_spill] sm:$0xff] %v8021_v9  ;;  %v8029_v46 = vadd.f32 %v7789_v44, %v9266_v3  ;;  %v9268_v61 = vld [vmem:[#allocation10_spill] sm:$0xff]  ;;  %v8037_v41 = vadd.f32 %v7797_v58, %v9270_v23  ;;  %v9272_v35 = vld [vmem:[#allocation79_spill] sm:$0xff] }
 0x1e0   :  { %9265 = vst [vmem:[#allocation48_spill] sm:$0xff] %v8025_v16  ;;  %v8033_v10 = vadd.f32 %v7793_v43, %v9268_v61  ;;  %v8041_v37 = vadd.f32 %v7801_v51, %v9272_v35  ;;  %v9274_v9 = vld [vmem:[#allocation63_spill] sm:$0xff] }
 0x1e1   :  { %9267 = vst [vmem:[#allocation49_spill] sm:$0xff] %v8029_v46  ;;  %9271 = vst [vmem:[#allocation51_spill] sm:$0xff] %v8037_v41  ;;  %v8045_v52 = vadd.f32 %v7744_v62, %v9274_v9  ;;  %v9276_v16 = vld [vmem:[#allocation11_spill] sm:$0xff]  ;;  %v9278_v46 = vld [vmem:[#allocation26_spill] sm:$0xff] }
 0x1e2   :  { %9269 = vst [vmem:[#allocation50_spill] sm:$0xff] %v8033_v10  ;;  %9273 = vst [vmem:[#allocation54_spill] sm:$0xff] %v8041_v37  ;;  %v8049_v3 = vadd.f32 %v7748_v42, %v9276_v16  ;;  %v8053_v61 = vadd.f32 %v7752_v11, %v9278_v46  ;;  %v9280_v10 = vld [vmem:[#allocation80_spill] sm:$0xff] }
 0x1e3   :  { %9275 = vst [vmem:[#allocation55_spill] sm:$0xff] %v8045_v52  ;;  %v8057_v23 = vadd.f32 %v7756_v54, %v9280_v10  ;;  %v9282_v41 = vld [vmem:[#allocation64_spill] sm:$0xff]  ;;  %v9286_v52 = vld [vmem:[#allocation27_spill] sm:$0xff] }
 0x1e4   :  { %9277 = vst [vmem:[#allocation69_spill] sm:$0xff] %v8049_v3  ;;  %9279 = vst [vmem:[#allocation74_spill] sm:$0xff] %v8053_v61  ;;  %v8061_v35 = vadd.f32 %v7760_v30, %v9282_v41  ;;  %v9284_v37 = vld [vmem:[#allocation12_spill] sm:$0xff]  ;;  %v8069_v16 = vadd.f32 %v7768_v55, %v9286_v52  ;;  %v9288_v3 = vld [vmem:[#allocation65_spill] sm:$0xff] }
 0x1e5   :  { %9281 = vst [vmem:[#allocation75_spill] sm:$0xff] %v8057_v23  ;;  %v8065_v9 = vadd.f32 %v7764_v18, %v9284_v37  ;;  %v8073_v46 = vadd.f32 %v7773_v24, %v9288_v3  ;;  %v9290_v61 = vld [vmem:[#allocation66_spill] sm:$0xff]  ;;  %v9292_v23 = vld [vmem:[#allocation13_spill] sm:$0xff] }
 0x1e6   :  { %9283 = vst [vmem:[#allocation76_spill] sm:$0xff] %v8061_v35  ;;  %9287 = vst [vmem:[#allocation21_spill] sm:$0xff] %v8069_v16  ;;  %v8077_v10 = vadd.f32 %v7777_v12, %v9290_v61  ;;  %v8081_v41 = vadd.f32 %v7781_v33, %v9292_v23  ;;  %v9294_v35 = vld [vmem:[#allocation29_spill] sm:$0xff]  ;;  %v9298_v16 = vld [vmem:[#allocation56_spill] sm:$0xff] }
 0x1e7   :  { %9285 = vst [vmem:[#allocation6_spill] sm:$0xff] %v8065_v9  ;;  %9289 = vst [vmem:[#allocation7_spill] sm:$0xff] %v8073_v46  ;;  %v8085_v37 = vadd.f32 %v7785_v25, %v9294_v35  ;;  %v9296_v9 = vld [vmem:[#allocation67_spill] sm:$0xff]  ;;  %v8093_v3 = vadd.f32 %v7793_v43, %v9298_v16 }
 0x1e8   :  { %9291 = vst [vmem:[#allocation22_spill] sm:$0xff] %v8077_v10  ;;  %9293 = vst [vmem:[#allocation8_spill] sm:$0xff] %v8081_v41  ;;  %v8089_v52 = vadd.f32 %v7789_v44, %v9296_v9  ;;  %v9300_v46 = vld [vmem:[#allocation59_spill] sm:$0xff]  ;;  %v9302_v10 = vld [vmem:[#allocation60_spill] sm:$0xff] }
 0x1e9   :  { %9295 = vst [vmem:[#allocation23_spill] sm:$0xff] %v8085_v37  ;;  %9299 = vst [vmem:[#allocation9_spill] sm:$0xff] %v8093_v3  ;;  %v8097_v61 = vadd.f32 %v7797_v58, %v9300_v46  ;;  %v8101_v23 = vadd.f32 %v7801_v51, %v9302_v10  ;;  %v9304_v41 = vld [vmem:[#allocation61_spill] sm:$0xff]  ;;  %v9310_v3 = vld [vmem:[#allocation83_spill] sm:$0xff] }
 0x1ea   :  { %9297 = vst [vmem:[#allocation57_spill] sm:$0xff] %v8089_v52  ;;  %v8105_v35 = vadd.f32 %v7744_v62, %v9304_v41  ;;  %v9306_v37 = vld [vmem:[#allocation81_spill] sm:$0xff]  ;;  %v9308_v52 = vld [vmem:[#allocation82_spill] sm:$0xff]  ;;  %v8117_v46 = vadd.f32 %v7756_v54, %v9310_v3 }
 0x1eb   :  { %9301 = vst [vmem:[#allocation24_spill] sm:$0xff] %v8097_v61  ;;  %9303 = vst [vmem:[#allocation58_spill] sm:$0xff] %v8101_v23  ;;  %v8109_v9 = vadd.f32 %v7748_v42, %v9306_v37  ;;  %v8113_v16 = vadd.f32 %v7752_v11, %v9308_v52  ;;  %v9312_v61 = vld [vmem:[#allocation85_spill] sm:$0xff]  ;;  %v9314_v23 = vld [vmem:[#allocation86_spill] sm:$0xff] }
 0x1ec   :  { %9305 = vst [vmem:[#allocation62_spill] sm:$0xff] %v8105_v35  ;;  %9311 = vst [vmem:[#allocation79_spill] sm:$0xff] %v8117_v46  ;;  %v8121_v10 = vadd.f32 %v7760_v30, %v9312_v61  ;;  %v8125_v41 = vadd.f32 %v7764_v18, %v9314_v23  ;;  %v9316_v35 = vld [vmem:[#allocation89_spill] sm:$0xff]  ;;  %v9322_v46 = vld [vmem:[#allocation30_spill] sm:$0xff] }
 0x1ed   :  { %9307 = vst [vmem:[#allocation10_spill] sm:$0xff] %v8109_v9  ;;  %9309 = vst [vmem:[#allocation25_spill] sm:$0xff] %v8113_v16  ;;  %v8129_v37 = vadd.f32 %v7768_v55, %v9316_v35  ;;  %v9318_v9 = vld [vmem:[#allocation90_spill] sm:$0xff]  ;;  %v8141_v61 = vadd.f32 %v7781_v33, %v9322_v46 }
 0x1ee   :  { %9313 = vst [vmem:[#allocation63_spill] sm:$0xff] %v8121_v10  ;;  %9315 = vst [vmem:[#allocation11_spill] sm:$0xff] %v8125_v41  ;;  %v8133_v52 = vadd.f32 %v7773_v24, %v9318_v9  ;;  %v9320_v16 = vld [vmem:[#allocation14_spill] sm:$0xff]  ;;  %v9323_v10 = vld [vmem:[#allocation15_spill] sm:$0xff] }
 0x1ef   :  { %9317 = vst [vmem:[#allocation26_spill] sm:$0xff] %v8129_v37  ;;  %v8137_v3 = vadd.f32 %v7777_v12, %v9320_v16  ;;  %v8145_v23 = vadd.f32 %v7785_v25, %v9323_v10  ;;  %v9324_v41 = vld [vmem:[#allocation36_spill] sm:$0xff]  ;;  %v8165_v10 = vadd.f32 %v7744_v62, %v7656_v5  ;;  %v8185_v5 = vadd.f32 %v7764_v18, %v7686_v50  ;;  %v9328_v62 = vld [vmem:[#allocation41_spill] sm:$0xff] }
 0x1f0   :  { %9319 = vst [vmem:[#allocation80_spill] sm:$0xff] %v8133_v52  ;;  %v8149_v35 = vadd.f32 %v7789_v44, %v9324_v41  ;;  %v9325_v37 = vld [vmem:[#allocation68_spill] sm:$0xff]  ;;  %v9326_v52 = vld [vmem:[#allocation70_spill] sm:$0xff]  ;;  %v8169_v41 = vadd.f32 %v7748_v42, %v7662_v0  ;;  %v8189_v0 = vadd.f32 %v7768_v55, %v7692_v1  ;;  %v3343_v55 = vmax.f32 %v8141_v61, 0.0 }
 0x1f1   :  { %9321 = vst [vmem:[#allocation64_spill] sm:$0xff] %v8137_v3  ;;  %v8153_v9 = vadd.f32 %v7793_v43, %v9325_v37  ;;  %v8157_v16 = vadd.f32 %v7797_v58, %v9326_v52  ;;  %v9327_v3 = vld [vmem:[#allocation16_spill] sm:$0xff]  ;;  %v8173_v37 = vadd.f32 %v7752_v11, %v7668_v32  ;;  %v8177_v52 = vadd.f32 %v7756_v54, %v7674_v2  ;;  %v9330_v11 = vld [vmem:[#allocation17_spill] sm:$0xff] }
 0x1f2   :  { %v8161_v46 = vadd.f32 %v7801_v51, %v9327_v3  ;;  %v8181_v3 = vadd.f32 %v7760_v30, %v7680_v47  ;;  %v8193_v32 = vadd.f32 %v7773_v24, %v7698_v19  ;;  %v8197_v2 = vadd.f32 %v7777_v12, %v7704_v53  ;;  %v9329_v42 = vld [vmem:[#allocation84_spill] sm:$0xff]  ;;  %v9331_v54 = vld [vmem:[#allocation45_spill] sm:$0xff]  ;;  %v9332_v24 = vld [vmem:[#allocation87_spill] sm:$0xff] }
 0x1f3   :  { %v8201_v47 = vadd.f32 %v7781_v33, %v9328_v62  ;;  %v8205_v50 = vadd.f32 %v7785_v25, %v9329_v42  ;;  %v8209_v1 = vadd.f32 %v7789_v44, %v9330_v11  ;;  %v8213_v19 = vadd.f32 %v7793_v43, %v9331_v54  ;;  %v9333_v12 = vld [vmem:[#allocation71_spill] sm:$0xff]  ;;  %v9378_v62 = vld [vmem:[#allocation24_spill] sm:$0xff]  ;;  %v9380_v43 = vld [vmem:[#allocation62_spill] sm:$0xff] }
 0x1f4   :  { %v8217_v53 = vadd.f32 %v7797_v58, %v9332_v24  ;;  %v8221_v33 = vadd.f32 %v7801_v51, %v9333_v12  ;;  %v3334_v44 = vmax.f32 %v9380_v43, 0.0  ;;  %v9381_v30 = vld [vmem:[#allocation10_spill] sm:$0xff]  ;;  %v9382_v13 = vld [vmem:[#allocation25_spill] sm:$0xff]  ;;  %v9383_v22 = vld [vmem:[#allocation79_spill] sm:$0xff]  ;;  %v3344_v43 = vmax.f32 %v8145_v23, 0.0 }
 0x1f5   :  { %v3335_v18 = vmax.f32 %v9381_v30, 0.0  ;;  %v3336_v58 = vmax.f32 %v9382_v13, 0.0  ;;  %v3337_v42 = vmax.f32 %v9383_v22, 0.0  ;;  %v9384_v8 = vld [vmem:[#allocation63_spill] sm:$0xff]  ;;  %v3345_v30 = vmax.f32 %v8149_v35, 0.0 }
 0x1f6   :  { %v3338_v51 = vmax.f32 %v9384_v8, 0.0  ;;  %v9385_v6 = vld [vmem:[#allocation11_spill] sm:$0xff]  ;;  %v9386_v21 = vld [vmem:[#allocation26_spill] sm:$0xff]  ;;  %v3346_v13 = vmax.f32 %v8153_v9, 0.0  ;;  %v3347_v22 = vmax.f32 %v8157_v16, 0.0  ;;  %v3348_v8 = vmax.f32 %v8161_v46, 0.0 }
 0x1f7   :  { %v3339_v11 = vmax.f32 %v9385_v6, 0.0  ;;  %v3340_v54 = vmax.f32 %v9386_v21, 0.0  ;;  %v9387_v36 = vld [vmem:[#allocation80_spill] sm:$0xff]  ;;  %v3349_v6 = vmax.f32 %v8165_v10, 0.0  ;;  %v3350_v21 = vmax.f32 %v8169_v41, 0.0 }
 0x1f8   :  { %v3341_v24 = vmax.f32 %v9387_v36, 0.0  ;;  %v9388_v14 = vld [vmem:[#allocation64_spill] sm:$0xff]  ;;  %v3351_v36 = vmax.f32 %v8173_v37, 0.0  ;;  %v3353_v61 = vmax.f32 %v8181_v3, 0.0  ;;  %v3354_v23 = vmax.f32 %v8185_v5, 0.0 }
 0x1f9   :  { %v3342_v12 = vmax.f32 %v9388_v14, 0.0  ;;  %v3352_v14 = vmax.f32 %v8177_v52, 0.0  ;;  %v3355_v35 = vmax.f32 %v8189_v0, 0.0  ;;  %v3356_v9 = vmax.f32 %v8193_v32, 0.0 }
 0x1fa   :  { %v3357_v16 = vmax.f32 %v8197_v2, 0.0  ;;  %v3358_v46 = vmax.f32 %v8201_v47, 0.0  ;;  %v3359_v10 = vmax.f32 %v8205_v50, 0.0  ;;  %v3360_v41 = vmax.f32 %v8209_v1, 0.0 }
 0x1fb   :  { %v3361_v37 = vmax.f32 %v8213_v19, 0.0  ;;  %v3362_v52 = vmax.f32 %v8217_v53, 0.0  ;;  %v3363_v3 = vmax.f32 %v8221_v33, 0.0  ;;  %v9389_v5 = vmax.f32 %v7805_v17, 0.0 }
 0x1fc   :  { %v9390_v0 = vmax.f32 %v7865_v63, 0.0  ;;  %v9391_v32 = vmax.f32 %v7809_v40, 0.0  ;;  %v9392_v2 = vmax.f32 %v7869_v38, 0.0  ;;  %v9393_v50 = vmax.f32 %v7813_v56, 0.0 }
 0x1fd   :  { %v9394_v1 = vmax.f32 %v7873_v48, 0.0  ;;  %v9395_v53 = vmax.f32 %v7817_v45, 0.0  ;;  %v9396_v33 = vmax.f32 %v7877_v29, 0.0  ;;  %v9397_v63 = vmax.f32 %v7821_v27, 0.0 }
 0x1fe   :  { %v8332_v25 = vpack.c.bf16 %v9390_v0, %v9389_v5  ;;  %v3365_v47 = vpack.c.bf16 %v9392_v2, %v9391_v32  ;;  %v9398_v5 = vmax.f32 %v7881_v34, 0.0  ;;  %v9400_v38 = vmax.f32 %v7825_v31, 0.0 }
 0x1ff   :  { %v8342_v19 = vpack.c.bf16 %v9394_v1, %v9393_v50  ;;  %v8348_v17 = vpack.c.bf16 %v9396_v33, %v9395_v53  ;;  %v9401_v56 = vmax.f32 %v7885_v4, 0.0  ;;  %v9403_v48 = vmax.f32 %v7829_v59, 0.0 }
 0x200   :  { %v8354_v40 = vpack.c.bf16 %v9398_v5, %v9397_v63  ;;  %v9404_v45 = vmax.f32 %v7889_v49, 0.0  ;;  %v9406_v29 = vmax.f32 %v7833_v57, 0.0  ;;  %v9407_v27 = vmax.f32 %v7893_v20, 0.0  ;;  %v9415_v20 = vld [vmem:[#allocation18_spill] sm:$0xff]  ;;  %v9417_v63 = vld [vmem:[#allocation52_spill] sm:$0xff] }
 0x201   :  { %v8360_v0 = vpack.c.bf16 %v9401_v56, %v9400_v38  ;;  %v9409_v34 = vmax.f32 %v7837_v60, 0.0  ;;  %v9410_v31 = vmax.f32 %v7897_v26, 0.0  ;;  %v9411_v4 = vmax.f32 %v7841_v7, 0.0  ;;  %v9419_v26 = vld [vmem:[#allocation46_spill] sm:$0xff]  ;;  %v9421_v56 = vld [vmem:[#allocation28_spill] sm:$0xff] }
 0x202   :  { %9399 = vst [vmem:[#allocation12_spill] sm:$0xff] %v8354_v40  ;;  %v8366_v32 = vpack.c.bf16 %v9404_v45, %v9403_v48  ;;  %v8372_v2 = vpack.c.bf16 %v9407_v27, %v9406_v29  ;;  %v9412_v59 = vmax.f32 %v7901_v39, 0.0  ;;  %v9413_v49 = vmax.f32 %v7845_v15, 0.0  ;;  %v9424_v39 = vld [vmem:[#allocation72_spill] sm:$0xff]  ;;  %v9426_v29 = vld [vmem:[#allocation73_spill] sm:$0xff] }
 0x203   :  { %9402 = vst [vmem:[#allocation27_spill] sm:$0xff] %v8360_v0  ;;  %v8378_v50 = vpack.c.bf16 %v9410_v31, %v9409_v34  ;;  %v9414_v53 = vmax.f32 %v7905_v28, 0.0  ;;  %v9416_v33 = vmax.f32 %v9415_v20, 0.0  ;;  %v9418_v5 = vmax.f32 %v9417_v63, 0.0  ;;  %v9429_v28 = vld [vmem:[#allocation19_spill] sm:$0xff]  ;;  %v9431_v31 = vld [vmem:[#allocation88_spill] sm:$0xff] }
 0x204   :  { %9405 = vst [vmem:[#allocation65_spill] sm:$0xff] %v8366_v32  ;;  %9408 = vst [vmem:[#allocation66_spill] sm:$0xff] %v8372_v2  ;;  %v3373_v1 = vpack.c.bf16 %v9412_v59, %v9411_v4  ;;  %v9420_v38 = vmax.f32 %v9419_v26, 0.0  ;;  %v9422_v48 = vmax.f32 %v9421_v56, 0.0  ;;  %v9425_v45 = vmax.f32 %v9424_v39, 0.0  ;;  %v9436_v20 = vld [vmem:[#allocation33_spill] sm:$0xff] }
 0x205   :  { %v8388_v57 = vpack.c.bf16 %v9414_v53, %v9413_v49  ;;  %v8394_v60 = vpack.c.bf16 %v9418_v5, %v9416_v33  ;;  %v9427_v15 = vmax.f32 %v9426_v29, 0.0  ;;  %v9430_v34 = vmax.f32 %v9429_v28, 0.0  ;;  %v9434_v49 = vld [vmem:[#allocation77_spill] sm:$0xff]  ;;  %v9438_v5 = vld [vmem:[#allocation31_spill] sm:$0xff]  ;;  %v9442_v39 = vld [vmem:[#allocation20_spill] sm:$0xff] }
 0x206   :  { %v8400_v7 = vpack.c.bf16 %v9422_v48, %v9420_v38  ;;  %v9432_v4 = vmax.f32 %v9431_v31, 0.0  ;;  %v9435_v53 = vmax.f32 %v9434_v49, 0.0  ;;  %v9437_v33 = vmax.f32 %v9436_v20, 0.0  ;;  %v9440_v38 = vld [vmem:[#allocation99_spill] sm:$0xff]  ;;  %v9444_v29 = vld [vmem:[#allocation100_spill] sm:$0xff] }
 0x207   :  { %v8406_v27 = vpack.c.bf16 %v9427_v15, %v9425_v45  ;;  %v9439_v26 = vmax.f32 %v9438_v5, 0.0  ;;  %v9441_v56 = vmax.f32 %v9440_v38, 0.0  ;;  %v9443_v45 = vmax.f32 %v9442_v39, 0.0 }
 0x208   :  { %9423 = vst [vmem:[#allocation13_spill] sm:$0xff] %v8400_v7  ;;  %v8412_v59 = vpack.c.bf16 %v9432_v4, %v9430_v34  ;;  %v8418_v63 = vpack.c.bf16 %v9437_v33, %v9435_v53  ;;  %v9445_v15 = vmax.f32 %v9444_v29, 0.0  ;;  %v9447_v34 = vld [vmem:[#allocation53_spill] sm:$0xff]  ;;  %v9449_v4 = vld [vmem:[#allocation34_spill] sm:$0xff] }
 0x209   :  { %9428 = vst [vmem:[#allocation29_spill] sm:$0xff] %v8406_v27  ;;  %v8424_v48 = vpack.c.bf16 %v9441_v56, %v9439_v26  ;;  %v9448_v31 = vmax.f32 %v9447_v34, 0.0  ;;  %v9450_v49 = vmax.f32 %v9449_v4, 0.0  ;;  %v9451_v53 = vld [vmem:[#allocation78_spill] sm:$0xff]  ;;  %v9453_v33 = vld [vmem:[#allocation101_spill] sm:$0xff]  ;;  %v9458_v56 = vld [vmem:[#allocation35_spill] sm:$0xff] }
 0x20a   :  { %9433 = vst [vmem:[#allocation67_spill] sm:$0xff] %v8412_v59  ;;  %v8430_v28 = vpack.c.bf16 %v9445_v15, %v9443_v45  ;;  %v9452_v20 = vmax.f32 %v9451_v53, 0.0  ;;  %v9454_v5 = vmax.f32 %v9453_v33, 0.0  ;;  %v9456_v26 = vld [vmem:[#allocation37_spill] sm:$0xff]  ;;  %v9459_v39 = vmax.f32 %v9458_v56, 0.0  ;;  %v9461_v45 = vld [vmem:[#allocation91_spill] sm:$0xff] }
 0x20b   :  { %v8436_v32 = vpack.c.bf16 %v9450_v49, %v9448_v31  ;;  %v9457_v38 = vmax.f32 %v9456_v26, 0.0  ;;  %v9462_v29 = vmax.f32 %v9461_v45, 0.0  ;;  %v9463_v15 = vld [vmem:[#allocation42_spill] sm:$0xff]  ;;  %v9466_v31 = vld [vmem:[#allocation92_spill] sm:$0xff]  ;;  %v9468_v49 = vld [vmem:[#allocation43_spill] sm:$0xff] }
 0x20c   :  { %9446 = vst [vmem:[#allocation56_spill] sm:$0xff] %v8430_v28  ;;  %v8442_v59 = vpack.c.bf16 %v9454_v5, %v9452_v20  ;;  %v9464_v34 = vmax.f32 %v9463_v15, 0.0  ;;  %v9467_v4 = vmax.f32 %v9466_v31, 0.0  ;;  %v9469_v53 = vmax.f32 %v9468_v49, 0.0  ;;  %v9471_v20 = vld [vmem:[#allocation93_spill] sm:$0xff]  ;;  %v9473_v5 = vld [vmem:[#allocation44_spill] sm:$0xff] }
 0x20d   :  { %v8448_v2 = vpack.c.bf16 %v9459_v39, %v9457_v38  ;;  %v9472_v33 = vmax.f32 %v9471_v20, 0.0  ;;  %v9474_v26 = vmax.f32 %v9473_v5, 0.0  ;;  %v9475_v38 = vld [vmem:[#allocation94_spill] sm:$0xff]  ;;  %v9477_v39 = vld [vmem:[#allocation47_spill] sm:$0xff] }
 0x20e   :  { %9455 = vst [vmem:[#allocation59_spill] sm:$0xff] %v8442_v59  ;;  %v8454_v40 = vpack.c.bf16 %v9464_v34, %v9462_v29  ;;  %v8460_v7 = vpack.c.bf16 %v9469_v53, %v9467_v4  ;;  %v9476_v56 = vmax.f32 %v9475_v38, 0.0  ;;  %v9478_v45 = vmax.f32 %v9477_v39, 0.0  ;;  %v9479_v29 = vld [vmem:[#allocation95_spill] sm:$0xff]  ;;  %v9481_v34 = vld [vmem:[#allocation48_spill] sm:$0xff]  ;;  %v9485_v53 = vld [vmem:[#allocation49_spill] sm:$0xff] }
 0x20f   :  { %9460 = vst [vmem:[#allocation60_spill] sm:$0xff] %v8448_v2  ;;  %v8466_v59 = vpack.c.bf16 %v9474_v26, %v9472_v33  ;;  %v9480_v15 = vmax.f32 %v9479_v29, 0.0  ;;  %v9482_v31 = vmax.f32 %v9481_v34, 0.0  ;;  %v9483_v4 = vld [vmem:[#allocation96_spill] sm:$0xff]  ;;  %v9486_v20 = vmax.f32 %v9485_v53, 0.0  ;;  %v9487_v33 = vld [vmem:[#allocation97_spill] sm:$0xff] }
 0x210   :  { %9465 = vst [vmem:[#allocation61_spill] sm:$0xff] %v8454_v40  ;;  %9470 = vst [vmem:[#allocation81_spill] sm:$0xff] %v8460_v7  ;;  %v8472_v2 = vpack.c.bf16 %v9478_v45, %v9476_v56  ;;  %v9484_v49 = vmax.f32 %v9483_v4, 0.0  ;;  %v9488_v5 = vmax.f32 %v9487_v33, 0.0  ;;  %v9489_v26 = vld [vmem:[#allocation50_spill] sm:$0xff]  ;;  %v9492_v56 = vld [vmem:[#allocation32_spill] sm:$0xff] }
 0x211   :  { %v8478_v40 = vpack.c.bf16 %v9482_v31, %v9480_v15  ;;  %v9490_v38 = vmax.f32 %v9489_v26, 0.0  ;;  %v9493_v39 = vmax.f32 %v9492_v56, 0.0  ;;  %v9494_v45 = vld [vmem:[#allocation51_spill] sm:$0xff]  ;;  %v9496_v15 = vld [vmem:[#allocation98_spill] sm:$0xff]  ;;  %v9502_v33 = vld [vmem:[#allocation69_spill] sm:$0xff] }
 0x212   :  { %v8484_v7 = vpack.c.bf16 %v9486_v20, %v9484_v49  ;;  %v9495_v29 = vmax.f32 %v9494_v45, 0.0  ;;  %v9497_v34 = vmax.f32 %v9496_v15, 0.0  ;;  %v9498_v31 = vld [vmem:[#allocation54_spill] sm:$0xff]  ;;  %v9500_v49 = vld [vmem:[#allocation55_spill] sm:$0xff]  ;;  %v9503_v26 = vmax.f32 %v9502_v33, 0.0  ;;  %v9508_v15 = vld [vmem:[#allocation76_spill] sm:$0xff] }
 0x213   :  { %v8490_v0 = vpack.c.bf16 %v9490_v38, %v9488_v5  ;;  %v9499_v4 = vmax.f32 %v9498_v31, 0.0  ;;  %v9501_v53 = vmax.f32 %v9500_v49, 0.0  ;;  %v9504_v38 = vld [vmem:[#allocation74_spill] sm:$0xff]  ;;  %v9509_v31 = vmax.f32 %v9508_v15, 0.0 }
 0x214   :  { %v8496_v27 = vpack.c.bf16 %v9495_v29, %v9493_v39  ;;  %v8510_v5 = vpack.c.bf16 %v3335_v18, %v9503_v26  ;;  %v9505_v56 = vmax.f32 %v9504_v38, 0.0  ;;  %v9506_v39 = vld [vmem:[#allocation75_spill] sm:$0xff] }
 0x215   :  { %9491 = vst [vmem:[#allocation82_spill] sm:$0xff] %v8490_v0  ;;  %v8502_v28 = vpack.c.bf16 %v9499_v4, %v9497_v34  ;;  %v8506_v20 = vpack.c.bf16 %v3334_v44, %v9501_v53  ;;  %v9507_v45 = vmax.f32 %v9506_v39, 0.0  ;;  %v8522_v34 = vpack.c.bf16 %v3338_v51, %v9509_v31  ;;  %v9510_v4 = vld [vmem:[#allocation6_spill] sm:$0xff]  ;;  %v9512_v53 = vld [vmem:[#allocation21_spill] sm:$0xff]  ;;  %v9514_v26 = vld [vmem:[#allocation7_spill] sm:$0xff] }
 0x216   :  { %v8514_v0 = vpack.c.bf16 %v3336_v58, %v9505_v56  ;;  %v9511_v49 = vmax.f32 %v9510_v4, 0.0  ;;  %v9513_v33 = vmax.f32 %v9512_v53, 0.0  ;;  %v9515_v38 = vmax.f32 %v9514_v26, 0.0  ;;  %v9516_v56 = vld [vmem:[#allocation22_spill] sm:$0xff]  ;;  %v9520_v31 = vld [vmem:[#allocation23_spill] sm:$0xff] }
 0x217   :  { %v8518_v29 = vpack.c.bf16 %v3337_v42, %v9507_v45  ;;  %v9517_v39 = vmax.f32 %v9516_v56, 0.0  ;;  %v9518_v45 = vld [vmem:[#allocation8_spill] sm:$0xff]  ;;  %v9521_v4 = vmax.f32 %v9520_v31, 0.0  ;;  %v9527_v56 = vld [vmem:[#allocation58_spill] sm:$0xff]  ;;  %v8572_v31 = vpack.c.bf16 %v3353_v61, %v3353_v61 }
 0x218   :  { %v8526_v44 = vpack.c.bf16 %v3339_v11, %v9511_v49  ;;  %v8530_v18 = vpack.c.bf16 %v3340_v54, %v9513_v33  ;;  %v8534_v58 = vpack.c.bf16 %v3341_v24, %v9515_v38  ;;  %v9519_v15 = vmax.f32 %v9518_v45, 0.0  ;;  %v9522_v49 = vld [vmem:[#allocation57_spill] sm:$0xff] }
 0x219   :  { %v8538_v42 = vpack.c.bf16 %v3342_v12, %v9517_v39  ;;  %v8546_v11 = vpack.c.bf16 %v3344_v43, %v9521_v4  ;;  %v9523_v53 = vmax.f32 %v9522_v49, 0.0  ;;  %v9524_v33 = vld [vmem:[#allocation9_spill] sm:$0xff]  ;;  %v9526_v38 = vmax.f32 %v9378_v62, 0.0 }
 0x21a   :  { %v8542_v51 = vpack.c.bf16 %v3343_v55, %v9519_v15  ;;  %v9525_v26 = vmax.f32 %v9524_v33, 0.0  ;;  %v9528_v39 = vmax.f32 %v9527_v56, 0.0  ;;  %v8564_v45 = vpack.c.bf16 %v3349_v6, %v3349_v6 }
 0x21b   :  { %v8550_v54 = vpack.c.bf16 %v3345_v30, %v9523_v53  ;;  %v8558_v12 = vpack.c.bf16 %v3347_v22, %v9526_v38  ;;  %v8566_v43 = vpack.c.bf16 %v3350_v21, %v3350_v21  ;;  %v8568_v15 = vpack.c.bf16 %v3351_v36, %v3351_v36 }
 0x21c   :  { %v8554_v24 = vpack.c.bf16 %v3346_v13, %v9525_v26  ;;  %v8562_v55 = vpack.c.bf16 %v3348_v8, %v9528_v39  ;;  %v8570_v30 = vpack.c.bf16 %v3352_v14, %v3352_v14  ;;  %v8574_v13 = vpack.c.bf16 %v3354_v23, %v3354_v23 }
 0x21d   :  { %v8576_v4 = vpack.c.bf16 %v3355_v35, %v3355_v35  ;;  %v8578_v62 = vpack.c.bf16 %v3356_v9, %v3356_v9  ;;  %v8580_v22 = vpack.c.bf16 %v3357_v16, %v3357_v16  ;;  %v8582_v8 = vpack.c.bf16 %v3358_v46, %v3358_v46 }
 0x21e   :  { %v8584_v6 = vpack.c.bf16 %v3359_v10, %v3359_v10  ;;  %v8586_v21 = vpack.c.bf16 %v3360_v41, %v3360_v41  ;;  %v8588_v36 = vpack.c.bf16 %v3361_v37, %v3361_v37  ;;  %v8590_v14 = vpack.c.bf16 %v3362_v52, %v3362_v52 }
 0x21f   :  { %v8592_v61 = vpack.c.bf16 %v3363_v3, %v3363_v3 }
 0x220   :  { %4728 = dma.done.wait [#allocation3], 29952 }
 0x221   :  { %4729 = vsyncadd [#allocation3], 4294937344  ;;  %3706 = vmatprep.mubr.bf16.mxu1 %v3365_v47  ;;  %3990 = vmatprep.mubr.bf16.mxu0 %v3373_v1  ;;  %v3429_v23 = vld [vmem:[#allocation2 + $0x8] sm:$0xff]  ;;  %v3428_v9 = vld [vmem:[#allocation2] sm:$0xff]  ;;  %vm4258_vm3 = vcmask 523264   ;;  %vm4270_vm4 = vcmask 516096  }
 0x222   :  { %v3557_v35 = vld [vmem:[#allocation2 + $0x408] sm:$0xff]  ;;  %3674 = vmatprep.subr.bf16.mxu1 %v3429_v23  ;;  %v3556_v16 = vld [vmem:[#allocation2 + $0x400] sm:$0xff]  ;;  %v3431_v46 = vld [vmem:[#allocation2 + $0x18] sm:$0xff] }
 0x223   :  { %3958 = vmatprep.subr.bf16.mxu0 %v3557_v35  ;;  %v3559_v10 = vld [vmem:[#allocation2 + $0x418] sm:$0xff]  ;;  %3675 = vmatpush1.bf16.msra.mxu1 %v3428_v9  ;;  %v3430_v41 = vld [vmem:[#allocation2 + $0x10] sm:$0xff]  ;;  %v3433_v52 = vld [vmem:[#allocation2 + $0x28] sm:$0xff] }
 0x224   :  { %3959 = vmatpush1.bf16.msra.mxu0 %v3556_v16  ;;  %3676 = vmatprep.subr.bf16.mxu1 %v3431_v46  ;;  %v3558_v37 = vld [vmem:[#allocation2 + $0x410] sm:$0xff]  ;;  %v3561_v3 = vld [vmem:[#allocation2 + $0x428] sm:$0xff]  ;;  %v3432_v47 = vld [vmem:[#allocation2 + $0x20] sm:$0xff] }
 0x225   :  { %3960 = vmatprep.subr.bf16.mxu0 %v3559_v10  ;;  %v3560_v1 = vld [vmem:[#allocation2 + $0x420] sm:$0xff]  ;;  %v3435_v49 = vld [vmem:[#allocation2 + $0x38] sm:$0xff]  ;;  %v3434_v33 = vld [vmem:[#allocation2 + $0x30] sm:$0xff] }
 0x226   :  { %v3563_v53 = vld [vmem:[#allocation2 + $0x438] sm:$0xff]  ;;  %v3562_v26 = vld [vmem:[#allocation2 + $0x430] sm:$0xff]  ;;  %v3437_v38 = vld [vmem:[#allocation2 + $0x48] sm:$0xff] }
 0x227   :  { %3677 = vmatpush1.bf16.msra.mxu1 %v3430_v41  ;;  %v3565_v56 = vld [vmem:[#allocation2 + $0x448] sm:$0xff]  ;;  %v3436_v39 = vld [vmem:[#allocation2 + $0x40] sm:$0xff]  ;;  %v3439_v35 = vld [vmem:[#allocation2 + $0x58] sm:$0xff] }
 0x228   :  { %3961 = vmatpush1.bf16.msra.mxu0 %v3558_v37  ;;  %3678 = vmatprep.subr.bf16.mxu1 %v3433_v52  ;;  %v3564_v23 = vld [vmem:[#allocation2 + $0x440] sm:$0xff]  ;;  %v3567_v9 = vld [vmem:[#allocation2 + $0x458] sm:$0xff]  ;;  %v3438_v16 = vld [vmem:[#allocation2 + $0x50] sm:$0xff] }
 0x229   :  { %3962 = vmatprep.subr.bf16.mxu0 %v3561_v3  ;;  %v3566_v46 = vld [vmem:[#allocation2 + $0x450] sm:$0xff]  ;;  %v3441_v10 = vld [vmem:[#allocation2 + $0x68] sm:$0xff]  ;;  %v3440_v37 = vld [vmem:[#allocation2 + $0x60] sm:$0xff] }
 0x22a   :  { %v3569_v41 = vld [vmem:[#allocation2 + $0x468] sm:$0xff]  ;;  %v3568_v52 = vld [vmem:[#allocation2 + $0x460] sm:$0xff]  ;;  %v3443_v3 = vld [vmem:[#allocation2 + $0x78] sm:$0xff] }
 0x22b   :  { %3679 = vmatpush1.bf16.msra.mxu1 %v3432_v47  ;;  %v3571_v47 = vld [vmem:[#allocation2 + $0x478] sm:$0xff] }
 0x22c   :  { %3963 = vmatpush1.bf16.msra.mxu0 %v3560_v1  ;;  %3680 = vmatprep.subr.bf16.mxu1 %v3435_v49  ;;  %v3442_v1 = vld [vmem:[#allocation2 + $0x70] sm:$0xff] }
 0x22d   :  { %3964 = vmatprep.subr.bf16.mxu0 %v3563_v53  ;;  %v3570_v49 = vld [vmem:[#allocation2 + $0x470] sm:$0xff]  ;;  %v3445_v53 = vld [vmem:[#allocation2 + $0x88] sm:$0xff] }
 0x22f   :  { %3681 = vmatpush1.bf16.msra.mxu1 %v3434_v33  ;;  %v3573_v33 = vld [vmem:[#allocation2 + $0x488] sm:$0xff] }
 0x230   :  { %3965 = vmatpush1.bf16.msra.mxu0 %v3562_v26  ;;  %3682 = vmatprep.subr.bf16.mxu1 %v3437_v38  ;;  %v3444_v26 = vld [vmem:[#allocation2 + $0x80] sm:$0xff] }
 0x231   :  { %3966 = vmatprep.subr.bf16.mxu0 %v3565_v56  ;;  %v3572_v38 = vld [vmem:[#allocation2 + $0x480] sm:$0xff]  ;;  %v3447_v56 = vld [vmem:[#allocation2 + $0x98] sm:$0xff] }
 0x233   :  { %3683 = vmatpush1.bf16.msra.mxu1 %v3436_v39  ;;  %v3575_v39 = vld [vmem:[#allocation2 + $0x498] sm:$0xff] }
 0x234   :  { %3967 = vmatpush1.bf16.msra.mxu0 %v3564_v23  ;;  %3684 = vmatprep.subr.bf16.mxu1 %v3439_v35  ;;  %v3446_v23 = vld [vmem:[#allocation2 + $0x90] sm:$0xff] }
 0x235   :  { %3968 = vmatprep.subr.bf16.mxu0 %v3567_v9  ;;  %v3574_v35 = vld [vmem:[#allocation2 + $0x490] sm:$0xff]  ;;  %v3449_v9 = vld [vmem:[#allocation2 + $0xa8] sm:$0xff] }
 0x237   :  { %3685 = vmatpush1.bf16.msra.mxu1 %v3438_v16  ;;  %v3577_v16 = vld [vmem:[#allocation2 + $0x4a8] sm:$0xff] }
 0x238   :  { %3969 = vmatpush1.bf16.msra.mxu0 %v3566_v46  ;;  %3686 = vmatprep.subr.bf16.mxu1 %v3441_v10  ;;  %v3448_v46 = vld [vmem:[#allocation2 + $0xa0] sm:$0xff] }
 0x239   :  { %3970 = vmatprep.subr.bf16.mxu0 %v3569_v41  ;;  %v3576_v10 = vld [vmem:[#allocation2 + $0x4a0] sm:$0xff]  ;;  %v3451_v41 = vld [vmem:[#allocation2 + $0xb8] sm:$0xff] }
 0x23b   :  { %3687 = vmatpush1.bf16.msra.mxu1 %v3440_v37  ;;  %v3579_v37 = vld [vmem:[#allocation2 + $0x4b8] sm:$0xff] }
 0x23c   :  { %3971 = vmatpush1.bf16.msra.mxu0 %v3568_v52  ;;  %3688 = vmatprep.subr.bf16.mxu1 %v3443_v3  ;;  %v3450_v52 = vld [vmem:[#allocation2 + $0xb0] sm:$0xff] }
 0x23d   :  { %3972 = vmatprep.subr.bf16.mxu0 %v3571_v47  ;;  %v3578_v3 = vld [vmem:[#allocation2 + $0x4b0] sm:$0xff]  ;;  %v3453_v47 = vld [vmem:[#allocation2 + $0xc8] sm:$0xff] }
 0x23f   :  { %3689 = vmatpush1.bf16.msra.mxu1 %v3442_v1  ;;  %v3581_v1 = vld [vmem:[#allocation2 + $0x4c8] sm:$0xff] }
 0x240   :  { %3973 = vmatpush1.bf16.msra.mxu0 %v3570_v49  ;;  %3690 = vmatprep.subr.bf16.mxu1 %v3445_v53  ;;  %v3452_v49 = vld [vmem:[#allocation2 + $0xc0] sm:$0xff] }
 0x241   :  { %3974 = vmatprep.subr.bf16.mxu0 %v3573_v33  ;;  %v3580_v53 = vld [vmem:[#allocation2 + $0x4c0] sm:$0xff]  ;;  %v3455_v33 = vld [vmem:[#allocation2 + $0xd8] sm:$0xff] }
 0x243   :  { %3691 = vmatpush1.bf16.msra.mxu1 %v3444_v26  ;;  %v3583_v26 = vld [vmem:[#allocation2 + $0x4d8] sm:$0xff] }
 0x244   :  { %3975 = vmatpush1.bf16.msra.mxu0 %v3572_v38  ;;  %3692 = vmatprep.subr.bf16.mxu1 %v3447_v56  ;;  %v3454_v38 = vld [vmem:[#allocation2 + $0xd0] sm:$0xff] }
 0x245   :  { %3976 = vmatprep.subr.bf16.mxu0 %v3575_v39  ;;  %v3582_v56 = vld [vmem:[#allocation2 + $0x4d0] sm:$0xff]  ;;  %v3457_v39 = vld [vmem:[#allocation2 + $0xe8] sm:$0xff] }
 0x247   :  { %3693 = vmatpush1.bf16.msra.mxu1 %v3446_v23  ;;  %v3585_v23 = vld [vmem:[#allocation2 + $0x4e8] sm:$0xff] }
 0x248   :  { %3977 = vmatpush1.bf16.msra.mxu0 %v3574_v35  ;;  %3694 = vmatprep.subr.bf16.mxu1 %v3449_v9  ;;  %v3456_v35 = vld [vmem:[#allocation2 + $0xe0] sm:$0xff] }
 0x249   :  { %3978 = vmatprep.subr.bf16.mxu0 %v3577_v16  ;;  %v3584_v9 = vld [vmem:[#allocation2 + $0x4e0] sm:$0xff]  ;;  %v3459_v16 = vld [vmem:[#allocation2 + $0xf8] sm:$0xff] }
 0x24b   :  { %3695 = vmatpush1.bf16.msra.mxu1 %v3448_v46  ;;  %v3587_v46 = vld [vmem:[#allocation2 + $0x4f8] sm:$0xff] }
 0x24c   :  { %3979 = vmatpush1.bf16.msra.mxu0 %v3576_v10  ;;  %3696 = vmatprep.subr.bf16.mxu1 %v3451_v41  ;;  %v3458_v10 = vld [vmem:[#allocation2 + $0xf0] sm:$0xff] }
 0x24d   :  { %3980 = vmatprep.subr.bf16.mxu0 %v3579_v37  ;;  %v3586_v41 = vld [vmem:[#allocation2 + $0x4f0] sm:$0xff]  ;;  %v3461_v37 = vld [vmem:[#allocation2 + $0x108] sm:$0xff] }
 0x24f   :  { %3697 = vmatpush1.bf16.msra.mxu1 %v3450_v52  ;;  %v3589_v52 = vld [vmem:[#allocation2 + $0x508] sm:$0xff] }
 0x250   :  { %3981 = vmatpush1.bf16.msra.mxu0 %v3578_v3  ;;  %3698 = vmatprep.subr.bf16.mxu1 %v3453_v47  ;;  %v3460_v3 = vld [vmem:[#allocation2 + $0x100] sm:$0xff] }
 0x251   :  { %3982 = vmatprep.subr.bf16.mxu0 %v3581_v1  ;;  %v3588_v47 = vld [vmem:[#allocation2 + $0x500] sm:$0xff]  ;;  %v3463_v1 = vld [vmem:[#allocation2 + $0x118] sm:$0xff] }
 0x253   :  { %3699 = vmatpush1.bf16.msra.mxu1 %v3452_v49  ;;  %v3591_v49 = vld [vmem:[#allocation2 + $0x518] sm:$0xff] }
 0x254   :  { %3983 = vmatpush1.bf16.msra.mxu0 %v3580_v53  ;;  %3700 = vmatprep.subr.bf16.mxu1 %v3455_v33  ;;  %v3462_v53 = vld [vmem:[#allocation2 + $0x110] sm:$0xff] }
 0x255   :  { %3984 = vmatprep.subr.bf16.mxu0 %v3583_v26  ;;  %v3590_v33 = vld [vmem:[#allocation2 + $0x510] sm:$0xff]  ;;  %v3465_v26 = vld [vmem:[#allocation2 + $0x128] sm:$0xff] }
 0x257   :  { %3701 = vmatpush1.bf16.msra.mxu1 %v3454_v38  ;;  %v3593_v38 = vld [vmem:[#allocation2 + $0x528] sm:$0xff] }
 0x258   :  { %3985 = vmatpush1.bf16.msra.mxu0 %v3582_v56  ;;  %3702 = vmatprep.subr.bf16.mxu1 %v3457_v39  ;;  %v3464_v56 = vld [vmem:[#allocation2 + $0x120] sm:$0xff]  ;;  %v3467_v39 = vld [vmem:[#allocation2 + $0x138] sm:$0xff] }
 0x259   :  { %3986 = vmatprep.subr.bf16.mxu0 %v3585_v23  ;;  %v3466_v23 = vld [vmem:[#allocation2 + $0x130] sm:$0xff] }
 0x25b   :  { %3703 = vmatpush1.bf16.msra.mxu1 %v3456_v35  ;;  %v3469_v35 = vld [vmem:[#allocation2 + $0x148] sm:$0xff] }
 0x25c   :  { %3987 = vmatpush1.bf16.msra.mxu0 %v3584_v9  ;;  %3704 = vmatprep.subr.bf16.mxu1 %v3459_v16  ;;  %v3468_v9 = vld [vmem:[#allocation2 + $0x140] sm:$0xff]  ;;  %v3471_v16 = vld [vmem:[#allocation2 + $0x158] sm:$0xff] }
 0x25d   :  { %3988 = vmatprep.subr.bf16.mxu0 %v3587_v46  ;;  %v3470_v46 = vld [vmem:[#allocation2 + $0x150] sm:$0xff] }
 0x25f   :  { %3705 = vmatpush1.bf16.msra.mxu1 %v3458_v10  ;;  %v3473_v10 = vld [vmem:[#allocation2 + $0x168] sm:$0xff] }
 0x260   :  { %3989 = vmatpush1.bf16.msra.mxu0 %v3586_v41  ;;  %3745 = vmatprep.subr.bf16.mxu1 %v3461_v37  ;;  %v3472_v41 = vld [vmem:[#allocation2 + $0x160] sm:$0xff]  ;;  %v3475_v37 = vld [vmem:[#allocation2 + $0x178] sm:$0xff] }
 0x261   :  { %4029 = vmatprep.subr.bf16.mxu0 %v3589_v52  ;;  %v3474_v52 = vld [vmem:[#allocation2 + $0x170] sm:$0xff] }
 0x262   :  { %3707 = vmatmul.mubr.bf16.vlgmr.msra.gmra.mrb[0].mxu1 %v8332_v25  ;;  %v3592_v25 = vld [vmem:[#allocation2 + $0x520] sm:$0xff] }
 0x263   :  { %3991 = vmatmul.mubr.bf16.vlgmr.msra.gmra.mrb[0].mxu0 %v8378_v50  ;;  %3746 = vmatpush1.bf16.msra.mxu1 %v3460_v3  ;;  %v3595_v50 = vld [vmem:[#allocation2 + $0x538] sm:$0xff]  ;;  %v3477_v3 = vld [vmem:[#allocation2 + $0x188] sm:$0xff] }
 0x264   :  { %4030 = vmatpush1.bf16.msra.mxu0 %v3588_v47  ;;  %3747 = vmatprep.subr.bf16.mxu1 %v3463_v1  ;;  %v3476_v47 = vld [vmem:[#allocation2 + $0x180] sm:$0xff]  ;;  %v3479_v1 = vld [vmem:[#allocation2 + $0x198] sm:$0xff] }
 0x265   :  { %4031 = vmatprep.subr.bf16.mxu0 %v3591_v49  ;;  %3716 = vmatprep.mubr.bf16.mxu1 %v8424_v48  ;;  %v3594_v48 = vld [vmem:[#allocation2 + $0x530] sm:$0xff] }
 0x266   :  { %4000 = vmatprep.mubr.bf16.mxu0 %v8472_v2  ;;  %v3597_v2 = vld [vmem:[#allocation2 + $0x548] sm:$0xff]  ;;  %v3478_v49 = vld [vmem:[#allocation2 + $0x190] sm:$0xff] }
 0x267   :  { %3748 = vmatpush1.bf16.msra.mxu1 %v3462_v53  ;;  %v3606_v53 = vld [vmem:[#allocation2 + $0x590] sm:$0xff] }
 0x268   :  { %4032 = vmatpush1.bf16.msra.mxu0 %v3590_v33  ;;  %3749 = vmatprep.subr.bf16.mxu1 %v3465_v26  ;;  %v3481_v33 = vld [vmem:[#allocation2 + $0x1a8] sm:$0xff] }
 0x269   :  { %4033 = vmatprep.subr.bf16.mxu0 %v3593_v38  ;;  %v3609_v26 = vld [vmem:[#allocation2 + $0x5a8] sm:$0xff]  ;;  %v3483_v38 = vld [vmem:[#allocation2 + $0x1b8] sm:$0xff] }
 0x26a   :  { %3717 = vmatmul.mubr.bf16.gmra.mrb[4].mxu1 %v8418_v63  ;;  %v3596_v63 = vld [vmem:[#allocation2 + $0x540] sm:$0xff] }
 0x26b   :  { %4001 = vmatmul.mubr.bf16.gmra.mrb[4].mxu0 %v8466_v59  ;;  %3750 = vmatpush1.bf16.msra.mxu1 %v3464_v56  ;;  %v3599_v59 = vld [vmem:[#allocation2 + $0x558] sm:$0xff] }
 0x26c   :  { %4034 = vmatpush1.bf16.msra.mxu0 %v3592_v25  ;;  %3751 = vmatprep.subr.bf16.mxu1 %v3467_v39  ;;  %v3611_v56 = vld [vmem:[#allocation2 + $0x5b8] sm:$0xff]  ;;  %v3482_v25 = vld [vmem:[#allocation2 + $0x1b0] sm:$0xff] }
 0x26d   :  { %4035 = vmatprep.subr.bf16.mxu0 %v3595_v50  ;;  %3726 = vmatprep.mubr.bf16.mxu1 %v8510_v5  ;;  %v3598_v5 = vld [vmem:[#allocation2 + $0x550] sm:$0xff]  ;;  %v3485_v50 = vld [vmem:[#allocation2 + $0x1c8] sm:$0xff] }
 0x26e   :  { %4010 = vmatprep.mubr.bf16.mxu0 %v8542_v51  ;;  %v3601_v51 = vld [vmem:[#allocation2 + $0x568] sm:$0xff]  ;;  %v3610_v39 = vld [vmem:[#allocation2 + $0x5b0] sm:$0xff] }
 0x26f   :  { %3752 = vmatpush1.bf16.msra.mxu1 %v3466_v23  ;;  %v3613_v23 = vld [vmem:[#allocation2 + $0x5c8] sm:$0xff] }
 0x270   :  { %4036 = vmatpush1.bf16.msra.mxu0 %v3594_v48  ;;  %3753 = vmatprep.subr.bf16.mxu1 %v3469_v35  ;;  %v3484_v48 = vld [vmem:[#allocation2 + $0x1c0] sm:$0xff] }
 0x271   :  { %4037 = vmatprep.subr.bf16.mxu0 %v3597_v2  ;;  %v3612_v35 = vld [vmem:[#allocation2 + $0x5c0] sm:$0xff]  ;;  %v3487_v2 = vld [vmem:[#allocation2 + $0x1d8] sm:$0xff] }
 0x272   :  { %3727 = vmatmul.mubr.bf16.gmra.mrb[8].mxu1 %v8506_v20  ;;  %v3600_v20 = vld [vmem:[#allocation2 + $0x560] sm:$0xff] }
 0x273   :  { %4011 = vmatmul.mubr.bf16.gmra.mrb[8].mxu0 %v8538_v42  ;;  %3754 = vmatpush1.bf16.msra.mxu1 %v3468_v9  ;;  %v3603_v42 = vld [vmem:[#allocation2 + $0x578] sm:$0xff] }
 0x274   :  { %4038 = vmatpush1.bf16.msra.mxu0 %v3596_v63  ;;  %3755 = vmatprep.subr.bf16.mxu1 %v3471_v16  ;;  %v3615_v9 = vld [vmem:[#allocation2 + $0x5d8] sm:$0xff]  ;;  %v3486_v63 = vld [vmem:[#allocation2 + $0x1d0] sm:$0xff] }
 0x275   :  { %4039 = vmatprep.subr.bf16.mxu0 %v3599_v59  ;;  %3736 = vmatprep.mubr.bf16.mxu1 %v8566_v43  ;;  %v3602_v43 = vld [vmem:[#allocation2 + $0x570] sm:$0xff]  ;;  %v3489_v59 = vld [vmem:[#allocation2 + $0x1e8] sm:$0xff] }
 0x276   :  { %4020 = vmatprep.mubr.bf16.mxu0 %v8582_v8  ;;  %v3605_v8 = vld [vmem:[#allocation2 + $0x588] sm:$0xff]  ;;  %v3614_v16 = vld [vmem:[#allocation2 + $0x5d0] sm:$0xff] }
 0x277   :  { %3756 = vmatpush1.bf16.msra.mxu1 %v3470_v46  ;;  %v3617_v46 = vld [vmem:[#allocation2 + $0x5e8] sm:$0xff] }
 0x278   :  { %4040 = vmatpush1.bf16.msra.mxu0 %v3598_v5  ;;  %3757 = vmatprep.subr.bf16.mxu1 %v3473_v10  ;;  %v3488_v5 = vld [vmem:[#allocation2 + $0x1e0] sm:$0xff] }
 0x279   :  { %4041 = vmatprep.subr.bf16.mxu0 %v3601_v51  ;;  %v3616_v10 = vld [vmem:[#allocation2 + $0x5e0] sm:$0xff]  ;;  %v3491_v51 = vld [vmem:[#allocation2 + $0x1f8] sm:$0xff] }
 0x27a   :  { %3737 = vmatmul.mubr.bf16.gmra.mrb[12].mxu1 %v8564_v45  ;;  %v3604_v45 = vld [vmem:[#allocation2 + $0x580] sm:$0xff] }
 0x27b   :  { %4021 = vmatmul.mubr.bf16.gmra.mrb[12].mxu0 %v8580_v22  ;;  %3758 = vmatpush1.bf16.msra.mxu1 %v3472_v41  ;;  %v3607_v22 = vld [vmem:[#allocation2 + $0x598] sm:$0xff] }
 0x27c   :  { %4042 = vmatpush1.bf16.msra.mxu0 %v3600_v20  ;;  %3759 = vmatprep.subr.bf16.mxu1 %v3475_v37  ;;  %v3619_v41 = vld [vmem:[#allocation2 + $0x5f8] sm:$0xff]  ;;  %v3490_v20 = vld [vmem:[#allocation2 + $0x1f0] sm:$0xff] }
 0x27d   :  { %4043 = vmatprep.subr.bf16.mxu0 %v3603_v42  ;;  %3777 = vmatprep.mubr.bf16.mxu1 %v8348_v17  ;;  %v3480_v17 = vld [vmem:[#allocation2 + $0x1a0] sm:$0xff]  ;;  %v3618_v37 = vld [vmem:[#allocation2 + $0x5f0] sm:$0xff]  ;;  %v3493_v42 = vld [vmem:[#allocation2 + $0x208] sm:$0xff] }
 0x27e   :  { %4061 = vmatprep.mubr.bf16.mxu0 %v8394_v60  ;;  %v3608_v60 = vld [vmem:[#allocation2 + $0x5a0] sm:$0xff] }
 0x27f   :  { %3760 = vmatpush1.bf16.msra.mxu1 %v3474_v52  ;;  %v3621_v52 = vld [vmem:[#allocation2 + $0x608] sm:$0xff] }
 0x280   :  { %4044 = vmatpush1.bf16.msra.mxu0 %v3602_v43  ;;  %3761 = vmatprep.subr.bf16.mxu1 %v3477_v3  ;;  %v3492_v43 = vld [vmem:[#allocation2 + $0x200] sm:$0xff] }
 0x281   :  { %4045 = vmatprep.subr.bf16.mxu0 %v3605_v8  ;;  %v3620_v3 = vld [vmem:[#allocation2 + $0x600] sm:$0xff]  ;;  %v3495_v8 = vld [vmem:[#allocation2 + $0x218] sm:$0xff] }
 0x283   :  { %3762 = vmatpush1.bf16.msra.mxu1 %v3476_v47  ;;  %v3623_v47 = vld [vmem:[#allocation2 + $0x618] sm:$0xff] }
 0x284   :  { %4046 = vmatpush1.bf16.msra.mxu0 %v3604_v45  ;;  %3763 = vmatprep.subr.bf16.mxu1 %v3479_v1  ;;  %v3494_v45 = vld [vmem:[#allocation2 + $0x210] sm:$0xff] }
 0x285   :  { %4047 = vmatprep.subr.bf16.mxu0 %v3607_v22  ;;  %v3622_v1 = vld [vmem:[#allocation2 + $0x610] sm:$0xff]  ;;  %v3497_v22 = vld [vmem:[#allocation2 + $0x228] sm:$0xff] }
 0x287   :  { %3764 = vmatpush1.bf16.msra.mxu1 %v3478_v49  ;;  %v3625_v49 = vld [vmem:[#allocation2 + $0x628] sm:$0xff] }
 0x288   :  { %4048 = vmatpush1.bf16.msra.mxu0 %v3606_v53  ;;  %3765 = vmatprep.subr.bf16.mxu1 %v3481_v33  ;;  %v3496_v53 = vld [vmem:[#allocation2 + $0x220] sm:$0xff]  ;;  %v3499_v33 = vld [vmem:[#allocation2 + $0x238] sm:$0xff] }
 0x289   :  { %4049 = vmatprep.subr.bf16.mxu0 %v3609_v26  ;;  %v9529_v26 = vld [vmem:[#allocation56_spill] sm:$0xff] }
 0x28b   :  { %3766 = vmatpush1.bf16.msra.mxu1 %v3480_v17  ;;  %v3498_v17 = vld [vmem:[#allocation2 + $0x230] sm:$0xff] }
 0x28c   :  { %4050 = vmatpush1.bf16.msra.mxu0 %v3608_v60  ;;  %3767 = vmatprep.subr.bf16.mxu1 %v3483_v38  ;;  %v3501_v60 = vld [vmem:[#allocation2 + $0x248] sm:$0xff]  ;;  %v3500_v38 = vld [vmem:[#allocation2 + $0x240] sm:$0xff] }
 0x28d   :  { %4051 = vmatprep.subr.bf16.mxu0 %v3611_v56  ;;  %v3503_v56 = vld [vmem:[#allocation2 + $0x258] sm:$0xff] }
 0x28f   :  { %3768 = vmatpush1.bf16.msra.mxu1 %v3482_v25  ;;  %v3631_v25 = vld [vmem:[#allocation2 + $0x658] sm:$0xff] }
 0x290   :  { %4052 = vmatpush1.bf16.msra.mxu0 %v3610_v39  ;;  %3769 = vmatprep.subr.bf16.mxu1 %v3485_v50  ;;  %v3502_v39 = vld [vmem:[#allocation2 + $0x250] sm:$0xff]  ;;  %v3505_v50 = vld [vmem:[#allocation2 + $0x268] sm:$0xff] }
 0x291   :  { %4053 = vmatprep.subr.bf16.mxu0 %v3613_v23  ;;  %v3504_v23 = vld [vmem:[#allocation2 + $0x260] sm:$0xff] }
 0x293   :  { %3770 = vmatpush1.bf16.msra.mxu1 %v3484_v48  ;;  %v3507_v48 = vld [vmem:[#allocation2 + $0x278] sm:$0xff] }
 0x294   :  { %4054 = vmatpush1.bf16.msra.mxu0 %v3612_v35  ;;  %3771 = vmatprep.subr.bf16.mxu1 %v3487_v2  ;;  %v3506_v35 = vld [vmem:[#allocation2 + $0x270] sm:$0xff]  ;;  %v3509_v2 = vld [vmem:[#allocation2 + $0x288] sm:$0xff] }
 0x295   :  { %4055 = vmatprep.subr.bf16.mxu0 %v3615_v9  ;;  %v9530_v9 = vld [vmem:[#allocation29_spill] sm:$0xff] }
 0x297   :  { %3772 = vmatpush1.bf16.msra.mxu1 %v3486_v63  ;;  %v9531_v63 = vld [vmem:[#allocation27_spill] sm:$0xff] }
 0x298   :  { %4056 = vmatpush1.bf16.msra.mxu0 %v3614_v16  ;;  %3773 = vmatprep.subr.bf16.mxu1 %v3489_v59  ;;  %v3508_v16 = vld [vmem:[#allocation2 + $0x280] sm:$0xff]  ;;  %v3511_v59 = vld [vmem:[#allocation2 + $0x298] sm:$0xff] }
 0x299   :  { %4057 = vmatprep.subr.bf16.mxu0 %v3617_v46  ;;  %v3510_v46 = vld [vmem:[#allocation2 + $0x290] sm:$0xff] }
 0x29b   :  { %3774 = vmatpush1.bf16.msra.mxu1 %v3488_v5  ;;  %v3638_v5 = vld [vmem:[#allocation2 + $0x690] sm:$0xff] }
 0x29c   :  { %4058 = vmatpush1.bf16.msra.mxu0 %v3616_v10  ;;  %3775 = vmatprep.subr.bf16.mxu1 %v3491_v51  ;;  %v3513_v10 = vld [vmem:[#allocation2 + $0x2a8] sm:$0xff] }
 0x29d   :  { %4059 = vmatprep.subr.bf16.mxu0 %v3619_v41  ;;  %v3641_v51 = vld [vmem:[#allocation2 + $0x6a8] sm:$0xff]  ;;  %v3512_v41 = vld [vmem:[#allocation2 + $0x2a0] sm:$0xff] }
 0x29f   :  { %3776 = vmatpush1.bf16.msra.mxu1 %v3490_v20  ;;  %v3640_v20 = vld [vmem:[#allocation2 + $0x6a0] sm:$0xff] }
 0x2a0   :  { %4060 = vmatpush1.bf16.msra.mxu0 %v3618_v37  ;;  %3816 = vmatprep.subr.bf16.mxu1 %v3493_v42  ;;  %v3515_v37 = vld [vmem:[#allocation2 + $0x2b8] sm:$0xff] }
 0x2a1   :  { %4100 = vmatprep.subr.bf16.mxu0 %v3621_v52  ;;  %v3643_v42 = vld [vmem:[#allocation2 + $0x6b8] sm:$0xff]  ;;  %v3514_v52 = vld [vmem:[#allocation2 + $0x2b0] sm:$0xff] }
 0x2a2   :  { %3778 = vmatmul.mubr.bf16.vlgmr.msra.gmra.mrb[0].mxu1 %v8342_v19  ;;  %v3624_v19 = vld [vmem:[#allocation2 + $0x620] sm:$0xff] }
 0x2a3   :  { %4062 = vmatmul.mubr.bf16.vlgmr.msra.gmra.mrb[0].mxu0 %v8388_v57  ;;  %3817 = vmatpush1.bf16.msra.mxu1 %v3492_v43  ;;  %v3627_v57 = vld [vmem:[#allocation2 + $0x638] sm:$0xff]  ;;  %v3642_v43 = vld [vmem:[#allocation2 + $0x6b0] sm:$0xff] }
 0x2a4   :  { %4101 = vmatpush1.bf16.msra.mxu0 %v3620_v3  ;;  %3818 = vmatprep.subr.bf16.mxu1 %v3495_v8  ;;  %v3517_v3 = vld [vmem:[#allocation2 + $0x2c8] sm:$0xff] }
 0x2a5   :  { %4102 = vmatprep.subr.bf16.mxu0 %v3623_v47  ;;  %4071 = vmatprep.mubr.bf16.mxu0 %v8484_v7  ;;  %v3626_v7 = vld [vmem:[#allocation2 + $0x630] sm:$0xff]  ;;  %v3645_v8 = vld [vmem:[#allocation2 + $0x6c8] sm:$0xff]  ;;  %v3516_v47 = vld [vmem:[#allocation2 + $0x2c0] sm:$0xff] }
 0x2a6   :  { %3787 = vmatprep.mubr.bf16.mxu1 %v8436_v32  ;;  %v3629_v32 = vld [vmem:[#allocation2 + $0x648] sm:$0xff] }
 0x2a7   :  { %3819 = vmatpush1.bf16.msra.mxu1 %v3494_v45  ;;  %v3644_v45 = vld [vmem:[#allocation2 + $0x6c0] sm:$0xff] }
 0x2a8   :  { %4103 = vmatpush1.bf16.msra.mxu0 %v3622_v1  ;;  %3820 = vmatprep.subr.bf16.mxu1 %v3497_v22  ;;  %v3519_v1 = vld [vmem:[#allocation2 + $0x2d8] sm:$0xff] }
 0x2a9   :  { %4104 = vmatprep.subr.bf16.mxu0 %v3625_v49  ;;  %v3647_v22 = vld [vmem:[#allocation2 + $0x6d8] sm:$0xff]  ;;  %v3518_v49 = vld [vmem:[#allocation2 + $0x2d0] sm:$0xff] }
 0x2aa   :  { %3788 = vmatmul.mubr.bf16.gmra.mrb[4].mxu1 %v9529_v26  ;;  %v3648_v26 = vld [vmem:[#allocation2 + $0x6e0] sm:$0xff] }
 0x2ab   :  { %4072 = vmatmul.mubr.bf16.gmra.mrb[4].mxu0 %v8478_v40  ;;  %3821 = vmatpush1.bf16.msra.mxu1 %v3496_v53  ;;  %v3628_v40 = vld [vmem:[#allocation2 + $0x640] sm:$0xff]  ;;  %v3646_v53 = vld [vmem:[#allocation2 + $0x6d0] sm:$0xff] }
 0x2ac   :  { %4105 = vmatpush1.bf16.msra.mxu0 %v3624_v19  ;;  %3822 = vmatprep.subr.bf16.mxu1 %v3499_v33  ;;  %v3521_v19 = vld [vmem:[#allocation2 + $0x2e8] sm:$0xff] }
 0x2ad   :  { %4106 = vmatprep.subr.bf16.mxu0 %v3627_v57  ;;  %4081 = vmatprep.mubr.bf16.mxu0 %v8550_v54  ;;  %v3630_v54 = vld [vmem:[#allocation2 + $0x650] sm:$0xff]  ;;  %v3649_v33 = vld [vmem:[#allocation2 + $0x6e8] sm:$0xff]  ;;  %v3520_v57 = vld [vmem:[#allocation2 + $0x2e0] sm:$0xff] }
 0x2ae   :  { %3797 = vmatprep.mubr.bf16.mxu1 %v8518_v29  ;;  %v3633_v29 = vld [vmem:[#allocation2 + $0x668] sm:$0xff] }
 0x2af   :  { %3823 = vmatpush1.bf16.msra.mxu1 %v3498_v17  ;;  %v3523_v17 = vld [vmem:[#allocation2 + $0x2f8] sm:$0xff] }
 0x2b0   :  { %4107 = vmatpush1.bf16.msra.mxu0 %v3626_v7  ;;  %3824 = vmatprep.subr.bf16.mxu1 %v3501_v60  ;;  %v3651_v7 = vld [vmem:[#allocation2 + $0x6f8] sm:$0xff]  ;;  %v3522_v60 = vld [vmem:[#allocation2 + $0x2f0] sm:$0xff] }
 0x2b1   :  { %4108 = vmatprep.subr.bf16.mxu0 %v3629_v32  ;;  %v3650_v32 = vld [vmem:[#allocation2 + $0x6f0] sm:$0xff] }
 0x2b2   :  { %3798 = vmatmul.mubr.bf16.gmra.mrb[8].mxu1 %v8514_v0  ;;  %v3635_v0 = vld [vmem:[#allocation2 + $0x678] sm:$0xff] }
 0x2b3   :  { %4082 = vmatmul.mubr.bf16.gmra.mrb[8].mxu0 %v8546_v11  ;;  %3825 = vmatpush1.bf16.msra.mxu1 %v3500_v38  ;;  %v3632_v11 = vld [vmem:[#allocation2 + $0x660] sm:$0xff]  ;;  %v3525_v38 = vld [vmem:[#allocation2 + $0x308] sm:$0xff] }
 0x2b4   :  { %4109 = vmatpush1.bf16.msra.mxu0 %v3628_v40  ;;  %3826 = vmatprep.subr.bf16.mxu1 %v3503_v56  ;;  %v3653_v40 = vld [vmem:[#allocation2 + $0x708] sm:$0xff]  ;;  %v3524_v56 = vld [vmem:[#allocation2 + $0x300] sm:$0xff] }
 0x2b5   :  { %4110 = vmatprep.subr.bf16.mxu0 %v3631_v25  ;;  %4091 = vmatprep.mubr.bf16.mxu0 %v8586_v21  ;;  %v3634_v21 = vld [vmem:[#allocation2 + $0x670] sm:$0xff]  ;;  %v3527_v25 = vld [vmem:[#allocation2 + $0x318] sm:$0xff] }
 0x2b6   :  { %3807 = vmatprep.mubr.bf16.mxu1 %v8570_v30  ;;  %v3637_v30 = vld [vmem:[#allocation2 + $0x688] sm:$0xff] }
 0x2b7   :  { %3827 = vmatpush1.bf16.msra.mxu1 %v3502_v39  ;;  %v3652_v39 = vld [vmem:[#allocation2 + $0x700] sm:$0xff] }
 0x2b8   :  { %4111 = vmatpush1.bf16.msra.mxu0 %v3630_v54  ;;  %3828 = vmatprep.subr.bf16.mxu1 %v3505_v50  ;;  %v9532_v54 = vld [vmem:[#allocation13_spill] sm:$0xff]  ;;  %v9533_v50 = vld [vmem:[#allocation12_spill] sm:$0xff] }
 0x2b9   :  { %4112 = vmatprep.subr.bf16.mxu0 %v3633_v29  ;;  %v3655_v29 = vld [vmem:[#allocation2 + $0x718] sm:$0xff] }
 0x2ba   :  { %3808 = vmatmul.mubr.bf16.gmra.mrb[12].mxu1 %v8568_v15  ;;  %v3639_v15 = vld [vmem:[#allocation2 + $0x698] sm:$0xff] }
 0x2bb   :  { %4092 = vmatmul.mubr.bf16.gmra.mrb[12].mxu0 %v8584_v6  ;;  %3829 = vmatpush1.bf16.msra.mxu1 %v3504_v23  ;;  %v3636_v6 = vld [vmem:[#allocation2 + $0x680] sm:$0xff]  ;;  %v3526_v23 = vld [vmem:[#allocation2 + $0x310] sm:$0xff] }
 0x2bc   :  { %4113 = vmatpush1.bf16.msra.mxu0 %v3632_v11  ;;  %3830 = vmatprep.subr.bf16.mxu1 %v3507_v48  ;;  %v3529_v11 = vld [vmem:[#allocation2 + $0x328] sm:$0xff]  ;;  %v3654_v48 = vld [vmem:[#allocation2 + $0x710] sm:$0xff] }
 0x2bd   :  { %4114 = vmatprep.subr.bf16.mxu0 %v3635_v0  ;;  %4132 = vmatprep.mubr.bf16.mxu0 %v9530_v9  ;;  %v9534_v0 = vld [vmem:[#allocation60_spill] sm:$0xff]  ;;  %v9535_v9 = vld [vmem:[#allocation82_spill] sm:$0xff] }
 0x2be   :  { %3848 = vmatprep.mubr.bf16.mxu1 %v9531_v63  ;;  %v3659_v63 = vld [vmem:[#allocation2 + $0x738] sm:$0xff] }
 0x2bf   :  { %3831 = vmatpush1.bf16.msra.mxu1 %v3506_v35  ;;  %v3657_v35 = vld [vmem:[#allocation2 + $0x728] sm:$0xff] }
 0x2c0   :  { %4115 = vmatpush1.bf16.msra.mxu0 %v3634_v21  ;;  %3832 = vmatprep.subr.bf16.mxu1 %v3509_v2  ;;  %v3528_v21 = vld [vmem:[#allocation2 + $0x320] sm:$0xff]  ;;  %v3531_v2 = vld [vmem:[#allocation2 + $0x338] sm:$0xff] }
 0x2c1   :  { %4116 = vmatprep.subr.bf16.mxu0 %v3637_v30  ;;  %v3656_v30 = vld [vmem:[#allocation2 + $0x720] sm:$0xff] }
 0x2c3   :  { %3833 = vmatpush1.bf16.msra.mxu1 %v3508_v16  ;;  %v3530_v16 = vld [vmem:[#allocation2 + $0x330] sm:$0xff] }
 0x2c4   :  { %4117 = vmatpush1.bf16.msra.mxu0 %v3636_v6  ;;  %3834 = vmatprep.subr.bf16.mxu1 %v3511_v59  ;;  %v3533_v6 = vld [vmem:[#allocation2 + $0x348] sm:$0xff]  ;;  %v3658_v59 = vld [vmem:[#allocation2 + $0x730] sm:$0xff] }
 0x2c5   :  { %4118 = vmatprep.subr.bf16.mxu0 %v3639_v15  ;;  %v3661_v15 = vld [vmem:[#allocation2 + $0x748] sm:$0xff] }
 0x2c7   :  { %3835 = vmatpush1.bf16.msra.mxu1 %v3510_v46  ;;  %v3532_v46 = vld [vmem:[#allocation2 + $0x340] sm:$0xff] }
 0x2c8   :  { %4119 = vmatpush1.bf16.msra.mxu0 %v3638_v5  ;;  %3836 = vmatprep.subr.bf16.mxu1 %v3513_v10  ;;  %v3535_v5 = vld [vmem:[#allocation2 + $0x358] sm:$0xff]  ;;  %v3660_v10 = vld [vmem:[#allocation2 + $0x740] sm:$0xff] }
 0x2c9   :  { %4120 = vmatprep.subr.bf16.mxu0 %v3641_v51  ;;  %v3537_v51 = vld [vmem:[#allocation2 + $0x368] sm:$0xff] }
 0x2cb   :  { %3837 = vmatpush1.bf16.msra.mxu1 %v3512_v41  ;;  %v3539_v41 = vld [vmem:[#allocation2 + $0x378] sm:$0xff] }
 0x2cc   :  { %4121 = vmatpush1.bf16.msra.mxu0 %v3640_v20  ;;  %3838 = vmatprep.subr.bf16.mxu1 %v3515_v37  ;;  %v3541_v20 = vld [vmem:[#allocation2 + $0x388] sm:$0xff]  ;;  %v3540_v37 = vld [vmem:[#allocation2 + $0x380] sm:$0xff] }
 0x2cd   :  { %4122 = vmatprep.subr.bf16.mxu0 %v3643_v42  ;;  %v9538_v42 = vld [vmem:[#allocation67_spill] sm:$0xff] }
 0x2cf   :  { %3839 = vmatpush1.bf16.msra.mxu1 %v3514_v52  ;;  %v3544_v52 = vld [vmem:[#allocation2 + $0x3a0] sm:$0xff] }
 0x2d0   :  { %4123 = vmatpush1.bf16.msra.mxu0 %v3642_v43  ;;  %3840 = vmatprep.subr.bf16.mxu1 %v3517_v3  ;;  %v3547_v43 = vld [vmem:[#allocation2 + $0x3b8] sm:$0xff]  ;;  %v3546_v3 = vld [vmem:[#allocation2 + $0x3b0] sm:$0xff] }
 0x2d1   :  { %4124 = vmatprep.subr.bf16.mxu0 %v3645_v8  ;;  %v3549_v8 = vld [vmem:[#allocation2 + $0x3c8] sm:$0xff] }
 0x2d3   :  { %3841 = vmatpush1.bf16.msra.mxu1 %v3516_v47  ;;  %v3548_v47 = vld [vmem:[#allocation2 + $0x3c0] sm:$0xff] }
 0x2d4   :  { %4125 = vmatpush1.bf16.msra.mxu0 %v3644_v45  ;;  %3842 = vmatprep.subr.bf16.mxu1 %v3519_v1  ;;  %v3551_v45 = vld [vmem:[#allocation2 + $0x3d8] sm:$0xff]  ;;  %v3550_v1 = vld [vmem:[#allocation2 + $0x3d0] sm:$0xff] }
 0x2d5   :  { %4126 = vmatprep.subr.bf16.mxu0 %v3647_v22  ;;  %v3553_v22 = vld [vmem:[#allocation2 + $0x3e8] sm:$0xff] }
 0x2d7   :  { %3843 = vmatpush1.bf16.msra.mxu1 %v3518_v49  ;;  %v3555_v49 = vld [vmem:[#allocation2 + $0x3f8] sm:$0xff] }
 0x2d8   :  { %4127 = vmatpush1.bf16.msra.mxu0 %v3646_v53  ;;  %3844 = vmatprep.subr.bf16.mxu1 %v3521_v19  ;;  %v3554_v53 = vld [vmem:[#allocation2 + $0x3f0] sm:$0xff]  ;;  %v9539_v19 = vld [vmem:[#allocation65_spill] sm:$0xff] }
 0x2d9   :  { %4128 = vmatprep.subr.bf16.mxu0 %v3649_v33  ;;  %v9540_v33 = vld [vmem:[#allocation81_spill] sm:$0xff] }
 0x2db   :  { %3845 = vmatpush1.bf16.msra.mxu1 %v3520_v57 }
 0x2dc   :  { %4129 = vmatpush1.bf16.msra.mxu0 %v3648_v26  ;;  %3846 = vmatprep.subr.bf16.mxu1 %v3523_v17 }
 0x2dd   :  { %4130 = vmatprep.subr.bf16.mxu0 %v3651_v7 }
 0x2df   :  { %3847 = vmatpush1.bf16.msra.mxu1 %v3522_v60 }
 0x2e0   :  { %4131 = vmatpush1.bf16.msra.mxu0 %v3650_v32  ;;  %3887 = vmatprep.subr.bf16.mxu1 %v3525_v38 }
 0x2e1   :  { %4171 = vmatprep.subr.bf16.mxu0 %v3653_v40 }
 0x2e2   :  { %3849 = vmatmul.mubr.bf16.vlgmr.msra.gmra.mrb[0].mxu1 %v9533_v50 }
 0x2e3   :  { %4133 = vmatmul.mubr.bf16.vlgmr.msra.gmra.mrb[0].mxu0 %v9532_v54  ;;  %3888 = vmatpush1.bf16.msra.mxu1 %v3524_v56 }
 0x2e4   :  { %4142 = vmatprep.mubr.bf16.mxu0 %v8496_v27  ;;  %3889 = vmatprep.subr.bf16.mxu1 %v3527_v25  ;;  %v9536_v27 = vld [vmem:[#allocation59_spill] sm:$0xff] }
 0x2e5   :  { %4172 = vmatpush1.bf16.msra.mxu0 %v3652_v39  ;;  %3858 = vmatprep.mubr.bf16.mxu1 %v9534_v0 }
 0x2e6   :  { %4173 = vmatprep.subr.bf16.mxu0 %v3655_v29 }
 0x2e7   :  { %3890 = vmatpush1.bf16.msra.mxu1 %v3526_v23 }
 0x2e8   :  { %3891 = vmatprep.subr.bf16.mxu1 %v3529_v11 }
 0x2e9   :  { %4174 = vmatpush1.bf16.msra.mxu0 %v3654_v48 }
 0x2ea   :  { %4175 = vmatprep.subr.bf16.mxu0 %v3657_v35  ;;  %3859 = vmatmul.mubr.bf16.gmra.mrb[4].mxu1 %v9536_v27 }
 0x2eb   :  { %4143 = vmatmul.mubr.bf16.gmra.mrb[4].mxu0 %v9535_v9  ;;  %3892 = vmatpush1.bf16.msra.mxu1 %v3528_v21 }
 0x2ec   :  { %4152 = vmatprep.mubr.bf16.mxu0 %v8558_v12  ;;  %3893 = vmatprep.subr.bf16.mxu1 %v3531_v2  ;;  %v3534_v12 = vld [vmem:[#allocation2 + $0x350] sm:$0xff] }
 0x2ed   :  { %4176 = vmatpush1.bf16.msra.mxu0 %v3656_v30  ;;  %3868 = vmatprep.mubr.bf16.mxu1 %v8526_v44  ;;  %v3536_v44 = vld [vmem:[#allocation2 + $0x360] sm:$0xff] }
 0x2ee   :  { %4177 = vmatprep.subr.bf16.mxu0 %v3659_v63 }
 0x2ef   :  { %3894 = vmatpush1.bf16.msra.mxu1 %v3530_v16 }
 0x2f0   :  { %3895 = vmatprep.subr.bf16.mxu1 %v3533_v6 }
 0x2f1   :  { %4178 = vmatpush1.bf16.msra.mxu0 %v3658_v59 }
 0x2f2   :  { %4179 = vmatprep.subr.bf16.mxu0 %v3661_v15  ;;  %3869 = vmatmul.mubr.bf16.gmra.mrb[8].mxu1 %v8522_v34  ;;  %v3538_v34 = vld [vmem:[#allocation2 + $0x370] sm:$0xff] }
 0x2f3   :  { %4153 = vmatmul.mubr.bf16.gmra.mrb[8].mxu0 %v8554_v24  ;;  %3896 = vmatpush1.bf16.msra.mxu1 %v3532_v46  ;;  %v4731_v24 = vmov 0  }
 0x2f4   :  { %4162 = vmatprep.mubr.bf16.mxu0 %v8590_v14  ;;  %3897 = vmatprep.subr.bf16.mxu1 %v3535_v5  ;;  %v9537_v14 = vld [vmem:[#allocation66_spill] sm:$0xff] }
 0x2f5   :  { %4180 = vmatpush1.bf16.msra.mxu0 %v3660_v10  ;;  %3878 = vmatprep.mubr.bf16.mxu1 %v8574_v13  ;;  %v3543_v13 = vld [vmem:[#allocation2 + $0x398] sm:$0xff] }
 0x2f7   :  { %3898 = vmatpush1.bf16.msra.mxu1 %v3534_v12 }
 0x2f8   :  { %3899 = vmatprep.subr.bf16.mxu1 %v3537_v51 }
 0x2fa   :  { %3879 = vmatmul.mubr.bf16.gmra.mrb[12].mxu1 %v8572_v31  ;;  %v3545_v31 = vld [vmem:[#allocation2 + $0x3a8] sm:$0xff] }
 0x2fb   :  { %4163 = vmatmul.mubr.bf16.gmra.mrb[12].mxu0 %v8588_v36  ;;  %3900 = vmatpush1.bf16.msra.mxu1 %v3536_v44  ;;  %v3542_v36 = vld [vmem:[#allocation2 + $0x390] sm:$0xff] }
 0x2fc   :  { %4203 = vmatprep.mubr.bf16.mxu0 %v4731_v24  ;;  %3901 = vmatprep.subr.bf16.mxu1 %v3539_v41 }
 0x2fd   :  { %3919 = vmatprep.mubr.bf16.mxu1 %v9537_v14 }
 0x2ff   :  { %3902 = vmatpush1.bf16.msra.mxu1 %v3538_v34 }
 0x300   :  { %3903 = vmatprep.subr.bf16.mxu1 %v3541_v20 }
 0x303   :  { %4471 = vmatmul.mubr.msk.bf16.vlgmr.msra.gmra.mrb[0].mxu0 %vm2231_vm0, %v9538_v42  ;;  %3904 = vmatpush1.bf16.msra.mxu1 %v3540_v37 }
 0x304   :  { %4213 = vmatprep.mubr.bf16.mxu0 %v4731_v24  ;;  %3905 = vmatprep.subr.bf16.mxu1 %v3543_v13 }
 0x307   :  { %3906 = vmatpush1.bf16.msra.mxu1 %v3542_v36 }
 0x308   :  { %3907 = vmatprep.subr.bf16.mxu1 %v3545_v31 }
 0x30b   :  { %4472 = vmatmul.mubr.msk.bf16.gmra.mrb[4].mxu0 %vm2231_vm0, %v8502_v28  ;;  %3908 = vmatpush1.bf16.msra.mxu1 %v3544_v52  ;;  %v3552_v28 = vld [vmem:[#allocation2 + $0x3e0] sm:$0xff] }
 0x30c   :  { %4223 = vmatprep.mubr.bf16.mxu0 %v4731_v24  ;;  %3909 = vmatprep.subr.bf16.mxu1 %v3547_v43 }
 0x30f   :  { %3910 = vmatpush1.bf16.msra.mxu1 %v3546_v3 }
 0x310   :  { %3911 = vmatprep.subr.bf16.mxu1 %v3549_v8 }
 0x313   :  { %4473 = vmatmul.mubr.msk.bf16.gmra.mrb[8].mxu0 %vm2231_vm0, %v8562_v55  ;;  %3912 = vmatpush1.bf16.msra.mxu1 %v3548_v47  ;;  %v9541_v55 = vld [vmem:[#allocation61_spill] sm:$0xff] }
 0x314   :  { %4233 = vmatprep.mubr.bf16.mxu0 %v4731_v24  ;;  %3913 = vmatprep.subr.bf16.mxu1 %v3551_v45 }
 0x317   :  { %3914 = vmatpush1.bf16.msra.mxu1 %v3550_v1 }
 0x318   :  { %3915 = vmatprep.subr.bf16.mxu1 %v3553_v22 }
 0x31b   :  { %4474 = vmatmul.mubr.msk.bf16.gmra.mrb[12].mxu0 %vm2231_vm0, %v8592_v61  ;;  %3916 = vmatpush1.bf16.msra.mxu1 %v3552_v28 }
 0x31c   :  { %3917 = vmatprep.subr.bf16.mxu1 %v3555_v49 }
 0x31f   :  { %3918 = vmatpush1.bf16.msra.mxu1 %v3554_v53 }
 0x322   :  { %3920 = vmatmul.mubr.bf16.vlgmr.msra.gmra.mrb[0].mxu1 %v9539_v19 }
 0x323   :  { %3929 = vmatprep.mubr.bf16.mxu1 %v9540_v33 }
 0x32a   :  { %3930 = vmatmul.mubr.bf16.gmra.mrb[4].mxu1 %v9541_v55 }
 0x32b   :  { %3939 = vmatprep.mubr.bf16.mxu1 %v8534_v58 }
 0x332   :  { %3940 = vmatmul.mubr.bf16.gmra.mrb[8].mxu1 %v8530_v18 }
 0x333   :  { %3949 = vmatprep.mubr.bf16.mxu1 %v8578_v62 }
 0x33a   :  { %3950 = vmatmul.mubr.bf16.gmra.mrb[12].mxu1 %v8576_v4 }
 0x3d6   :  { %v4205_v57 = vpop.f32.mrb[0].mxu0 }
 0x3d7   :  { %v4207_v61 = vpop.f32.mrb[1].mxu0 }
 0x3d8   :  { %v4209_v26 = vpop.f32.mrb[2].mxu0 }
 0x3d9   :  { %v4211_v17 = vpop.f32.mrb[3].mxu0 }
 0x3de   :  { %v4215_v7 = vpop.f32.mrb[4].mxu0 }
 0x3df   :  { %v4217_v60 = vpop.f32.mrb[5].mxu0 }
 0x3e0   :  { %v4219_v32 = vpop.f32.mrb[6].mxu0 }
 0x3e1   :  { %v4221_v38 = vpop.f32.mrb[7].mxu0 }
 0x3e6   :  { %v4225_v40 = vpop.f32.mrb[8].mxu0 }
 0x3e7   :  { %v4227_v56 = vpop.f32.mrb[9].mxu0 }
 0x3e8   :  { %v4229_v25 = vpop.f32.mrb[10].mxu0 }
 0x3e9   :  { %v4231_v39 = vpop.f32.mrb[11].mxu0 }
 0x3ee   :  { %v4235_v54 = vpop.f32.mrb[12].mxu0 }
 0x3ef   :  { %v4237_v58 = vpop.f32.mrb[13].mxu0 }
 0x3f0   :  { %v4239_v50 = vpop.f32.mrb[14].mxu0 }
 0x3f1   :  { %v4240_v18 = vpop.f32.mrb[15].mxu0 }
 0x3f5   :  { %v3921_v29 = vpop.f32.mrb[0].mxu1 }
 0x3f6   :  { %v8656_v62 = vadd.f32 %v4205_v57, %v3921_v29  ;;  %v3923_v4 = vpop.f32.mrb[1].mxu1 }
 0x3f7   :  { %v8658_v23 = vadd.f32 %v4207_v61, %v3923_v4  ;;  %v3925_v11 = vpop.f32.mrb[2].mxu1 }
 0x3f8   :  { %v4479_v48 = vadd.f32 %v4209_v26, %v3925_v11  ;;  %v3927_v0 = vpop.f32.mrb[3].mxu1 }
 0x3f9   :  { %v8660_v35 = vadd.f32 %v4211_v17, %v3927_v0  ;;  %v4259_v2 = vsel %vm4258_vm3, %v8658_v23, 0.0 }
 0x3fa   :  { %v4245_v21 = vadd.f32 %v4479_v48, %v8656_v62 }
 0x3fb   :  { %v4260_v30 = vsel %vm4258_vm3, %v8660_v35, 0.0 }
 0x3fc   :  { %v4261_v9 = vadd.f32 %v4260_v30, %v4259_v2 }
 0x3fd   :  { %v3931_v63 = vpop.f32.mrb[4].mxu1 }
 0x3fe   :  { %v4481_v27 = vadd.f32 %v4215_v7, %v3931_v63  ;;  %v3933_v16 = vpop.f32.mrb[5].mxu1 }
 0x3ff   :  { %v8667_v6 = vadd.f32 %v4217_v60, %v3933_v16  ;;  %v3935_v59 = vpop.f32.mrb[6].mxu1 }
 0x400   :  { %v4246_v15 = vadd.f32 %v4481_v27, %v4245_v21  ;;  %v4483_v46 = vadd.f32 %v4219_v32, %v3935_v59  ;;  %v3937_v5 = vpop.f32.mrb[7].mxu1 }
 0x401   :  { %v4262_v10 = vsel %vm4258_vm3, %v8667_v6, 0.0  ;;  %v4484_v12 = vadd.f32 %v4221_v38, %v3937_v5 }
 0x402   :  { %v4263_v51 = vadd.f32 %v4262_v10, %v4261_v9  ;;  %v4247_v44 = vadd.f32 %v4483_v46, %v4246_v15 }
 0x403   :  { %v4264_v41 = vsel %vm4258_vm3, %v4484_v12, 0.0 }
 0x404   :  { %v4265_v24 = vadd.f32 %v4264_v41, %v4263_v51 }
 0x405   :  { %v3941_v34 = vpop.f32.mrb[8].mxu1 }
 0x406   :  { %v4485_v14 = vadd.f32 %v4225_v40, %v3941_v34  ;;  %v3943_v20 = vpop.f32.mrb[9].mxu1 }
 0x407   :  { %v4486_v37 = vadd.f32 %v4227_v56, %v3943_v20  ;;  %v3945_v13 = vpop.f32.mrb[10].mxu1 }
 0x408   :  { %v4248_v42 = vadd.f32 %v4485_v14, %v4247_v44  ;;  %v4487_v36 = vadd.f32 %v4229_v25, %v3945_v13  ;;  %v3947_v31 = vpop.f32.mrb[11].mxu1 }
 0x409   :  { %v4266_v52 = vsel %vm4258_vm3, %v4486_v37, 0.0  ;;  %v4488_v43 = vadd.f32 %v4231_v39, %v3947_v31 }
 0x40a   :  { %v4267_v3 = vadd.f32 %v4266_v52, %v4265_v24  ;;  %v4249_v8 = vadd.f32 %v4487_v36, %v4248_v42 }
 0x40b   :  { %v4268_v47 = vsel %vm4258_vm3, %v4488_v43, 0.0 }
 0x40c   :  { %v4269_v45 = vadd.f32 %v4268_v47, %v4267_v3 }
 0x40d   :  { %v3951_v1 = vpop.f32.mrb[12].mxu1 }
 0x40e   :  { %v4489_v22 = vadd.f32 %v4235_v54, %v3951_v1  ;;  %v3953_v28 = vpop.f32.mrb[13].mxu1 }
 0x40f   :  { %v4490_v49 = vadd.f32 %v4237_v58, %v3953_v28  ;;  %v3955_v53 = vpop.f32.mrb[14].mxu1 }
 0x410   :  { %v4250_v19 = vsel %vm2053_vm1, %v4489_v22, 0.0  ;;  %v3956_v33 = vpop.f32.mrb[15].mxu1 }
 0x411   :  { %v4251_v55 = vadd.f32 %v4250_v19, %v4249_v8  ;;  %v4271_v57 = vsel %vm4270_vm4, %v4490_v49, 0.0 }
 0x412   :  { %v4272_v61 = vadd.f32 %v4271_v57, %v4269_v45 }
 0x413   :  { %v4252_v26 = vrot.slane %v4251_v55, 4 }
 0x414   :  { %v4273_v17 = vrot.slane %v4272_v61, 4 }
 0x415   :  { %v4253_v7 = vadd.f32 %v4252_v26, %v4251_v55 }
 0x416   :  { %v4274_v60 = vadd.f32 %v4273_v17, %v4272_v61 }
 0x417   :  { %v4254_v32 = vrot.slane %v4253_v7, 2 }
 0x418   :  { %v4275_v38 = vrot.slane %v4274_v60, 2 }
 0x419   :  { %v4255_v40 = vadd.f32 %v4254_v32, %v4253_v7 }
 0x41a   :  { %v4276_v56 = vadd.f32 %v4275_v38, %v4274_v60 }
 0x41b   :  { %v4256_v25 = vrot.slane %v4255_v40, 1 }
 0x41c   :  { %v4277_v39 = vrot.slane %v4276_v56, 1 }
 0x41d   :  { %v4257_v54 = vadd.f32 %v4256_v25, %v4255_v40 }
 0x41e   :  { %v4278_v58 = vadd.f32 %v4277_v39, %v4276_v56 }
 0x41f   :  { %v4279_v50 = vmul.f32 0.020408163, %v4257_v54 }
 0x420   :  { %v4280_v18 = vmul.f32 0.020408163, %v4278_v58 }
 0x421   :  { %v8677_v29 = vsub.f32 %v8656_v62, %v4279_v50  ;;  %v8679_v4 = vsub.f32 %v4479_v48, %v4279_v50  ;;  %v8681_v11 = vsub.f32 %v4481_v27, %v4279_v50  ;;  %v8683_v0 = vsub.f32 %v4483_v46, %v4279_v50 }
 0x422   :  { %v8685_v21 = vsub.f32 %v4485_v14, %v4279_v50  ;;  %v8687_v2 = vsub.f32 %v4487_v36, %v4279_v50  ;;  %v8689_v30 = vsub.f32 %v4489_v22, %v4279_v50  ;;  %v8692_v9 = vsub.f32 %v8658_v23, %v4280_v18 }
 0x423   :  { %v4295_v63 = vmul.f32 %v8677_v29, %v8677_v29  ;;  %v4297_v62 = vmul.f32 %v8679_v4, %v8679_v4  ;;  %v4299_v48 = vmul.f32 %v8681_v11, %v8681_v11  ;;  %v8701_v27 = vsub.f32 %v8660_v35, %v4280_v18 }
 0x424   :  { %v8704_v59 = vsub.f32 %v8667_v6, %v4280_v18  ;;  %v8706_v15 = vsub.f32 %v4484_v12, %v4280_v18  ;;  %v8708_v23 = vsub.f32 %v4486_v37, %v4280_v18  ;;  %v8710_v46 = vsub.f32 %v4488_v43, %v4280_v18 }
 0x425   :  { %v4309_v16 = vadd.f32 %v4297_v62, %v4295_v63  ;;  %v8712_v5 = vsub.f32 %v4490_v49, %v4280_v18  ;;  %v4296_v10 = vmul.f32 %v8692_v9, %v8692_v9  ;;  %v4301_v51 = vmul.f32 %v8683_v0, %v8683_v0 }
 0x426   :  { %v4298_v44 = vmul.f32 %v8701_v27, %v8701_v27  ;;  %v4300_v6 = vmul.f32 %v8704_v59, %v8704_v59  ;;  %v4303_v41 = vmul.f32 %v8685_v21, %v8685_v21  ;;  %v4302_v34 = vmul.f32 %v8706_v15, %v8706_v15 }
 0x427   :  { %v4310_v35 = vadd.f32 %v4309_v16, %v4299_v48  ;;  %v4322_v12 = vsel %vm4258_vm3, %v4296_v10, 0.0  ;;  %v4307_v20 = vmul.f32 %v8689_v30, %v8689_v30  ;;  %v4305_v13 = vmul.f32 %v8687_v2, %v8687_v2  ;;  %v9542_v16 = vld [vmem:[#allocation38_spill] sm:$0xff] }
 0x428   :  { %v4323_v14 = vsel %vm4258_vm3, %v4298_v44, 0.0  ;;  %v4304_v36 = vmul.f32 %v8708_v23, %v8708_v23  ;;  %v4325_v31 = vsel %vm4258_vm3, %v4300_v6, 0.0  ;;  %v4306_v3 = vmul.f32 %v8710_v46, %v8710_v46  ;;  %v4475_v44 = vld [vmem:[%s8821_s2 + $0x1] ss:$2 sm:$0x3] }
 0x429   :  { %v4311_v24 = vadd.f32 %v4310_v35, %v4301_v51  ;;  %v4324_v37 = vadd.f32 %v4323_v14, %v4322_v12  ;;  %v4327_v8 = vsel %vm4258_vm3, %v4302_v34, 0.0  ;;  %v4314_v47 = vsel %vm2053_vm1, %v4307_v20, 0.0  ;;  %v4242_v51 = vld [vmem:[%s8821_s2] ss:$2 sm:$0x3]  ;;  %v9543_v12 = vld [vmem:[#allocation39_spill] sm:$0xff] }
 0x42a   :  { %v4308_v22 = vmul.f32 %v8712_v5, %v8712_v5  ;;  %v4329_v28 = vsel %vm4258_vm3, %v4304_v36, 0.0  ;;  %v4331_v19 = vsel %vm4258_vm3, %v4306_v3, 0.0  ;;  %v4395_v14 = vrot.slane %v4475_v44, %v9543_v12 }
 0x42b   :  { %v4312_v42 = vadd.f32 %v4311_v24, %v4303_v41  ;;  %v4326_v52 = vadd.f32 %v4325_v31, %v4324_v37  ;;  %v9544_v24 = vld [vmem:[#allocation40_spill] sm:$0xff] }
 0x42c   :  { %v4333_v57 = vsel %vm4270_vm4, %v4308_v22, 0.0  ;;  %v4399_v20 = vrot.slane %v4475_v44, %v9544_v24 }
 0x42d   :  { %v4313_v43 = vadd.f32 %v4312_v42, %v4305_v13  ;;  %v4328_v45 = vadd.f32 %v4327_v8, %v4326_v52 }
 0x42f   :  { %v4315_v1 = vadd.f32 %v4314_v47, %v4313_v43  ;;  %v4330_v49 = vadd.f32 %v4329_v28, %v4328_v45 }
 0x431   :  { %v4316_v53 = vrot.slane %v4315_v1, 4  ;;  %v4332_v33 = vadd.f32 %v4331_v19, %v4330_v49 }
 0x433   :  { %v4317_v55 = vadd.f32 %v4316_v53, %v4315_v1  ;;  %v4334_v61 = vadd.f32 %v4333_v57, %v4332_v33 }
 0x435   :  { %v4318_v26 = vrot.slane %v4317_v55, 2  ;;  %v4335_v17 = vrot.slane %v4334_v61, 4 }
 0x437   :  { %v4319_v7 = vadd.f32 %v4318_v26, %v4317_v55  ;;  %v4336_v60 = vadd.f32 %v4335_v17, %v4334_v61 }
 0x439   :  { %v4320_v32 = vrot.slane %v4319_v7, 1  ;;  %v4337_v38 = vrot.slane %v4336_v60, 2 }
 0x43b   :  { %v4321_v40 = vadd.f32 %v4320_v32, %v4319_v7  ;;  %v4338_v56 = vadd.f32 %v4337_v38, %v4336_v60 }
 0x43d   :  { %v4341_v25 = vmul.f32 0.020408163, %v4321_v40  ;;  %v4339_v39 = vrot.slane %v4338_v56, 1 }
 0x43f   :  { %v4340_v54 = vadd.f32 %v4339_v39, %v4338_v56  ;;  %v4343_v58 = vadd.f32 1e-05, %v4341_v25 }
 0x441   :  { %v4342_v50 = vmul.f32 0.020408163, %v4340_v54  ;;  %4724 = vrsqrt.f32 %v4343_v58 }
 0x443   :  { %v4344_v18 = vadd.f32 1e-05, %v4342_v50 }
 0x445   :  { %4726 = vrsqrt.f32 %v4344_v18 }
 0x44b   :  { %v4725_v63 = vpop.eup %4724 }
 0x44f   :  { %v4727_v62 = vpop.eup %4726 }
 0x450   :  { %v4349_v48 = vcombine.low %v4725_v63, %v4727_v62 }
 0x452   :  { %v4356_v10 = vrot.slane %v4349_v48, %v9542_v16 }
 0x454   :  { %v4363_v35 = vrot.slane %v4356_v10, %v9542_v16 }
 0x456   :  { %v4365_v6 = vmul.f32 %v4363_v35, %v4242_v51 }
 0x458   :  { %v4370_v41 = vrot.slane %v4365_v6, %v9543_v12  ;;  %v4374_v34 = vrot.slane %v4365_v6, %v9544_v24 }
 0x45a   :  { %v4377_v37 = vmul.f32 %v4370_v41, %v8677_v29  ;;  %v4378_v13 = vmul.f32 %v4374_v34, %v8692_v9  ;;  %v4379_v42 = vmul.f32 %v4370_v41, %v8679_v4  ;;  %v4380_v36 = vmul.f32 %v4374_v34, %v8701_v27 }
 0x45b   :  { %v4381_v31 = vmul.f32 %v4370_v41, %v8681_v11  ;;  %v4382_v52 = vmul.f32 %v4374_v34, %v8704_v59  ;;  %v4383_v43 = vmul.f32 %v4370_v41, %v8683_v0  ;;  %v4384_v3 = vmul.f32 %v4374_v34, %v8706_v15 }
 0x45c   :  { %v4385_v8 = vmul.f32 %v4370_v41, %v8685_v21  ;;  %v4386_v47 = vmul.f32 %v4374_v34, %v8708_v23  ;;  %v4387_v29 = vmul.f32 %v4370_v41, %v8687_v2  ;;  %v4388_v9 = vmul.f32 %v4374_v34, %v8710_v46 }
 0x45d   :  { %v4389_v4 = vmul.f32 %v4370_v41, %v8689_v30  ;;  %v4390_v27 = vmul.f32 %v4374_v34, %v8712_v5  ;;  %v4402_v45 = vadd.f32 %v4395_v14, %v4377_v37  ;;  %v4403_v11 = vadd.f32 %v4399_v20, %v4378_v13 }
 0x45e   :  { %v4404_v1 = vadd.f32 %v4395_v14, %v4379_v42  ;;  %v4405_v59 = vadd.f32 %v4399_v20, %v4380_v36  ;;  %v4406_v22 = vadd.f32 %v4395_v14, %v4381_v31  ;;  %v4407_v0 = vadd.f32 %v4399_v20, %v4382_v52 }
 0x45f   :  { %v4408_v28 = vadd.f32 %v4395_v14, %v4383_v43  ;;  %v4409_v15 = vadd.f32 %v4399_v20, %v4384_v3  ;;  %v4410_v49 = vadd.f32 %v4395_v14, %v4385_v8  ;;  %v4411_v21 = vadd.f32 %v4399_v20, %v4386_v47 }
 0x460   :  { %v4412_v53 = vadd.f32 %v4395_v14, %v4387_v29  ;;  %v4413_v23 = vadd.f32 %v4399_v20, %v4388_v9  ;;  %v4414_v19 = vadd.f32 %v4395_v14, %v4389_v4  ;;  %v4415_v2 = vadd.f32 %v4399_v20, %v4390_v27 }
 0x461   :  { %v4416_v33 = vmax.f32 %v4402_v45, 0.0  ;;  %v4417_v46 = vmax.f32 %v4403_v11, 0.0  ;;  %v4418_v55 = vmax.f32 %v4404_v1, 0.0  ;;  %v4419_v30 = vmax.f32 %v4405_v59, 0.0 }
 0x462   :  { %v4420_v57 = vmax.f32 %v4406_v22, 0.0  ;;  %v4421_v5 = vmax.f32 %v4407_v0, 0.0  ;;  %v4422_v61 = vmax.f32 %v4408_v28, 0.0  ;;  %v4423_v26 = vmax.f32 %v4409_v15, 0.0 }
 0x463   :  { %v4424_v17 = vmax.f32 %v4410_v49, 0.0  ;;  %v4425_v7 = vmax.f32 %v4411_v21, 0.0  ;;  %v4426_v60 = vmax.f32 %v4412_v53, 0.0  ;;  %v4427_v32 = vmax.f32 %v4413_v23, 0.0  ;;  %4430 = vst [vmem:[%s8823_s4] sm:$0xff] %v4416_v33  ;;  %4431 = vst.msk [vmem:[%s8823_s4 + $0x8] sm:$0xff] %vm4258_vm3, %v4417_v46 }
 0x464   :  { %4432 = vst [vmem:[%s8823_s4 + $0x10] sm:$0xff] %v4418_v55  ;;  %4433 = vst.msk [vmem:[%s8823_s4 + $0x18] sm:$0xff] %vm4258_vm3, %v4419_v30  ;;  %v4428_v38 = vmax.f32 %v4414_v19, 0.0  ;;  %v4429_v40 = vmax.f32 %v4415_v2, 0.0 }
 0x465   :  { %4434 = vst [vmem:[%s8823_s4 + $0x20] sm:$0xff] %v4420_v57  ;;  %4435 = vst.msk [vmem:[%s8823_s4 + $0x28] sm:$0xff] %vm4258_vm3, %v4421_v5 }
 0x466   :  { %4436 = vst [vmem:[%s8823_s4 + $0x30] sm:$0xff] %v4422_v61  ;;  %4437 = vst.msk [vmem:[%s8823_s4 + $0x38] sm:$0xff] %vm4258_vm3, %v4423_v26 }
 0x467   :  { %4438 = vst [vmem:[%s8823_s4 + $0x40] sm:$0xff] %v4424_v17  ;;  %4439 = vst.msk [vmem:[%s8823_s4 + $0x48] sm:$0xff] %vm4258_vm3, %v4425_v7 }
 0x468   :  { %4440 = vst [vmem:[%s8823_s4 + $0x50] sm:$0xff] %v4426_v60  ;;  %4441 = vst.msk [vmem:[%s8823_s4 + $0x58] sm:$0xff] %vm4258_vm3, %v4427_v32 }
 0x469   :  { %4442 = vst [vmem:[%s8823_s4 + $0x60] sm:$0x1] %v4428_v38  ;;  %4443 = vst.msk [vmem:[%s8823_s4 + $0x68] sm:$0x1] %vm4270_vm4, %v4429_v40 }
 0x46a   :  { %4448 = vsyncmov [#allocation3] }
 0x46d   :  { %s4449_s7 = vpop.sfrf %4448 }
 0x46e   :  { %p4476_p0 = scmp.ne.s32.totalorder %s4449_s7, 0 }
 0x470   :  { %4453 = shalt.err (%p4476_p0)  }

</bundles_post_ra>
